<compile_context>
chip_gen: v7x
topology: tpu7x:2x2x1
jax: 0.10.0
libtpu: 0.0.40
codegen_flags: <defaults>
</compile_context>

<pallas_src>
import jax
import jax.numpy as jnp
import numpy as np
from jax.experimental import pallas as pl
from jax.experimental.pallas import tpu as pltpu


# ---------------------------------------------------------------------------
# In-kernel helpers (trace-time; all operate on values held in vregs/VMEM)
# ---------------------------------------------------------------------------

def _pad_hw_2d(x):
    """Zero-pad a 2-D (H, W) tile to (H+2, W+2)."""
    H, W = x.shape
    zr = jnp.zeros((1, W), x.dtype)
    x = jnp.concatenate([zr, x, zr], axis=0)
    zc = jnp.zeros((H + 2, 1), x.dtype)
    return jnp.concatenate([zc, x, zc], axis=1)


def _dw3x3(a, w, b):
    """Depthwise 3x3 conv, padding=1.  a: (H, W, C); w: (3, 3, C); b: (1, C)."""
    H, W, C = a.shape
    zr = jnp.zeros((1, W, C), a.dtype)
    ap = jnp.concatenate([zr, a, zr], axis=0)          # pad H (outer dim: cheap)
    zc = jnp.zeros((H + 2, 1, C), a.dtype)
    ap = jnp.concatenate([zc, ap, zc], axis=1)         # pad W (sublane dim)
    acc = jnp.zeros((H, W, C), jnp.float32)
    for dy in range(3):                                 # 9 taps, unrolled at trace time
        for dx in range(3):
            acc = acc + ap[dy:dy + H, dx:dx + W, :] * w[dy, dx]
    return acc + b                                      # (1, C) broadcast over (H, W, C)


def _maxpool2(a):
    """MaxPool2d(kernel=2, stride=2) on (H, W, C)."""
    H, W, C = a.shape
    a = jnp.max(a.reshape(H // 2, 2, W, C), axis=1)            # pool rows (outer split: free)
    return jnp.max(a.reshape(H // 2, W // 2, 2, C), axis=2)    # pool cols (tiny sublane split)


# ---------------------------------------------------------------------------
# Fused Pallas kernel: whole network for one batch element per grid step
# ---------------------------------------------------------------------------

def fused_kernel(x_ref,
                 dw1_w_ref, dw1_b_ref, pw1_w_ref, pw1_b_ref,
                 dw2_w_ref, dw2_b_ref, pw2_w_ref, pw2_b_ref,
                 dw3_w_ref, dw3_b_ref, pw3_w_ref, pw3_b_ref,
                 fc1_w_ref, fc1_b_ref, fc2_w_ref, fc2_b_ref,
                 o_ref):
    f32 = jnp.float32
    H, W = x_ref.shape[1], x_ref.shape[2]

    # ---- block 1: depthwise 3x3 (Cin=1) on a dense 2-D tile, W on lanes -------
    x = x_ref[0]                                       # (H, W)
    xp = _pad_hw_2d(x)                                 # (H+2, W+2), VMEM-only padding
    acc = jnp.zeros((H, W), f32)
    for dy in range(3):
        for dx in range(3):
            acc = acc + xp[dy:dy + H, dx:dx + W] * dw1_w_ref[3 * dy + dx]   # SMEM scalars
    acc = acc + dw1_b_ref[0]
    # pointwise 1x1 with Cin=1 is rank-1: broadcast-multiply into 32 output lanes.
    a = jnp.maximum(acc[:, :, None] * pw1_w_ref[...] + pw1_b_ref[...], 0.0)  # (H, W, 32)
    a = _maxpool2(a)                                   # (H/2, W/2, 32)

    # ---- block 2: depthwise 3x3 (C=32) + pointwise 32->64 + ReLU + maxpool ----
    a = _dw3x3(a, dw2_w_ref[...], dw2_b_ref[...])      # (8, 8, 32)
    Hh, Ww, Cc = a.shape
    a = jnp.dot(a.reshape(Hh * Ww, Cc), pw2_w_ref[...],
                preferred_element_type=f32) + pw2_b_ref[...]
    a = jnp.maximum(a, 0.0).reshape(Hh, Ww, -1)        # (8, 8, 64)
    a = _maxpool2(a)                                   # (4, 4, 64)

    # ---- block 3: depthwise 3x3 (C=64) + pointwise 64->128 + ReLU -------------
    a = _dw3x3(a, dw3_w_ref[...], dw3_b_ref[...])      # (4, 4, 64)
    Hh, Ww, Cc = a.shape
    a = jnp.dot(a.reshape(Hh * Ww, Cc), pw3_w_ref[...],
                preferred_element_type=f32) + pw3_b_ref[...]
    a = jnp.maximum(a, 0.0)                            # (16, 128) -- stay flat for GAP

    # ---- head: global avg pool + Linear(128,64) + ReLU + Linear(64,1) + Sigmoid
    pooled = jnp.mean(a, axis=0, keepdims=True)        # (1, 128)
    h = jnp.dot(pooled, fc1_w_ref[...], preferred_element_type=f32) + fc1_b_ref[...]
    h = jnp.maximum(h, 0.0)                            # (1, 64)
    # Linear(64, 1) as a lane reduction (avoids a degenerate N=1 MXU matmul).
    z = jnp.sum(h * fc2_w_ref[...], axis=-1, keepdims=True) + fc2_b_ref[...]   # (1, 1)
    sig = 1.0 / (1.0 + jnp.exp(-z))
    # Lane-dense single-vreg store; wrapper slices out column 0.
    o_ref[0] = jnp.broadcast_to(sig, (1, 128))


# ---------------------------------------------------------------------------
# Wrapper (glue: layout squeeze, BlockSpecs, grid setup)
# ---------------------------------------------------------------------------

def _replicated_spec(shape):
    zeros = (0,) * len(shape)
    return pl.BlockSpec(shape, lambda b, _z=zeros: _z)


@jax.jit
def forward(x_nchw, p):
    B, C, H, W = x_nchw.shape
    assert C == 1, "fused kernel implements the in_ch=1 configuration of the module"
    x2d = x_nchw[:, 0, :, :].astype(jnp.float32)       # (B, H, W), channel squeezed

    args = (
        x2d,
        p["dw1_w"].reshape(9), p["dw1_b"].reshape(1),          # SMEM scalars
        p["pw1_w"], p["pw1_b"],
        p["dw2_w"], p["dw2_b"], p["pw2_w"], p["pw2_b"],
        p["dw3_w"], p["dw3_b"], p["pw3_w"], p["pw3_b"],
        p["fc1_w"], p["fc1_b"],
        p["fc2_w"].reshape(1, -1), p["fc2_b"],                 # fc2 weight as a (1, 64) row
    )

    smem_spec = pl.BlockSpec(memory_space=pltpu.MemorySpace.SMEM)
    in_specs = (
        [pl.BlockSpec((1, H, W), lambda b: (b, 0, 0)), smem_spec, smem_spec]
        + [_replicated_spec(a.shape) for a in args[3:]]
    )

    out = pl.pallas_call(
        fused_kernel,
        out_shape=jax.ShapeDtypeStruct((B, 1, 128), jnp.float32),
        grid=(B,),
        in_specs=in_specs,
        out_specs=pl.BlockSpec((1, 1, 128), lambda b: (b, 0, 0)),
        compiler_params=pltpu.CompilerParams(dimension_semantics=("parallel",)),
    )(*args)
    return out[:, 0, :1]                               # (B, 1)


# ---------------------------------------------------------------------------
# Parameters (deterministic, PyTorch-equivalent shapes, stored channel-last)
# ---------------------------------------------------------------------------

def init_params(key, in_ch=1):
    assert in_ch == 1
    keys = jax.random.split(key, 16)

    def u(k, shape, fan_in):
        bound = 1.0 / np.sqrt(fan_in)
        return jax.random.uniform(k, shape, jnp.float32, -bound, bound)

    p = {}
    # block 1: Conv2d(1,1,3,groups=1) + Conv2d(1,32,1)
    p["dw1_w"] = u(keys[0], (3, 3), 9)
    p["dw1_b"] = u(keys[1], (1,), 9)
    p["pw1_w"] = u(keys[2], (1, 32), 1)
    p["pw1_b"] = u(keys[3], (1, 32), 1)
    # block 2: Conv2d(32,32,3,groups=32) + Conv2d(32,64,1)
    p["dw2_w"] = u(keys[4], (3, 3, 32), 9)
    p["dw2_b"] = u(keys[5], (1, 32), 9)
    p["pw2_w"] = u(keys[6], (32, 64), 32)
    p["pw2_b"] = u(keys[7], (1, 64), 32)
    # block 3: Conv2d(64,64,3,groups=64) + Conv2d(64,128,1)
    p["dw3_w"] = u(keys[8], (3, 3, 64), 9)
    p["dw3_b"] = u(keys[9], (1, 64), 9)
    p["pw3_w"] = u(keys[10], (64, 128), 64)
    p["pw3_b"] = u(keys[11], (1, 128), 64)
    # head: Linear(128,64), Linear(64,1)
    p["fc1_w"] = u(keys[12], (128, 64), 128)
    p["fc1_b"] = u(keys[13], (1, 64), 128)
    p["fc2_w"] = u(keys[14], (64, 1), 64)
    p["fc2_b"] = u(keys[15], (1, 1), 64)
    return p


# ---------------------------------------------------------------------------
# Pure-JAX reference
# ---------------------------------------------------------------------------

def ref_forward(x_nchw, p):
    x = jnp.transpose(x_nchw, (0, 2, 3, 1)).astype(jnp.float32)   # NCHW -> NHWC
    dn = ("NHWC", "HWIO", "NHWC")
    hp = jax.lax.Precision.HIGHEST

    def dwsep(x, wdw, bdw, wpw, bpw):
        Cin = x.shape[-1]
        y = jax.lax.conv_general_dilated(
            x, wdw.reshape(3, 3, 1, Cin), (1, 1), "SAME",
            dimension_numbers=dn, feature_group_count=Cin, precision=hp
        ) + bdw.reshape(1, 1, 1, Cin)
        y = jax.lax.conv_general_dilated(
            y, wpw.reshape(1, 1, Cin, -1), (1, 1), "SAME",
            dimension_numbers=dn, precision=hp
        ) + bpw.reshape(1, 1, 1, -1)
        return jax.nn.relu(y)

    def pool(y):
        B, H, W, C = y.shape
        return y.reshape(B, H // 2, 2, W // 2, 2, C).max(axis=(2, 4))

    y = pool(dwsep(x, p["dw1_w"].reshape(3, 3, 1), p["dw1_b"], p["pw1_w"], p["pw1_b"]))
    y = pool(dwsep(y, p["dw2_w"], p["dw2_b"], p["pw2_w"], p["pw2_b"]))
    y = dwsep(y, p["dw3_w"], p["dw3_b"], p["pw3_w"], p["pw3_b"])
    g = y.mean(axis=(1, 2))                                       # (B, 128)
    h = jax.nn.relu(jnp.dot(g, p["fc1_w"], precision=hp) + p["fc1_b"])
    z = jnp.dot(h, p["fc2_w"], precision=hp) + p["fc2_b"]
    return jax.nn.sigmoid(z)                                      # (B, 1)


# ---------------------------------------------------------------------------

if __name__ == "__main__":
    key = jax.random.PRNGKey(0)
    kx, kp = jax.random.split(key)

    B, C, H, W = 2, 1, 16, 16                     # PyTorch-style NCHW input
    x = jax.random.normal(kx, (B, C, H, W), jnp.float32)
    params = init_params(kp, in_ch=C)

    out = jax.block_until_ready(forward(x, params))
    assert out.shape == (B, 1), out.shape

    ref = ref_forward(x, params)
    if not np.allclose(np.asarray(out), np.asarray(ref), rtol=2e-2, atol=2e-3):
        raise AssertionError(f"mismatch:\npallas={np.asarray(out)}\nref={np.asarray(ref)}")

    print("KERNEL_OK")
</pallas_src>

<mosaic_0001>
module attributes {stable_mosaic.version = 11 : i64} {
  func.func @fused_kernel(%arg0: i32, %arg1: memref<1x16x16xf32, #tpu.memory_space<vmem>>, %arg2: memref<9xf32, #tpu.memory_space<smem>>, %arg3: memref<1xf32, #tpu.memory_space<smem>>, %arg4: memref<1x32xf32, #tpu.memory_space<vmem>>, %arg5: memref<1x32xf32, #tpu.memory_space<vmem>>, %arg6: memref<3x3x32xf32, #tpu.memory_space<vmem>>, %arg7: memref<1x32xf32, #tpu.memory_space<vmem>>, %arg8: memref<32x64xf32, #tpu.memory_space<vmem>>, %arg9: memref<1x64xf32, #tpu.memory_space<vmem>>, %arg10: memref<3x3x64xf32, #tpu.memory_space<vmem>>, %arg11: memref<1x64xf32, #tpu.memory_space<vmem>>, %arg12: memref<64x128xf32, #tpu.memory_space<vmem>>, %arg13: memref<1x128xf32, #tpu.memory_space<vmem>>, %arg14: memref<128x64xf32, #tpu.memory_space<vmem>>, %arg15: memref<1x64xf32, #tpu.memory_space<vmem>>, %arg16: memref<1x64xf32, #tpu.memory_space<vmem>>, %arg17: memref<1x1xf32, #tpu.memory_space<vmem>>, %arg18: memref<1x1x128xf32, #tpu.memory_space<vmem>>) attributes {dimension_semantics = [#tpu.dimension_semantics<parallel>], iteration_bounds = array<i64: 2>, scalar_prefetch = 0 : i64, scratch_operands = 0 : i64, tpu.core_type = #tpu.core_type<tc>, window_params = [{transform_indices = @transform_0, window_bounds = array<i64: 1, 16, 16>}, {transform_indices = @transform_1, window_bounds = array<i64: 9>}, {transform_indices = @transform_2, window_bounds = array<i64: 1>}, {pipeline_mode = #tpu.pipeline_mode<synchronous>, transform_indices = @transform_3, window_bounds = array<i64: 1, 32>}, {pipeline_mode = #tpu.pipeline_mode<synchronous>, transform_indices = @transform_4, window_bounds = array<i64: 1, 32>}, {pipeline_mode = #tpu.pipeline_mode<synchronous>, transform_indices = @transform_5, window_bounds = array<i64: 3, 3, 32>}, {pipeline_mode = #tpu.pipeline_mode<synchronous>, transform_indices = @transform_6, window_bounds = array<i64: 1, 32>}, {pipeline_mode = #tpu.pipeline_mode<synchronous>, transform_indices = @transform_7, window_bounds = array<i64: 32, 64>}, {pipeline_mode = #tpu.pipeline_mode<synchronous>, transform_indices = @transform_8, window_bounds = array<i64: 1, 64>}, {pipeline_mode = #tpu.pipeline_mode<synchronous>, transform_indices = @transform_9, window_bounds = array<i64: 3, 3, 64>}, {pipeline_mode = #tpu.pipeline_mode<synchronous>, transform_indices = @transform_10, window_bounds = array<i64: 1, 64>}, {pipeline_mode = #tpu.pipeline_mode<synchronous>, transform_indices = @transform_11, window_bounds = array<i64: 64, 128>}, {pipeline_mode = #tpu.pipeline_mode<synchronous>, transform_indices = @transform_12, window_bounds = array<i64: 1, 128>}, {pipeline_mode = #tpu.pipeline_mode<synchronous>, transform_indices = @transform_13, window_bounds = array<i64: 128, 64>}, {pipeline_mode = #tpu.pipeline_mode<synchronous>, transform_indices = @transform_14, window_bounds = array<i64: 1, 64>}, {pipeline_mode = #tpu.pipeline_mode<synchronous>, transform_indices = @transform_15, window_bounds = array<i64: 1, 64>}, {pipeline_mode = #tpu.pipeline_mode<synchronous>, transform_indices = @transform_16, window_bounds = array<i64: 1, 1>}, {transform_indices = @transform_17, window_bounds = array<i64: 1, 1, 128>}]} {
    %c0 = arith.constant 0 : index
    %c0_0 = arith.constant 0 : index
    %c0_1 = arith.constant 0 : index
    %0 = vector.load %arg1[%c0, %c0_0, %c0_1] : memref<1x16x16xf32, #tpu.memory_space<vmem>>, vector<1x16x16xf32>
    %1 = vector.shape_cast %0 : vector<1x16x16xf32> to vector<16x16xf32>
    %cst = arith.constant 0.000000e+00 : f32
    %2 = vector.broadcast %cst : f32 to vector<1x16xf32>
    %3 = tpu.concatenate %2, %1, %2 in 0 : vector<1x16xf32>, vector<16x16xf32>, vector<1x16xf32> -> vector<18x16xf32>
    %cst_2 = arith.constant 0.000000e+00 : f32
    %4 = vector.broadcast %cst_2 : f32 to vector<18x1xf32>
    %5 = tpu.concatenate %4, %3, %4 in 1 : vector<18x1xf32>, vector<18x16xf32>, vector<18x1xf32> -> vector<18x18xf32>
    %cst_3 = arith.constant 0.000000e+00 : f32
    %6 = vector.broadcast %cst_3 : f32 to vector<16x16xf32>
    %7 = vector.extract_strided_slice %5 {offsets = [0, 0], sizes = [16, 16], strides = [1, 1]} : vector<18x18xf32> to vector<16x16xf32>
    %c0_4 = arith.constant 0 : index
    %8 = memref.load %arg2[%c0_4] : memref<9xf32, #tpu.memory_space<smem>>
    %9 = vector.broadcast %8 : f32 to vector<16x16xf32>
    %10 = arith.mulf %7, %9 : vector<16x16xf32>
    %11 = arith.addf %6, %10 : vector<16x16xf32>
    %12 = vector.extract_strided_slice %5 {offsets = [0, 1], sizes = [16, 16], strides = [1, 1]} : vector<18x18xf32> to vector<16x16xf32>
    %c1 = arith.constant 1 : index
    %13 = memref.load %arg2[%c1] : memref<9xf32, #tpu.memory_space<smem>>
    %14 = vector.broadcast %13 : f32 to vector<16x16xf32>
    %15 = arith.mulf %12, %14 : vector<16x16xf32>
    %16 = arith.addf %11, %15 : vector<16x16xf32>
    %17 = vector.extract_strided_slice %5 {offsets = [0, 2], sizes = [16, 16], strides = [1, 1]} : vector<18x18xf32> to vector<16x16xf32>
    %c2 = arith.constant 2 : index
    %18 = memref.load %arg2[%c2] : memref<9xf32, #tpu.memory_space<smem>>
    %19 = vector.broadcast %18 : f32 to vector<16x16xf32>
    %20 = arith.mulf %17, %19 : vector<16x16xf32>
    %21 = arith.addf %16, %20 : vector<16x16xf32>
    %22 = vector.extract_strided_slice %5 {offsets = [1, 0], sizes = [16, 16], strides = [1, 1]} : vector<18x18xf32> to vector<16x16xf32>
    %c3 = arith.constant 3 : index
    %23 = memref.load %arg2[%c3] : memref<9xf32, #tpu.memory_space<smem>>
    %24 = vector.broadcast %23 : f32 to vector<16x16xf32>
    %25 = arith.mulf %22, %24 : vector<16x16xf32>
    %26 = arith.addf %21, %25 : vector<16x16xf32>
    %27 = vector.extract_strided_slice %5 {offsets = [1, 1], sizes = [16, 16], strides = [1, 1]} : vector<18x18xf32> to vector<16x16xf32>
    %c4 = arith.constant 4 : index
    %28 = memref.load %arg2[%c4] : memref<9xf32, #tpu.memory_space<smem>>
    %29 = vector.broadcast %28 : f32 to vector<16x16xf32>
    %30 = arith.mulf %27, %29 : vector<16x16xf32>
    %31 = arith.addf %26, %30 : vector<16x16xf32>
    %32 = vector.extract_strided_slice %5 {offsets = [1, 2], sizes = [16, 16], strides = [1, 1]} : vector<18x18xf32> to vector<16x16xf32>
    %c5 = arith.constant 5 : index
    %33 = memref.load %arg2[%c5] : memref<9xf32, #tpu.memory_space<smem>>
    %34 = vector.broadcast %33 : f32 to vector<16x16xf32>
    %35 = arith.mulf %32, %34 : vector<16x16xf32>
    %36 = arith.addf %31, %35 : vector<16x16xf32>
    %37 = vector.extract_strided_slice %5 {offsets = [2, 0], sizes = [16, 16], strides = [1, 1]} : vector<18x18xf32> to vector<16x16xf32>
    %c6 = arith.constant 6 : index
    %38 = memref.load %arg2[%c6] : memref<9xf32, #tpu.memory_space<smem>>
    %39 = vector.broadcast %38 : f32 to vector<16x16xf32>
    %40 = arith.mulf %37, %39 : vector<16x16xf32>
    %41 = arith.addf %36, %40 : vector<16x16xf32>
    %42 = vector.extract_strided_slice %5 {offsets = [2, 1], sizes = [16, 16], strides = [1, 1]} : vector<18x18xf32> to vector<16x16xf32>
    %c7 = arith.constant 7 : index
    %43 = memref.load %arg2[%c7] : memref<9xf32, #tpu.memory_space<smem>>
    %44 = vector.broadcast %43 : f32 to vector<16x16xf32>
    %45 = arith.mulf %42, %44 : vector<16x16xf32>
    %46 = arith.addf %41, %45 : vector<16x16xf32>
    %47 = vector.extract_strided_slice %5 {offsets = [2, 2], sizes = [16, 16], strides = [1, 1]} : vector<18x18xf32> to vector<16x16xf32>
    %c8 = arith.constant 8 : index
    %48 = memref.load %arg2[%c8] : memref<9xf32, #tpu.memory_space<smem>>
    %49 = vector.broadcast %48 : f32 to vector<16x16xf32>
    %50 = arith.mulf %47, %49 : vector<16x16xf32>
    %51 = arith.addf %46, %50 : vector<16x16xf32>
    %c0_5 = arith.constant 0 : index
    %52 = memref.load %arg3[%c0_5] : memref<1xf32, #tpu.memory_space<smem>>
    %53 = vector.broadcast %52 : f32 to vector<16x16xf32>
    %54 = arith.addf %51, %53 : vector<16x16xf32>
    %55 = vector.shape_cast %54 : vector<16x16xf32> to vector<16x16x1xf32>
    %c0_6 = arith.constant 0 : index
    %c0_7 = arith.constant 0 : index
    %56 = vector.load %arg4[%c0_6, %c0_7] : memref<1x32xf32, #tpu.memory_space<vmem>>, vector<1x32xf32>
    %57 = vector.shape_cast %56 : vector<1x32xf32> to vector<1x1x32xf32>
    %58 = vector.broadcast %55 : vector<16x16x1xf32> to vector<16x16x32xf32>
    %59 = vector.broadcast %57 : vector<1x1x32xf32> to vector<16x16x32xf32>
    %60 = arith.mulf %58, %59 : vector<16x16x32xf32>
    %c0_8 = arith.constant 0 : index
    %c0_9 = arith.constant 0 : index
    %61 = vector.load %arg5[%c0_8, %c0_9] : memref<1x32xf32, #tpu.memory_space<vmem>>, vector<1x32xf32>
    %62 = vector.shape_cast %61 : vector<1x32xf32> to vector<1x1x32xf32>
    %63 = vector.broadcast %62 : vector<1x1x32xf32> to vector<16x16x32xf32>
    %64 = arith.addf %60, %63 : vector<16x16x32xf32>
    %cst_10 = arith.constant 0.000000e+00 : f32
    %65 = vector.broadcast %cst_10 : f32 to vector<16x16x32xf32>
    %66 = arith.maximumf %64, %65 : vector<16x16x32xf32>
    %67 = vector.shape_cast %66 : vector<16x16x32xf32> to vector<8x2x16x32xf32>
    %cst_11 = arith.constant dense<0xFF800000> : vector<8x16x32xf32>
    %68 = vector.multi_reduction <maximumf>, %67, %cst_11 [1] : vector<8x2x16x32xf32> to vector<8x16x32xf32>
    %69 = vector.shape_cast %68 : vector<8x16x32xf32> to vector<8x8x2x32xf32>
    %cst_12 = arith.constant dense<0xFF800000> : vector<8x8x32xf32>
    %70 = vector.multi_reduction <maximumf>, %69, %cst_12 [2] : vector<8x8x2x32xf32> to vector<8x8x32xf32>
    %c0_13 = arith.constant 0 : index
    %c0_14 = arith.constant 0 : index
    %c0_15 = arith.constant 0 : index
    %71 = vector.load %arg6[%c0_13, %c0_14, %c0_15] : memref<3x3x32xf32, #tpu.memory_space<vmem>>, vector<3x3x32xf32>
    %c0_16 = arith.constant 0 : index
    %c0_17 = arith.constant 0 : index
    %72 = vector.load %arg7[%c0_16, %c0_17] : memref<1x32xf32, #tpu.memory_space<vmem>>, vector<1x32xf32>
    %cst_18 = arith.constant 0.000000e+00 : f32
    %73 = vector.broadcast %cst_18 : f32 to vector<1x8x32xf32>
    %74 = tpu.concatenate %73, %70, %73 in 0 : vector<1x8x32xf32>, vector<8x8x32xf32>, vector<1x8x32xf32> -> vector<10x8x32xf32>
    %cst_19 = arith.constant 0.000000e+00 : f32
    %75 = vector.broadcast %cst_19 : f32 to vector<10x1x32xf32>
    %76 = tpu.concatenate %75, %74, %75 in 1 : vector<10x1x32xf32>, vector<10x8x32xf32>, vector<10x1x32xf32> -> vector<10x10x32xf32>
    %cst_20 = arith.constant 0.000000e+00 : f32
    %77 = vector.broadcast %cst_20 : f32 to vector<8x8x32xf32>
    %78 = vector.extract_strided_slice %76 {offsets = [0, 0, 0], sizes = [8, 8, 32], strides = [1, 1, 1]} : vector<10x10x32xf32> to vector<8x8x32xf32>
    %79 = vector.extract_strided_slice %71 {offsets = [0, 0, 0], sizes = [1, 1, 32], strides = [1, 1, 1]} : vector<3x3x32xf32> to vector<1x1x32xf32>
    %80 = vector.shape_cast %79 : vector<1x1x32xf32> to vector<32xf32>
    %81 = vector.shape_cast %80 : vector<32xf32> to vector<1x1x32xf32>
    %82 = vector.broadcast %81 : vector<1x1x32xf32> to vector<8x8x32xf32>
    %83 = arith.mulf %78, %82 : vector<8x8x32xf32>
    %84 = arith.addf %77, %83 : vector<8x8x32xf32>
    %85 = vector.extract_strided_slice %76 {offsets = [0, 1, 0], sizes = [8, 8, 32], strides = [1, 1, 1]} : vector<10x10x32xf32> to vector<8x8x32xf32>
    %86 = vector.extract_strided_slice %71 {offsets = [0, 1, 0], sizes = [1, 1, 32], strides = [1, 1, 1]} : vector<3x3x32xf32> to vector<1x1x32xf32>
    %87 = vector.shape_cast %86 : vector<1x1x32xf32> to vector<32xf32>
    %88 = vector.shape_cast %87 : vector<32xf32> to vector<1x1x32xf32>
    %89 = vector.broadcast %88 : vector<1x1x32xf32> to vector<8x8x32xf32>
    %90 = arith.mulf %85, %89 : vector<8x8x32xf32>
    %91 = arith.addf %84, %90 : vector<8x8x32xf32>
    %92 = vector.extract_strided_slice %76 {offsets = [0, 2, 0], sizes = [8, 8, 32], strides = [1, 1, 1]} : vector<10x10x32xf32> to vector<8x8x32xf32>
    %93 = vector.extract_strided_slice %71 {offsets = [0, 2, 0], sizes = [1, 1, 32], strides = [1, 1, 1]} : vector<3x3x32xf32> to vector<1x1x32xf32>
    %94 = vector.shape_cast %93 : vector<1x1x32xf32> to vector<32xf32>
    %95 = vector.shape_cast %94 : vector<32xf32> to vector<1x1x32xf32>
    %96 = vector.broadcast %95 : vector<1x1x32xf32> to vector<8x8x32xf32>
    %97 = arith.mulf %92, %96 : vector<8x8x32xf32>
    %98 = arith.addf %91, %97 : vector<8x8x32xf32>
    %99 = vector.extract_strided_slice %76 {offsets = [1, 0, 0], sizes = [8, 8, 32], strides = [1, 1, 1]} : vector<10x10x32xf32> to vector<8x8x32xf32>
    %100 = vector.extract_strided_slice %71 {offsets = [1, 0, 0], sizes = [1, 1, 32], strides = [1, 1, 1]} : vector<3x3x32xf32> to vector<1x1x32xf32>
    %101 = vector.shape_cast %100 : vector<1x1x32xf32> to vector<32xf32>
    %102 = vector.shape_cast %101 : vector<32xf32> to vector<1x1x32xf32>
    %103 = vector.broadcast %102 : vector<1x1x32xf32> to vector<8x8x32xf32>
    %104 = arith.mulf %99, %103 : vector<8x8x32xf32>
    %105 = arith.addf %98, %104 : vector<8x8x32xf32>
    %106 = vector.extract_strided_slice %76 {offsets = [1, 1, 0], sizes = [8, 8, 32], strides = [1, 1, 1]} : vector<10x10x32xf32> to vector<8x8x32xf32>
    %107 = vector.extract_strided_slice %71 {offsets = [1, 1, 0], sizes = [1, 1, 32], strides = [1, 1, 1]} : vector<3x3x32xf32> to vector<1x1x32xf32>
    %108 = vector.shape_cast %107 : vector<1x1x32xf32> to vector<32xf32>
    %109 = vector.shape_cast %108 : vector<32xf32> to vector<1x1x32xf32>
    %110 = vector.broadcast %109 : vector<1x1x32xf32> to vector<8x8x32xf32>
    %111 = arith.mulf %106, %110 : vector<8x8x32xf32>
    %112 = arith.addf %105, %111 : vector<8x8x32xf32>
    %113 = vector.extract_strided_slice %76 {offsets = [1, 2, 0], sizes = [8, 8, 32], strides = [1, 1, 1]} : vector<10x10x32xf32> to vector<8x8x32xf32>
    %114 = vector.extract_strided_slice %71 {offsets = [1, 2, 0], sizes = [1, 1, 32], strides = [1, 1, 1]} : vector<3x3x32xf32> to vector<1x1x32xf32>
    %115 = vector.shape_cast %114 : vector<1x1x32xf32> to vector<32xf32>
    %116 = vector.shape_cast %115 : vector<32xf32> to vector<1x1x32xf32>
    %117 = vector.broadcast %116 : vector<1x1x32xf32> to vector<8x8x32xf32>
    %118 = arith.mulf %113, %117 : vector<8x8x32xf32>
    %119 = arith.addf %112, %118 : vector<8x8x32xf32>
    %120 = vector.extract_strided_slice %76 {offsets = [2, 0, 0], sizes = [8, 8, 32], strides = [1, 1, 1]} : vector<10x10x32xf32> to vector<8x8x32xf32>
    %121 = vector.extract_strided_slice %71 {offsets = [2, 0, 0], sizes = [1, 1, 32], strides = [1, 1, 1]} : vector<3x3x32xf32> to vector<1x1x32xf32>
    %122 = vector.shape_cast %121 : vector<1x1x32xf32> to vector<32xf32>
    %123 = vector.shape_cast %122 : vector<32xf32> to vector<1x1x32xf32>
    %124 = vector.broadcast %123 : vector<1x1x32xf32> to vector<8x8x32xf32>
    %125 = arith.mulf %120, %124 : vector<8x8x32xf32>
    %126 = arith.addf %119, %125 : vector<8x8x32xf32>
    %127 = vector.extract_strided_slice %76 {offsets = [2, 1, 0], sizes = [8, 8, 32], strides = [1, 1, 1]} : vector<10x10x32xf32> to vector<8x8x32xf32>
    %128 = vector.extract_strided_slice %71 {offsets = [2, 1, 0], sizes = [1, 1, 32], strides = [1, 1, 1]} : vector<3x3x32xf32> to vector<1x1x32xf32>
    %129 = vector.shape_cast %128 : vector<1x1x32xf32> to vector<32xf32>
    %130 = vector.shape_cast %129 : vector<32xf32> to vector<1x1x32xf32>
    %131 = vector.broadcast %130 : vector<1x1x32xf32> to vector<8x8x32xf32>
    %132 = arith.mulf %127, %131 : vector<8x8x32xf32>
    %133 = arith.addf %126, %132 : vector<8x8x32xf32>
    %134 = vector.extract_strided_slice %76 {offsets = [2, 2, 0], sizes = [8, 8, 32], strides = [1, 1, 1]} : vector<10x10x32xf32> to vector<8x8x32xf32>
    %135 = vector.extract_strided_slice %71 {offsets = [2, 2, 0], sizes = [1, 1, 32], strides = [1, 1, 1]} : vector<3x3x32xf32> to vector<1x1x32xf32>
    %136 = vector.shape_cast %135 : vector<1x1x32xf32> to vector<32xf32>
    %137 = vector.shape_cast %136 : vector<32xf32> to vector<1x1x32xf32>
    %138 = vector.broadcast %137 : vector<1x1x32xf32> to vector<8x8x32xf32>
    %139 = arith.mulf %134, %138 : vector<8x8x32xf32>
    %140 = arith.addf %133, %139 : vector<8x8x32xf32>
    %141 = vector.shape_cast %72 : vector<1x32xf32> to vector<1x1x32xf32>
    %142 = vector.broadcast %141 : vector<1x1x32xf32> to vector<8x8x32xf32>
    %143 = arith.addf %140, %142 : vector<8x8x32xf32>
    %144 = vector.shape_cast %143 : vector<8x8x32xf32> to vector<64x32xf32>
    %c0_21 = arith.constant 0 : index
    %c0_22 = arith.constant 0 : index
    %145 = vector.load %arg8[%c0_21, %c0_22] : memref<32x64xf32, #tpu.memory_space<vmem>>, vector<32x64xf32>
    %cst_23 = arith.constant dense<0.000000e+00> : vector<64x64xf32>
    %146 = tpu.matmul %144, %145, %cst_23 {dimension_numbers = #tpu.dot_dimension_numbers<[1], [0], [0], [1], [0, 0, 1, 1], [], []>} : vector<64x32xf32>, vector<32x64xf32>, vector<64x64xf32> -> vector<64x64xf32>
    %c0_24 = arith.constant 0 : index
    %c0_25 = arith.constant 0 : index
    %147 = vector.load %arg9[%c0_24, %c0_25] : memref<1x64xf32, #tpu.memory_space<vmem>>, vector<1x64xf32>
    %148 = vector.broadcast %147 : vector<1x64xf32> to vector<64x64xf32>
    %149 = arith.addf %146, %148 : vector<64x64xf32>
    %cst_26 = arith.constant 0.000000e+00 : f32
    %150 = vector.broadcast %cst_26 : f32 to vector<64x64xf32>
    %151 = arith.maximumf %149, %150 : vector<64x64xf32>
    %152 = vector.shape_cast %151 : vector<64x64xf32> to vector<8x8x64xf32>
    %153 = vector.shape_cast %152 : vector<8x8x64xf32> to vector<4x2x8x64xf32>
    %cst_27 = arith.constant dense<0xFF800000> : vector<4x8x64xf32>
    %154 = vector.multi_reduction <maximumf>, %153, %cst_27 [1] : vector<4x2x8x64xf32> to vector<4x8x64xf32>
    %155 = vector.shape_cast %154 : vector<4x8x64xf32> to vector<4x4x2x64xf32>
    %cst_28 = arith.constant dense<0xFF800000> : vector<4x4x64xf32>
    %156 = vector.multi_reduction <maximumf>, %155, %cst_28 [2] : vector<4x4x2x64xf32> to vector<4x4x64xf32>
    %c0_29 = arith.constant 0 : index
    %c0_30 = arith.constant 0 : index
    %c0_31 = arith.constant 0 : index
    %157 = vector.load %arg10[%c0_29, %c0_30, %c0_31] : memref<3x3x64xf32, #tpu.memory_space<vmem>>, vector<3x3x64xf32>
    %c0_32 = arith.constant 0 : index
    %c0_33 = arith.constant 0 : index
    %158 = vector.load %arg11[%c0_32, %c0_33] : memref<1x64xf32, #tpu.memory_space<vmem>>, vector<1x64xf32>
    %cst_34 = arith.constant 0.000000e+00 : f32
    %159 = vector.broadcast %cst_34 : f32 to vector<1x4x64xf32>
    %160 = tpu.concatenate %159, %156, %159 in 0 : vector<1x4x64xf32>, vector<4x4x64xf32>, vector<1x4x64xf32> -> vector<6x4x64xf32>
    %cst_35 = arith.constant 0.000000e+00 : f32
    %161 = vector.broadcast %cst_35 : f32 to vector<6x1x64xf32>
    %162 = tpu.concatenate %161, %160, %161 in 1 : vector<6x1x64xf32>, vector<6x4x64xf32>, vector<6x1x64xf32> -> vector<6x6x64xf32>
    %cst_36 = arith.constant 0.000000e+00 : f32
    %163 = vector.broadcast %cst_36 : f32 to vector<4x4x64xf32>
    %164 = vector.extract_strided_slice %162 {offsets = [0, 0, 0], sizes = [4, 4, 64], strides = [1, 1, 1]} : vector<6x6x64xf32> to vector<4x4x64xf32>
    %165 = vector.extract_strided_slice %157 {offsets = [0, 0, 0], sizes = [1, 1, 64], strides = [1, 1, 1]} : vector<3x3x64xf32> to vector<1x1x64xf32>
    %166 = vector.shape_cast %165 : vector<1x1x64xf32> to vector<64xf32>
    %167 = vector.shape_cast %166 : vector<64xf32> to vector<1x1x64xf32>
    %168 = vector.broadcast %167 : vector<1x1x64xf32> to vector<4x4x64xf32>
    %169 = arith.mulf %164, %168 : vector<4x4x64xf32>
    %170 = arith.addf %163, %169 : vector<4x4x64xf32>
    %171 = vector.extract_strided_slice %162 {offsets = [0, 1, 0], sizes = [4, 4, 64], strides = [1, 1, 1]} : vector<6x6x64xf32> to vector<4x4x64xf32>
    %172 = vector.extract_strided_slice %157 {offsets = [0, 1, 0], sizes = [1, 1, 64], strides = [1, 1, 1]} : vector<3x3x64xf32> to vector<1x1x64xf32>
    %173 = vector.shape_cast %172 : vector<1x1x64xf32> to vector<64xf32>
    %174 = vector.shape_cast %173 : vector<64xf32> to vector<1x1x64xf32>
    %175 = vector.broadcast %174 : vector<1x1x64xf32> to vector<4x4x64xf32>
    %176 = arith.mulf %171, %175 : vector<4x4x64xf32>
    %177 = arith.addf %170, %176 : vector<4x4x64xf32>
    %178 = vector.extract_strided_slice %162 {offsets = [0, 2, 0], sizes = [4, 4, 64], strides = [1, 1, 1]} : vector<6x6x64xf32> to vector<4x4x64xf32>
    %179 = vector.extract_strided_slice %157 {offsets = [0, 2, 0], sizes = [1, 1, 64], strides = [1, 1, 1]} : vector<3x3x64xf32> to vector<1x1x64xf32>
    %180 = vector.shape_cast %179 : vector<1x1x64xf32> to vector<64xf32>
    %181 = vector.shape_cast %180 : vector<64xf32> to vector<1x1x64xf32>
    %182 = vector.broadcast %181 : vector<1x1x64xf32> to vector<4x4x64xf32>
    %183 = arith.mulf %178, %182 : vector<4x4x64xf32>
    %184 = arith.addf %177, %183 : vector<4x4x64xf32>
    %185 = vector.extract_strided_slice %162 {offsets = [1, 0, 0], sizes = [4, 4, 64], strides = [1, 1, 1]} : vector<6x6x64xf32> to vector<4x4x64xf32>
    %186 = vector.extract_strided_slice %157 {offsets = [1, 0, 0], sizes = [1, 1, 64], strides = [1, 1, 1]} : vector<3x3x64xf32> to vector<1x1x64xf32>
    %187 = vector.shape_cast %186 : vector<1x1x64xf32> to vector<64xf32>
    %188 = vector.shape_cast %187 : vector<64xf32> to vector<1x1x64xf32>
    %189 = vector.broadcast %188 : vector<1x1x64xf32> to vector<4x4x64xf32>
    %190 = arith.mulf %185, %189 : vector<4x4x64xf32>
    %191 = arith.addf %184, %190 : vector<4x4x64xf32>
    %192 = vector.extract_strided_slice %162 {offsets = [1, 1, 0], sizes = [4, 4, 64], strides = [1, 1, 1]} : vector<6x6x64xf32> to vector<4x4x64xf32>
    %193 = vector.extract_strided_slice %157 {offsets = [1, 1, 0], sizes = [1, 1, 64], strides = [1, 1, 1]} : vector<3x3x64xf32> to vector<1x1x64xf32>
    %194 = vector.shape_cast %193 : vector<1x1x64xf32> to vector<64xf32>
    %195 = vector.shape_cast %194 : vector<64xf32> to vector<1x1x64xf32>
    %196 = vector.broadcast %195 : vector<1x1x64xf32> to vector<4x4x64xf32>
    %197 = arith.mulf %192, %196 : vector<4x4x64xf32>
    %198 = arith.addf %191, %197 : vector<4x4x64xf32>
    %199 = vector.extract_strided_slice %162 {offsets = [1, 2, 0], sizes = [4, 4, 64], strides = [1, 1, 1]} : vector<6x6x64xf32> to vector<4x4x64xf32>
    %200 = vector.extract_strided_slice %157 {offsets = [1, 2, 0], sizes = [1, 1, 64], strides = [1, 1, 1]} : vector<3x3x64xf32> to vector<1x1x64xf32>
    %201 = vector.shape_cast %200 : vector<1x1x64xf32> to vector<64xf32>
    %202 = vector.shape_cast %201 : vector<64xf32> to vector<1x1x64xf32>
    %203 = vector.broadcast %202 : vector<1x1x64xf32> to vector<4x4x64xf32>
    %204 = arith.mulf %199, %203 : vector<4x4x64xf32>
    %205 = arith.addf %198, %204 : vector<4x4x64xf32>
    %206 = vector.extract_strided_slice %162 {offsets = [2, 0, 0], sizes = [4, 4, 64], strides = [1, 1, 1]} : vector<6x6x64xf32> to vector<4x4x64xf32>
    %207 = vector.extract_strided_slice %157 {offsets = [2, 0, 0], sizes = [1, 1, 64], strides = [1, 1, 1]} : vector<3x3x64xf32> to vector<1x1x64xf32>
    %208 = vector.shape_cast %207 : vector<1x1x64xf32> to vector<64xf32>
    %209 = vector.shape_cast %208 : vector<64xf32> to vector<1x1x64xf32>
    %210 = vector.broadcast %209 : vector<1x1x64xf32> to vector<4x4x64xf32>
    %211 = arith.mulf %206, %210 : vector<4x4x64xf32>
    %212 = arith.addf %205, %211 : vector<4x4x64xf32>
    %213 = vector.extract_strided_slice %162 {offsets = [2, 1, 0], sizes = [4, 4, 64], strides = [1, 1, 1]} : vector<6x6x64xf32> to vector<4x4x64xf32>
    %214 = vector.extract_strided_slice %157 {offsets = [2, 1, 0], sizes = [1, 1, 64], strides = [1, 1, 1]} : vector<3x3x64xf32> to vector<1x1x64xf32>
    %215 = vector.shape_cast %214 : vector<1x1x64xf32> to vector<64xf32>
    %216 = vector.shape_cast %215 : vector<64xf32> to vector<1x1x64xf32>
    %217 = vector.broadcast %216 : vector<1x1x64xf32> to vector<4x4x64xf32>
    %218 = arith.mulf %213, %217 : vector<4x4x64xf32>
    %219 = arith.addf %212, %218 : vector<4x4x64xf32>
    %220 = vector.extract_strided_slice %162 {offsets = [2, 2, 0], sizes = [4, 4, 64], strides = [1, 1, 1]} : vector<6x6x64xf32> to vector<4x4x64xf32>
    %221 = vector.extract_strided_slice %157 {offsets = [2, 2, 0], sizes = [1, 1, 64], strides = [1, 1, 1]} : vector<3x3x64xf32> to vector<1x1x64xf32>
    %222 = vector.shape_cast %221 : vector<1x1x64xf32> to vector<64xf32>
    %223 = vector.shape_cast %222 : vector<64xf32> to vector<1x1x64xf32>
    %224 = vector.broadcast %223 : vector<1x1x64xf32> to vector<4x4x64xf32>
    %225 = arith.mulf %220, %224 : vector<4x4x64xf32>
    %226 = arith.addf %219, %225 : vector<4x4x64xf32>
    %227 = vector.shape_cast %158 : vector<1x64xf32> to vector<1x1x64xf32>
    %228 = vector.broadcast %227 : vector<1x1x64xf32> to vector<4x4x64xf32>
    %229 = arith.addf %226, %228 : vector<4x4x64xf32>
    %230 = vector.shape_cast %229 : vector<4x4x64xf32> to vector<16x64xf32>
    %c0_37 = arith.constant 0 : index
    %c0_38 = arith.constant 0 : index
    %231 = vector.load %arg12[%c0_37, %c0_38] : memref<64x128xf32, #tpu.memory_space<vmem>>, vector<64x128xf32>
    %cst_39 = arith.constant dense<0.000000e+00> : vector<16x128xf32>
    %232 = tpu.matmul %230, %231, %cst_39 {dimension_numbers = #tpu.dot_dimension_numbers<[1], [0], [0], [1], [0, 0, 1, 1], [], []>} : vector<16x64xf32>, vector<64x128xf32>, vector<16x128xf32> -> vector<16x128xf32>
    %c0_40 = arith.constant 0 : index
    %c0_41 = arith.constant 0 : index
    %233 = vector.load %arg13[%c0_40, %c0_41] : memref<1x128xf32, #tpu.memory_space<vmem>>, vector<1x128xf32>
    %234 = vector.broadcast %233 : vector<1x128xf32> to vector<16x128xf32>
    %235 = arith.addf %232, %234 : vector<16x128xf32>
    %cst_42 = arith.constant 0.000000e+00 : f32
    %236 = vector.broadcast %cst_42 : f32 to vector<16x128xf32>
    %237 = arith.maximumf %235, %236 : vector<16x128xf32>
    %cst_43 = arith.constant dense<0.000000e+00> : vector<128xf32>
    %238 = vector.multi_reduction <add>, %237, %cst_43 [0] : vector<16x128xf32> to vector<128xf32>
    %239 = vector.shape_cast %238 : vector<128xf32> to vector<1x128xf32>
    %cst_44 = arith.constant 1.600000e+01 : f32
    %240 = vector.broadcast %cst_44 : f32 to vector<1x128xf32>
    %241 = arith.divf %239, %240 : vector<1x128xf32>
    %c0_45 = arith.constant 0 : index
    %c0_46 = arith.constant 0 : index
    %242 = vector.load %arg14[%c0_45, %c0_46] : memref<128x64xf32, #tpu.memory_space<vmem>>, vector<128x64xf32>
    %cst_47 = arith.constant dense<0.000000e+00> : vector<1x64xf32>
    %243 = tpu.matmul %241, %242, %cst_47 {dimension_numbers = #tpu.dot_dimension_numbers<[1], [0], [0], [1], [0, 0, 1, 1], [], []>} : vector<1x128xf32>, vector<128x64xf32>, vector<1x64xf32> -> vector<1x64xf32>
    %c0_48 = arith.constant 0 : index
    %c0_49 = arith.constant 0 : index
    %244 = vector.load %arg15[%c0_48, %c0_49] : memref<1x64xf32, #tpu.memory_space<vmem>>, vector<1x64xf32>
    %245 = arith.addf %243, %244 : vector<1x64xf32>
    %cst_50 = arith.constant 0.000000e+00 : f32
    %246 = vector.broadcast %cst_50 : f32 to vector<1x64xf32>
    %247 = arith.maximumf %245, %246 : vector<1x64xf32>
    %c0_51 = arith.constant 0 : index
    %c0_52 = arith.constant 0 : index
    %248 = vector.load %arg16[%c0_51, %c0_52] : memref<1x64xf32, #tpu.memory_space<vmem>>, vector<1x64xf32>
    %249 = arith.mulf %247, %248 : vector<1x64xf32>
    %cst_53 = arith.constant dense<0.000000e+00> : vector<1xf32>
    %250 = vector.multi_reduction <add>, %249, %cst_53 [1] : vector<1x64xf32> to vector<1xf32>
    %251 = vector.shape_cast %250 : vector<1xf32> to vector<1x1xf32>
    %c0_54 = arith.constant 0 : index
    %c0_55 = arith.constant 0 : index
    %252 = vector.load %arg17[%c0_54, %c0_55] : memref<1x1xf32, #tpu.memory_space<vmem>>, vector<1x1xf32>
    %253 = arith.addf %251, %252 : vector<1x1xf32>
    %cst_56 = arith.constant 0.000000e+00 : f32
    %254 = vector.broadcast %cst_56 : f32 to vector<1x1xf32>
    %255 = arith.subf %254, %253 : vector<1x1xf32>
    %256 = math.exp %255 : vector<1x1xf32>
    %cst_57 = arith.constant 1.000000e+00 : f32
    %257 = vector.broadcast %cst_57 : f32 to vector<1x1xf32>
    %258 = arith.addf %257, %256 : vector<1x1xf32>
    %cst_58 = arith.constant 1.000000e+00 : f32
    %259 = vector.broadcast %cst_58 : f32 to vector<1x1xf32>
    %260 = arith.divf %259, %258 : vector<1x1xf32>
    %261 = vector.shape_cast %260 : vector<1x1xf32> to vector<1x1xf32>
    %262 = vector.broadcast %261 : vector<1x1xf32> to vector<1x128xf32>
    %c0_59 = arith.constant 0 : index
    %c0_60 = arith.constant 0 : index
    %c0_61 = arith.constant 0 : index
    %263 = vector.load %arg18[%c0_59, %c0_60, %c0_61] : memref<1x1x128xf32, #tpu.memory_space<vmem>>, vector<1x1x128xf32>
    %264 = vector.shape_cast %263 : vector<1x1x128xf32> to vector<1x128xf32>
    %265 = vector.shape_cast %262 : vector<1x128xf32> to vector<1x1x128xf32>
    tpu.vector_store %arg18[%c0_59, %c0_60, %c0_61], %265 {strides = array<i32>} : memref<1x1x128xf32, #tpu.memory_space<vmem>>, vector<1x1x128xf32>,
    return
  }
  func.func @transform_0(%arg0: i32) -> (i32, i32, i32) {
    %c0_i32 = arith.constant 0 : i32
    %c0_i32_0 = arith.constant 0 : i32
    %c0_i32_1 = arith.constant 0 : i32
    return %arg0, %c0_i32, %c0_i32_0 : i32, i32, i32
  }
  func.func @transform_1(%arg0: i32) -> i32 {
    %c0_i32 = arith.constant 0 : i32
    %c0_i32_0 = arith.constant 0 : i32
    return %c0_i32 : i32
  }
  func.func @transform_2(%arg0: i32) -> i32 {
    %c0_i32 = arith.constant 0 : i32
    %c0_i32_0 = arith.constant 0 : i32
    return %c0_i32 : i32
  }
  func.func @transform_3(%arg0: i32) -> (i32, i32) {
    %c0_i32 = arith.constant 0 : i32
    %c0_i32_0 = arith.constant 0 : i32
    %c0_i32_1 = arith.constant 0 : i32
    return %c0_i32, %c0_i32_0 : i32, i32
  }
  func.func @transform_4(%arg0: i32) -> (i32, i32) {
    %c0_i32 = arith.constant 0 : i32
    %c0_i32_0 = arith.constant 0 : i32
    %c0_i32_1 = arith.constant 0 : i32
    return %c0_i32, %c0_i32_0 : i32, i32
  }
  func.func @transform_5(%arg0: i32) -> (i32, i32, i32) {
    %c0_i32 = arith.constant 0 : i32
    %c0_i32_0 = arith.constant 0 : i32
    %c0_i32_1 = arith.constant 0 : i32
    %c0_i32_2 = arith.constant 0 : i32
    return %c0_i32, %c0_i32_0, %c0_i32_1 : i32, i32, i32
  }
  func.func @transform_6(%arg0: i32) -> (i32, i32) {
    %c0_i32 = arith.constant 0 : i32
    %c0_i32_0 = arith.constant 0 : i32
    %c0_i32_1 = arith.constant 0 : i32
    return %c0_i32, %c0_i32_0 : i32, i32
  }
  func.func @transform_7(%arg0: i32) -> (i32, i32) {
    %c0_i32 = arith.constant 0 : i32
    %c0_i32_0 = arith.constant 0 : i32
    %c0_i32_1 = arith.constant 0 : i32
    return %c0_i32, %c0_i32_0 : i32, i32
  }
  func.func @transform_8(%arg0: i32) -> (i32, i32) {
    %c0_i32 = arith.constant 0 : i32
    %c0_i32_0 = arith.constant 0 : i32
    %c0_i32_1 = arith.constant 0 : i32
    return %c0_i32, %c0_i32_0 : i32, i32
  }
  func.func @transform_9(%arg0: i32) -> (i32, i32, i32) {
    %c0_i32 = arith.constant 0 : i32
    %c0_i32_0 = arith.constant 0 : i32
    %c0_i32_1 = arith.constant 0 : i32
    %c0_i32_2 = arith.constant 0 : i32
    return %c0_i32, %c0_i32_0, %c0_i32_1 : i32, i32, i32
  }
  func.func @transform_10(%arg0: i32) -> (i32, i32) {
    %c0_i32 = arith.constant 0 : i32
    %c0_i32_0 = arith.constant 0 : i32
    %c0_i32_1 = arith.constant 0 : i32
    return %c0_i32, %c0_i32_0 : i32, i32
  }
  func.func @transform_11(%arg0: i32) -> (i32, i32) {
    %c0_i32 = arith.constant 0 : i32
    %c0_i32_0 = arith.constant 0 : i32
    %c0_i32_1 = arith.constant 0 : i32
    return %c0_i32, %c0_i32_0 : i32, i32
  }
  func.func @transform_12(%arg0: i32) -> (i32, i32) {
    %c0_i32 = arith.constant 0 : i32
    %c0_i32_0 = arith.constant 0 : i32
    %c0_i32_1 = arith.constant 0 : i32
    return %c0_i32, %c0_i32_0 : i32, i32
  }
  func.func @transform_13(%arg0: i32) -> (i32, i32) {
    %c0_i32 = arith.constant 0 : i32
    %c0_i32_0 = arith.constant 0 : i32
    %c0_i32_1 = arith.constant 0 : i32
    return %c0_i32, %c0_i32_0 : i32, i32
  }
  func.func @transform_14(%arg0: i32) -> (i32, i32) {
    %c0_i32 = arith.constant 0 : i32
    %c0_i32_0 = arith.constant 0 : i32
    %c0_i32_1 = arith.constant 0 : i32
    return %c0_i32, %c0_i32_0 : i32, i32
  }
  func.func @transform_15(%arg0: i32) -> (i32, i32) {
    %c0_i32 = arith.constant 0 : i32
    %c0_i32_0 = arith.constant 0 : i32
    %c0_i32_1 = arith.constant 0 : i32
    return %c0_i32, %c0_i32_0 : i32, i32
  }
  func.func @transform_16(%arg0: i32) -> (i32, i32) {
    %c0_i32 = arith.constant 0 : i32
    %c0_i32_0 = arith.constant 0 : i32
    %c0_i32_1 = arith.constant 0 : i32
    return %c0_i32, %c0_i32_0 : i32, i32
  }
  func.func @transform_17(%arg0: i32) -> (i32, i32, i32) {
    %c0_i32 = arith.constant 0 : i32
    %c0_i32_0 = arith.constant 0 : i32
    %c0_i32_1 = arith.constant 0 : i32
    return %arg0, %c0_i32, %c0_i32_0 : i32, i32, i32
  }
}

</mosaic_0001>

<bundles_post_ra>
// kernel: forward.1
= control target key start
LH: loop header
LB: loop body
LE: loop exit
PB: predicated region body
PF: predicated region fallthrough
CT: control target
= control target key end

     0   :  { %s4987_s0 = inlined_call_operand.vmem [shape: f32[2,16,16], index: 0, kind: input, shape index: {}]   ;;  %s4988_s1 = inlined_call_operand.vmem [shape: f32[9], index: 1, kind: input, shape index: {}]   ;;  %s4989_s2 = inlined_call_operand.<no memory space> [shape: f32[1], index: 2, kind: input, shape index: {}]   ;;  %s4990_s3 = inlined_call_operand.vmem [shape: f32[1,32], index: 3, kind: input, shape index: {}]   ;;  %s4991_s4 = inlined_call_operand.vmem [shape: f32[1,32], index: 4, kind: input, shape index: {}]   ;;  %s4992_s5 = inlined_call_operand.vmem [shape: f32[3,3,32], index: 5, kind: input, shape index: {}]   ;;  %s4993_s6 = inlined_call_operand.vmem [shape: f32[1,32], index: 6, kind: input, shape index: {}]   ;;  %s4994_s7 = inlined_call_operand.vmem [shape: f32[32,64], index: 7, kind: input, shape index: {}]   ;;  %s4995_s8 = inlined_call_operand.vmem [shape: f32[1,64], index: 8, kind: input, shape index: {}]   ;;  %s4996_s9 = inlined_call_operand.vmem [shape: f32[3,3,64], index: 9, kind: input, shape index: {}]   ;;  %s4997_s10 = inlined_call_operand.vmem [shape: f32[1,64], index: 10, kind: input, shape index: {}]   ;;  %s4998_s11 = inlined_call_operand.vmem [shape: f32[64,128], index: 11, kind: input, shape index: {}]   ;;  %s4999_s12 = inlined_call_operand.vmem [shape: f32[1,128], index: 12, kind: input, shape index: {}]   ;;  %s5000_s13 = inlined_call_operand.vmem [shape: f32[128,64], index: 13, kind: input, shape index: {}]   ;;  %s5001_s14 = inlined_call_operand.vmem [shape: f32[1,64], index: 14, kind: input, shape index: {}]   ;;  %s5002_s15 = inlined_call_operand.vmem [shape: f32[1,64], index: 15, kind: input, shape index: {}]   ;;  %s5003_s16 = inlined_call_operand.<no memory space> [shape: f32[1,1], index: 16, kind: input, shape index: {}]   ;;  %s5004_s17 = inlined_call_operand.vmem [shape: f32[2,1,128], index: 17, kind: output, shape index: {}]  }
   0x1   :  { %5007 = sst [smem:[#allocation7_spill]] %s4987_s0  ;;  %v23_v0 = vstv %s5003_s16 }
   0x2   :  { %5008 = sst [smem:[#allocation8_spill]] %s4988_s1  ;;  %24 = vst [vmem:[#allocation3] sm:$0x1] %v23_v0 }
   0x3   :  { %22 = sst [smem:[#allocation2]] %s4989_s2 }
   0x4   :  { %25 = vsyncpa [#allocation5], 0  ;;  %s3828_s28 = smov 0  }
   0x5 LB: > { %s3465_s29 = sadd.s32 4294967295, %s3721_s28   ;;  %p3467_p0 = scmp.ge.s32.totalorder %s3721_s28, 1  ;;  %s3721_s28 = sphi %s3828_s28, %s31_s28  }
   0x6   : > { %p424_p1 = scmp.lt.s32.totalorder %s3721_s28, 3  ;;  %s5009_s30 = sld [smem:[#allocation8_spill]] }
   0x7   : > { %p3670_p3 = scmp.eq.s32.totalorder %s3465_s29, 0 }
   0x8   : > { %p3839_p2 = pnand %p3467_p0, %p424_p1 }
   0xa   : > { %p3666_p4 = pneg %p3839_p2 }
   0xc   : > { %s437_s18 = sshll.u32 %s5009_s30, 4  ;;  %p3667_p5 = pnand %p3670_p3, %p3666_p4  ;;  %s438_s18 = int_to_ptr.vmem [resolvable:$true] %s437_s18 }
   0xd   : > { %s3696_s19 = scalar_lea.vmem %s438_s18, 16  ;;  %p3704_p10 = scmp.lt.s32.totalorder %s438_s18, %s438_s18 }
   0xe   : > { %p3697_p6 = scmp.ne.s32.totalorder %s438_s18, %s3696_s19  ;;  %p3698_p7 = pneg %p3667_p5 }
   0xf   : > { %p3705_p11 = scmp.lt.s32.totalorder %s3696_s19, %s3696_s19 }
  0x10   : > { %p3699_p8 = pnand %p3698_p7, %p3697_p6 }
  0x11   : > { %p3706_p12 = por %p3705_p11, %p3704_p10 }
  0x12   : > { %p3700_p9 = pneg %p3699_p8 }
  0x14   : > { %p3707_p13 = pnand %p3706_p12, %p3700_p9 }
  0x16   : > { %3710 = shalt.err (!%p3707_p13)
}
  0x17   : > { %s3723_s1 = smov [#allocation4]   ;;  %503 = sbr.rel (%p3839_p2) target bundleno = 1725 (0x6bd), region = 88 }
  0x18   : > { %3669 = dma.vmem_to_smem (!%p3667_p5), %s438_s18, 16, %s3723_s1, [#allocation5]  }
  0x1e   : > { %3716 = dma.done.wait (%p3670_p3), [#allocation5], 16  }
  0x1f   : > { %3718 = vsyncadd (%p3670_p3), [#allocation5], 4294967280 }
  0x20   : > { %509 = sfence }
  0x21   : > { %p554_p0 = scmp.lt.s32.totalorder %s3465_s29, 1  ;;  %s5011_s23 = sld [smem:[#allocation7_spill]]  ;;  %vm566_vm0 = vcmask 1040384   ;;  %vm585_vm1 = vcmask 7168   ;;  %vm589_vm2 = vcmask 138240   ;;  %vm635_vm3 = vcmask 1046528  }
  0x22   : > { %s3724_s25 = smov 1   ;;  %s3474_s26 = sld [smem:[#allocation4 + $0x1]]  ;;  %vm695_vm4 = vcmask 1045504   ;;  %vm1037_vm5 = vcmask 261120   ;;  %vm1438_vm6 = vcmask 254976   ;;  %vm1955_vm7 = vcmask 1041409  }
  0x23   : > { %s5015_s29 = smov (!%p554_p0, %s3465_s29), 1  ;;  %s3859_s27 = sld [smem:[#allocation4 + $0x2]]  ;;  %vm1957_vm8 = vcmask 1042434   ;;  %vm1959_vm9 = vcmask 1043459   ;;  %vm1961_vm10 = vcmask 1044484   ;;  %vm1963_vm11 = vcmask 1045509  }
  0x24   : > { %s3500_s20 = sshll.u32 %s5015_s29, 4  ;;  %s3477_s2 = sld [smem:[#allocation4 + $0x4]]  ;;  %vm1965_vm12 = vcmask 1046534   ;;  %vm1967_vm13 = vcmask 1047559   ;;  %vm2733_vm14 = vcmask 523264   ;;  %vm2834_vm15 = vcmask 517120  }
  0x25   : > { %s3478_s0 = sld [smem:[#allocation4 + $0x5]]  ;;  %s3476_s30 = sld [smem:[#allocation4 + $0x3]] }
  0x26   : > { %s3480_s18 = sld [smem:[#allocation4 + $0x7]]  ;;  %s3481_s16 = sld [smem:[#allocation4 + $0x8]] }
  0x27   : > { %s558_s24 = scalar_lea.vmem %s5011_s23, %s3500_s20  ;;  %s3479_s19 = sld [smem:[#allocation4 + $0x6]] }
  0x28   : > { %v562_v1 = vld [vmem:[%s558_s24] sm:$0xff]  ;;  %v563_v2 = vld [vmem:[%s558_s24 + $0x8] sm:$0xff]  ;;  %v600_v10 = vstv %s3474_s26  ;;  %s3725_s1 = smov 127   ;;  %s3726_s20 = smov 126  }
  0x29   : > { %v567_v3 = vrot.slane %v562_v1, 7  ;;  %v568_v4 = vrot.slane %v563_v2, 7  ;;  %v614_v11 = vstv %s3859_s27  ;;  %s593_s21 = sld [smem:[#allocation4]]  ;;  %s3914_s22 = sld [smem:[#allocation2]] }
  0x2a   : > { %v646_v15 = vstv %s3477_s2  ;;  %s561_s23 = scalar_lea.vmem %s5004_s17, %s5015_s29 }
  0x2b   : > { %v572_v5 = vsel %vm566_vm0, 0.0, %v567_v3  ;;  %v573_v6 = vsel %vm566_vm0, %v568_v4, 0.0  ;;  %v569_v7 = vsel %vm566_vm0, %v567_v3, %v568_v4  ;;  %v667_v22 = vstv %s3478_s0 }
  0x2c   : > { %576 = vrot.lane.b32.xlu0 %v572_v5, %s3724_s25  ;;  %580 = vrot.lane.b32.xlu1 %v573_v6, %s3724_s25  ;;  %v628_v29 = vstv %s3476_s30  ;;  %v706_v32 = vstv %s3480_s18 }
  0x2d   : > { %v727_v35 = vstv %s3481_s16  ;;  %v688_v36 = vstv %s3479_s19 }
  0x30   : > { %578 = vrot.lane.b32.xlu0 %v569_v7, %s3724_s25 }
  0x9e   : > { %v577_v8 = vpop.permute.xlu0 %576  ;;  %v581_v9 = vpop.permute.xlu1 %580 }
  0x9f   : > { %v586_v12 = vsel %vm585_vm1, 0.0, %v577_v8  ;;  %v588_v14 = vsel %vm585_vm1, 0.0, %v581_v9 }
  0xa0   : > { %v3864_v13 = vsel %vm589_vm2, %v586_v12, 0.0  ;;  %v592_v19 = vsel %vm589_vm2, %v588_v14, 0.0  ;;  %v594_v14 = vstv %s593_s21 }
  0xa1   : > { %v601_v16 = vmul.f32 %v600_v10, %v3864_v13  ;;  %v615_v17 = vmul.f32 %v614_v11, %v3864_v13  ;;  %v647_v21 = vmul.f32 %v646_v15, %v3864_v13  ;;  %v668_v27 = vmul.f32 %v667_v22, %v3864_v13 }
  0xa2   : > { %v579_v18 = vpop.permute.xlu0 %578  ;;  %v649_v28 = vmul.f32 %v646_v15, %v592_v19  ;;  %v670_v33 = vmul.f32 %v667_v22, %v592_v19  ;;  %v629_v40 = vmul.f32 %v628_v29, %v3864_v13  ;;  %v707_v43 = vmul.f32 %v706_v32, %v3864_v13 }
  0xa3   : > { %v587_v20 = vsel %vm585_vm1, 0.0, %v579_v18  ;;  %605 = vrot.lane.b32.xlu1 %v601_v16, %s3725_s1  ;;  %619 = vrot.lane.b32.xlu0 %v615_v17, %s3726_s20  ;;  %v653_v30 = vrot.slane %v647_v21, 1  ;;  %v674_v41 = vrot.slane %v668_v27, 1  ;;  %v730_v44 = vmul.f32 %v727_v35, %v592_v19 }
  0xa4   : > { %v3875_v23 = vsel %vm589_vm2, %v587_v20, 0.0  ;;  %v656_v42 = vrot.slane %v649_v28, 1  ;;  %v677_v45 = vrot.slane %v670_v33, 1  ;;  %v631_v47 = vmul.f32 %v628_v29, %v592_v19 }
  0xa5   : > { %v602_v24 = vmul.f32 %v600_v10, %v3875_v23  ;;  %v648_v25 = vmul.f32 %v646_v15, %v3875_v23  ;;  %v669_v26 = vmul.f32 %v667_v22, %v3875_v23  ;;  %v708_v34 = vmul.f32 %v706_v32, %v3875_v23 }
  0xa6   : > { %v616_v38 = vmul.f32 %v614_v11, %v3875_v23  ;;  %v630_v46 = vmul.f32 %v628_v29, %v3875_v23  ;;  %v689_v48 = vmul.f32 %v688_v36, %v3864_v13  ;;  %v729_v50 = vmul.f32 %v727_v35, %v3875_v23 }
  0xa7   : > { %607 = vrot.lane.b32.xlu0 %v602_v24, %s3725_s1  ;;  %v654_v31 = vrot.slane %v648_v25, 1  ;;  %v675_v39 = vrot.slane %v669_v26, 1  ;;  %v714_v49 = vrot.slane %v708_v34, 2  ;;  %v690_v51 = vmul.f32 %v688_v36, %v3875_v23 }
  0xa8   : > { %v691_v52 = vmul.f32 %v688_v36, %v592_v19  ;;  %v636_v54 = vrot.slane %v629_v40, 1  ;;  %v637_v55 = vrot.slane %v630_v46, 1  ;;  %v639_v56 = vrot.slane %v631_v47, 1 }
  0xa9   : > { %v655_v37 = vsel %vm635_vm3, %v653_v30, %v654_v31  ;;  %v676_v53 = vsel %vm635_vm3, %v674_v41, %v675_v39  ;;  %v657_v57 = vsel %vm635_vm3, %v654_v31, %v656_v42  ;;  %v696_v58 = vrot.slane %v689_v48, 2 }
  0xaa   : > { %658 = vrot.lane.b32.xlu1 %v655_v37, %s3725_s1  ;;  %v697_v59 = vrot.slane %v690_v51, 2  ;;  %v699_v60 = vrot.slane %v691_v52, 2  ;;  %v713_v61 = vrot.slane %v707_v43, 2  ;;  %v728_v62 = vmul.f32 %v727_v35, %v3864_v13 }
  0xab   : > { %621 = vrot.lane.b32.xlu0 %v616_v38, %s3726_s20  ;;  %v638_v63 = vsel %vm635_vm3, %v636_v54, %v637_v55  ;;  %v640_v0 = vsel %vm635_vm3, %v637_v55, %v639_v56  ;;  %v735_v4 = vrot.slane %v729_v50, 2  ;;  %v709_v5 = vmul.f32 %v706_v32, %v592_v19 }
  0xac   : > { %v698_v1 = vsel %vm695_vm4, %v696_v58, %v697_v59  ;;  %v700_v2 = vsel %vm695_vm4, %v697_v59, %v699_v60  ;;  %v715_v3 = vsel %vm695_vm4, %v713_v61, %v714_v49  ;;  %v678_v6 = vsel %vm635_vm3, %v675_v39, %v677_v45 }
  0xad   : > { %v737_v7 = vrot.slane %v730_v44, 2  ;;  %v734_v8 = vrot.slane %v728_v62, 2  ;;  %v716_v10 = vrot.slane %v709_v5, 2  ;;  %v595_v15 = vmul.f32 %v594_v14, %v3864_v13 }
  0xae   : > { %679 = vrot.lane.b32.xlu1 %v676_v53, %s3726_s20  ;;  %v596_v21 = vmul.f32 %v594_v14, %v3875_v23  ;;  %v751_v32 = vlaneseq  ;;  %v748_v39 = vstv %s3914_s22  ;;  %vm2991_vm1 = vcmask 1044480  }
  0xaf   : > { %660 = vrot.lane.b32.xlu0 %v657_v57, %s3725_s1  ;;  %v736_v9 = vsel %vm695_vm4, %v734_v8, %v735_v4  ;;  %v738_v11 = vsel %vm695_vm4, %v735_v4, %v737_v7  ;;  %v717_v12 = vsel %vm695_vm4, %v714_v49, %v716_v10  ;;  %vm3388_vm2 = vcmask 516096  }
  0xb0   : > { %v3916_v37 = vshrl.u32 %v751_v32, 7 }
  0xb2   : > { %718 = vrot.lane.b32.xlu1 %v715_v3, %s3725_s1  ;;  %v3920_v43 = vsub.s32 1, %v3916_v37  ;;  %v3923_v44 = vsub.s32 0, %v3916_v37  ;;  %v786_v48 = vsub.s32 3, %v3916_v37  ;;  %v3929_v49 = vsub.s32 2, %v3916_v37 }
  0xb3   : > { %681 = vrot.lane.b32.xlu0 %v678_v6, %s3726_s20  ;;  %v808_v52 = vsub.s32 5, %v3916_v37  ;;  %v797_v53 = vsub.s32 4, %v3916_v37  ;;  %v830_v58 = vsub.s32 7, %v3916_v37  ;;  %v819_v59 = vsub.s32 6, %v3916_v37 }
  0xb6   : > { %739 = vrot.lane.b32.xlu1 %v736_v9, %s3726_s20  ;;  %v3727_v9 = vmov 1983009808  }
  0xb7   : > { %741 = vrot.lane.b32.xlu0 %v738_v11, %s3726_s20  ;;  %v1104_v10 = vunpack.c.l.s4 %v3727_v9  ;;  %v3942_v11 = vld [vmem:[%s4990_s3] ss:$0 sm:$0xff] }
  0xba   : > { %720 = vrot.lane.b32.xlu1 %v717_v12, %s3725_s1  ;;  %v3947_v12 = vld [vmem:[%s4991_s4] ss:$0 sm:$0xff] }
 0x115   : > { %v606_v16 = vpop.permute.xlu1 %605  ;;  %v620_v17 = vpop.permute.xlu0 %619 }
 0x116   : > { %v611_v18 = vadd.f32 %v606_v16, %v595_v15 }
 0x118   : > { %v625_v19 = vadd.f32 %v620_v17, %v611_v18  ;;  %v1105_v18 = vunpack.c.0.s8 %v1104_v10 }
 0x119   : > { %v608_v20 = vpop.permute.xlu0 %607 }
 0x11a   : > { %v643_v22 = vadd.f32 %v638_v63, %v625_v19  ;;  %v612_v24 = vadd.f32 %v608_v20, %v596_v21 }
 0x11c   : > { %v659_v25 = vpop.permute.xlu1 %658 }
 0x11d   : > { %v622_v26 = vpop.permute.xlu0 %621  ;;  %v664_v28 = vadd.f32 %v659_v25, %v643_v22 }
 0x11e   : > { %v626_v27 = vadd.f32 %v622_v26, %v612_v24 }
 0x120   : > { %v680_v29 = vpop.permute.xlu1 %679  ;;  %v644_v30 = vadd.f32 %v640_v0, %v626_v27 }
 0x121   : > { %v685_v31 = vadd.f32 %v680_v29, %v664_v28  ;;  %v661_v13 = vpop.permute.xlu0 %660  ;;  %v3956_v28 = vsub.s32 %v1105_v18, %v3916_v37 }
 0x122   : > { %v665_v34 = vadd.f32 %v661_v13, %v644_v30 }
 0x123   : > { %v703_v33 = vadd.f32 %v698_v1, %v685_v31 }
 0x124   : > { %v719_v35 = vpop.permute.xlu1 %718 }
 0x125   : > { %v682_v36 = vpop.permute.xlu0 %681  ;;  %v724_v38 = vadd.f32 %v719_v35, %v703_v33 }
 0x126   : > { %v686_v23 = vadd.f32 %v682_v36, %v665_v34 }
 0x128   : > { %v740_v40 = vpop.permute.xlu1 %739  ;;  %v704_v41 = vadd.f32 %v700_v2, %v686_v23 }
 0x129   : > { %v745_v42 = vadd.f32 %v740_v40, %v724_v38  ;;  %v742_v60 = vpop.permute.xlu0 %741 }
 0x12b   : > { %v749_v45 = vadd.f32 %v748_v39, %v745_v42 }
 0x12c   : > { %v721_v56 = vpop.permute.xlu1 %720 }
 0x12d   : > { %v765_v46 = vrot.slane %v749_v45, %v3920_v43  ;;  %v754_v47 = vrot.slane %v749_v45, %v3923_v44  ;;  %v787_v50 = vrot.slane %v749_v45, %v786_v48  ;;  %v776_v51 = vrot.slane %v749_v45, %v3929_v49 }
 0x12e   : > { %v809_v54 = vrot.slane %v749_v45, %v808_v52  ;;  %v798_v55 = vrot.slane %v749_v45, %v797_v53  ;;  %v725_v57 = vadd.f32 %v721_v56, %v704_v41  ;;  %v831_v62 = vrot.slane %v749_v45, %v830_v58 }
 0x12f   : > { %767 = vbcast.lane.b32.xlu0 %v765_v46, 256  ;;  %756 = vbcast.lane.b32.xlu1 %v754_v47, 256  ;;  %v820_v63 = vrot.slane %v749_v45, %v819_v59 }
 0x130   : > { %v746_v61 = vadd.f32 %v742_v60, %v725_v57 }
 0x132   : > { %v750_v0 = vadd.f32 %v748_v39, %v746_v61 }
 0x133   : > { %789 = vbcast.lane.b32.xlu0 %v787_v50, 256  ;;  %778 = vbcast.lane.b32.xlu1 %v776_v51, 256 }
 0x134   : > { %v853_v1 = vrot.slane %v750_v0, %v3920_v43  ;;  %v842_v2 = vrot.slane %v750_v0, %v3923_v44  ;;  %v875_v3 = vrot.slane %v750_v0, %v786_v48  ;;  %v864_v4 = vrot.slane %v750_v0, %v3929_v49 }
 0x135   : > { %v897_v5 = vrot.slane %v750_v0, %v808_v52  ;;  %v886_v6 = vrot.slane %v750_v0, %v797_v53  ;;  %v919_v7 = vrot.slane %v750_v0, %v830_v58  ;;  %v908_v8 = vrot.slane %v750_v0, %v819_v59 }
 0x137   : > { %771 = vbcast.lane.b32.xlu0 %v765_v46, 264  ;;  %760 = vbcast.lane.b32.xlu1 %v754_v47, 264 }
 0x13b   : > { %811 = vbcast.lane.b32.xlu0 %v809_v54, 256  ;;  %800 = vbcast.lane.b32.xlu1 %v798_v55, 256 }
 0x13f   : > { %793 = vbcast.lane.b32.xlu0 %v787_v50, 264  ;;  %782 = vbcast.lane.b32.xlu1 %v776_v51, 264 }
 0x143   : > { %833 = vbcast.lane.b32.xlu0 %v831_v62, 256  ;;  %822 = vbcast.lane.b32.xlu1 %v820_v63, 256 }
 0x147   : > { %815 = vbcast.lane.b32.xlu0 %v809_v54, 264  ;;  %804 = vbcast.lane.b32.xlu1 %v798_v55, 264 }
 0x14b   : > { %855 = vbcast.lane.b32.xlu0 %v853_v1, 256  ;;  %844 = vbcast.lane.b32.xlu1 %v842_v2, 256 }
 0x14f   : > { %837 = vbcast.lane.b32.xlu0 %v831_v62, 264  ;;  %826 = vbcast.lane.b32.xlu1 %v820_v63, 264 }
 0x153   : > { %859 = vbcast.lane.b32.xlu0 %v853_v1, 264  ;;  %848 = vbcast.lane.b32.xlu1 %v842_v2, 264 }
 0x157   : > { %877 = vbcast.lane.b32.xlu0 %v875_v3, 256  ;;  %866 = vbcast.lane.b32.xlu1 %v864_v4, 256 }
 0x15b   : > { %899 = vbcast.lane.b32.xlu0 %v897_v5, 256  ;;  %888 = vbcast.lane.b32.xlu1 %v886_v6, 256 }
 0x15f   : > { %881 = vbcast.lane.b32.xlu0 %v875_v3, 264  ;;  %870 = vbcast.lane.b32.xlu1 %v864_v4, 264 }
 0x163   : > { %903 = vbcast.lane.b32.xlu0 %v897_v5, 264  ;;  %892 = vbcast.lane.b32.xlu1 %v886_v6, 264 }
 0x167   : > { %921 = vbcast.lane.b32.xlu0 %v919_v7, 256  ;;  %910 = vbcast.lane.b32.xlu1 %v908_v8, 256 }
 0x16b   : > { %925 = vbcast.lane.b32.xlu0 %v919_v7, 264  ;;  %914 = vbcast.lane.b32.xlu1 %v908_v8, 264 }
 0x1a1   : > { %v757_v14 = vpop.permute.xlu1 %756  ;;  %v768_v15 = vpop.permute.xlu0 %767 }
 0x1a2   : > { %v934_v16 = vmul.f32 %v3942_v11, %v757_v14  ;;  %v936_v17 = vmul.f32 %v3942_v11, %v768_v15 }
 0x1a4   : > { %v973_v19 = vadd.f32 %v3947_v12, %v934_v16  ;;  %v975_v20 = vadd.f32 %v3947_v12, %v936_v17 }
 0x1a5   : > { %v779_v21 = vpop.permute.xlu1 %778  ;;  %v790_v22 = vpop.permute.xlu0 %789 }
 0x1a6   : > { %v1005_v24 = vmax.f32 %v973_v19, 0.0  ;;  %v1007_v25 = vmax.f32 %v975_v20, 0.0  ;;  %v938_v26 = vmul.f32 %v3942_v11, %v779_v21  ;;  %v940_v27 = vmul.f32 %v3942_v11, %v790_v22 }
 0x1a8   : > { %v1038_v29 = vsel %vm1037_vm5, %v1005_v24, -inf  ;;  %v1039_v30 = vsel %vm1037_vm5, %v1007_v25, -inf  ;;  %v977_v31 = vadd.f32 %v3947_v12, %v938_v26  ;;  %v979_v13 = vadd.f32 %v3947_v12, %v940_v27 }
 0x1a9   : > { %v1040_v32 = vmax.f32 %v1038_v29, %v1039_v30  ;;  %v761_v33 = vpop.permute.xlu1 %760  ;;  %v772_v34 = vpop.permute.xlu0 %771 }
 0x1aa   : > { %v1009_v35 = vmax.f32 %v977_v31, 0.0  ;;  %v1011_v36 = vmax.f32 %v979_v13, 0.0  ;;  %v935_v23 = vmul.f32 %v3942_v11, %v761_v33  ;;  %v937_v38 = vmul.f32 %v3942_v11, %v772_v34 }
 0x1ab   : > { %v1102_v37 = vcombine.high %v1040_v32, %v1040_v32  ;;  %v1109_v39 = vrot.slane %v1040_v32, %v3956_v28 }
 0x1ac   : > { %v1044_v40 = vsel %vm1037_vm5, %v1009_v35, -inf  ;;  %v1045_v41 = vsel %vm1037_vm5, %v1011_v36, -inf  ;;  %v974_v42 = vadd.f32 %v3947_v12, %v935_v23  ;;  %v976_v45 = vadd.f32 %v3947_v12, %v937_v38 }
 0x1ad   : > { %v1116_v46 = vrot.slane %v1102_v37, %v3956_v28  ;;  %v1117_v47 = vcombine.high %v1109_v39, %v1109_v39  ;;  %v1439_v48 = vsel %vm1438_vm6, %v1109_v39, -inf  ;;  %v1046_v50 = vmax.f32 %v1044_v40, %v1045_v41  ;;  %v801_v30 = vpop.permute.xlu1 %800 }
 0x1ae   : > { %v1440_v51 = vrot.slane %v1439_v48, 4  ;;  %v1006_v52 = vmax.f32 %v974_v42, 0.0  ;;  %v1008_v0 = vmax.f32 %v976_v45, 0.0  ;;  %v942_v40 = vmul.f32 %v3942_v11, %v801_v30 }
 0x1af   : > { %v1118_v53 = vcombine.high %v1116_v46, %v1116_v46  ;;  %v1446_v54 = vsel %vm1438_vm6, %v1117_v47, -inf  ;;  %v1453_v55 = vsel %vm1438_vm6, %v1116_v46, -inf  ;;  %v1136_v56 = vcombine.high %v1046_v50, %v1046_v50 }
 0x1b0   : > { %v1441_v57 = vmax.f32 %v1439_v48, %v1440_v51  ;;  %v1447_v58 = vrot.slane %v1446_v54, 4  ;;  %v1454_v59 = vrot.slane %v1453_v55, 4  ;;  %v1143_v60 = vrot.slane %v1046_v50, %v3956_v28 }
 0x1b1   : > { %v1460_v61 = vsel %vm1438_vm6, %v1118_v53, -inf  ;;  %v1150_v62 = vrot.slane %v1136_v56, %v3956_v28  ;;  %v1041_v63 = vsel %vm1037_vm5, %v1006_v52, -inf  ;;  %v1042_v24 = vsel %vm1037_vm5, %v1008_v0, -inf }
 0x1b2   : > { %v1442_v1 = vrot.slane %v1441_v57, 2  ;;  %v1448_v2 = vmax.f32 %v1446_v54, %v1447_v58  ;;  %v1455_v3 = vmax.f32 %v1453_v55, %v1454_v59  ;;  %v1461_v4 = vrot.slane %v1460_v61, 4 }
 0x1b3   : > { %v1151_v5 = vcombine.high %v1143_v60, %v1143_v60  ;;  %v1152_v6 = vcombine.high %v1150_v62, %v1150_v62  ;;  %v1495_v7 = vsel %vm1438_vm6, %v1143_v60, -inf  ;;  %v1509_v8 = vsel %vm1438_vm6, %v1150_v62, -inf  ;;  %v812_v60 = vpop.permute.xlu0 %811 }
 0x1b4   : > { %v1443_v9 = vmax.f32 %v1441_v57, %v1442_v1  ;;  %v1449_v10 = vrot.slane %v1448_v2, 2  ;;  %v1456_v14 = vrot.slane %v1455_v3, 2  ;;  %v1462_v15 = vmax.f32 %v1460_v61, %v1461_v4  ;;  %v783_v1 = vpop.permute.xlu1 %782 }
 0x1b5   : > { %v1496_v16 = vrot.slane %v1495_v7, 4  ;;  %v1502_v17 = vsel %vm1438_vm6, %v1151_v5, -inf  ;;  %v1510_v18 = vrot.slane %v1509_v8, 4  ;;  %v1516_v19 = vsel %vm1438_vm6, %v1152_v6, -inf }
 0x1b6   : > { %v1450_v20 = vmax.f32 %v1448_v2, %v1449_v10  ;;  %v1457_v21 = vmax.f32 %v1455_v3, %v1456_v14  ;;  %v1463_v22 = vrot.slane %v1462_v15, 2  ;;  %v1503_v26 = vrot.slane %v1502_v17, 4 }
 0x1b7   : > { %v1497_v25 = vmax.f32 %v1495_v7, %v1496_v16  ;;  %v1511_v27 = vmax.f32 %v1509_v8, %v1510_v18  ;;  %v1517_v29 = vrot.slane %v1516_v19, 4  ;;  %v1444_v31 = vrot.slane %v1443_v9, 1 }
 0x1b8   : > { %v1451_v13 = vrot.slane %v1450_v20, 1  ;;  %v1458_v32 = vrot.slane %v1457_v21, 1  ;;  %v1464_v33 = vmax.f32 %v1462_v15, %v1463_v22  ;;  %v1504_v35 = vmax.f32 %v1502_v17, %v1503_v26  ;;  %v794_v26 = vpop.permute.xlu0 %793 }
 0x1b9   : > { %v1498_v34 = vrot.slane %v1497_v25, 2  ;;  %v1512_v36 = vrot.slane %v1511_v27, 2  ;;  %v1518_v23 = vmax.f32 %v1516_v19, %v1517_v29  ;;  %v1043_v39 = vmax.f32 %v1041_v63, %v1042_v24 }
 0x1ba   : > { %v1452_v38 = vmax.f32 %v1450_v20, %v1451_v13  ;;  %v1465_v37 = vrot.slane %v1464_v33, 1  ;;  %v1505_v42 = vrot.slane %v1504_v35, 2  ;;  %v1445_v47 = vmax.f32 %v1443_v9, %v1444_v31  ;;  %v823_v13 = vpop.permute.xlu1 %822 }
 0x1bb   : > { %v1499_v41 = vmax.f32 %v1497_v25, %v1498_v34  ;;  %v1513_v45 = vmax.f32 %v1511_v27, %v1512_v36  ;;  %v1519_v46 = vrot.slane %v1518_v23, 2  ;;  %v1459_v48 = vmax.f32 %v1457_v21, %v1458_v32 }
 0x1bc   : > { %v1119_v50 = vcombine.high %v1043_v39, %v1043_v39  ;;  %v1126_v51 = vrot.slane %v1043_v39, %v3956_v28  ;;  %v3984_v52 = vmax.f32 %v1464_v33, %v1465_v37  ;;  %v1506_v54 = vmax.f32 %v1504_v35, %v1505_v42 }
 0x1bd   : > { %v1500_v53 = vrot.slane %v1499_v41, 1  ;;  %v1514_v55 = vrot.slane %v1513_v45, 1  ;;  %v1956_v56 = vsel %vm1955_vm7, %v1452_v38, %v1445_v47  ;;  %v1520_v57 = vmax.f32 %v1518_v23, %v1519_v46 }
 0x1be   : > { %v1133_v58 = vrot.slane %v1119_v50, %v3956_v28  ;;  %v1134_v59 = vcombine.high %v1126_v51, %v1126_v51  ;;  %v1507_v62 = vrot.slane %v1506_v54, 1  ;;  %v1467_v0 = vsel %vm1438_vm6, %v1126_v51, -inf }
 0x1bf   : > { %v1501_v61 = vmax.f32 %v1499_v41, %v1500_v53  ;;  %v1515_v63 = vmax.f32 %v1513_v45, %v1514_v55  ;;  %v1521_v2 = vrot.slane %v1520_v57, 1  ;;  %v1468_v4 = vrot.slane %v1467_v0, 4 }
 0x1c0   : > { %v1135_v3 = vcombine.high %v1133_v58, %v1133_v58  ;;  %v1474_v5 = vsel %vm1438_vm6, %v1134_v59, -inf  ;;  %v1508_v6 = vmax.f32 %v1506_v54, %v1507_v62  ;;  %v1481_v8 = vsel %vm1438_vm6, %v1133_v58, -inf  ;;  %v834_v59 = vpop.permute.xlu0 %833 }
 0x1c1   : > { %v1475_v7 = vrot.slane %v1474_v5, 4  ;;  %v981_v9 = vadd.f32 %v3947_v12, %v942_v40  ;;  %v1958_v10 = vsel %vm1957_vm8, %v1459_v48, %v1956_v56  ;;  %v1469_v14 = vmax.f32 %v1467_v0, %v1468_v4  ;;  %v805_v4 = vpop.permute.xlu1 %804 }
 0x1c2   : > { %v1482_v15 = vrot.slane %v1481_v8, 4  ;;  %v1488_v16 = vsel %vm1438_vm6, %v1135_v3, -inf  ;;  %v1969_v17 = vsel %vm1955_vm7, %v1508_v6, %v1501_v61  ;;  %v1522_v21 = vmax.f32 %v1520_v57, %v1521_v2 }
 0x1c3   : > { %v1476_v18 = vmax.f32 %v1474_v5, %v1475_v7  ;;  %v1489_v19 = vrot.slane %v1488_v16, 4  ;;  %v1013_v20 = vmax.f32 %v981_v9, 0.0  ;;  %v1470_v22 = vrot.slane %v1469_v14, 2 }
 0x1c4   : > { %v1483_v24 = vmax.f32 %v1481_v8, %v1482_v15  ;;  %v944_v25 = vmul.f32 %v3942_v11, %v812_v60  ;;  %v1970_v27 = vsel %vm1957_vm8, %v1515_v63, %v1969_v17  ;;  %v939_v31 = vmul.f32 %v3942_v11, %v783_v1 }
 0x1c5   : > { %v1477_v29 = vrot.slane %v1476_v18, 2  ;;  %v1490_v30 = vmax.f32 %v1488_v16, %v1489_v19  ;;  %v1471_v32 = vmax.f32 %v1469_v14, %v1470_v22  ;;  %v1050_v34 = vsel %vm1037_vm5, %v1013_v20, -inf }
 0x1c6   : > { %v1484_v33 = vrot.slane %v1483_v24, 2  ;;  %v983_v35 = vadd.f32 %v3947_v12, %v944_v25  ;;  %v978_v38 = vadd.f32 %v3947_v12, %v939_v31  ;;  %v941_v37 = vmul.f32 %v3942_v11, %v794_v26 }
 0x1c7   : > { %v1478_v36 = vmax.f32 %v1476_v18, %v1477_v29  ;;  %v1491_v23 = vrot.slane %v1490_v30, 2  ;;  %v1472_v39 = vrot.slane %v1471_v32, 1  ;;  %v946_v42 = vmul.f32 %v3942_v11, %v823_v13 }
 0x1c8   : > { %v1485_v40 = vmax.f32 %v1483_v24, %v1484_v33  ;;  %v1015_v41 = vmax.f32 %v983_v35, 0.0  ;;  %v1010_v47 = vmax.f32 %v978_v38, 0.0  ;;  %v980_v48 = vadd.f32 %v3947_v12, %v941_v37 }
 0x1c9   : > { %v1479_v45 = vrot.slane %v1478_v36, 1  ;;  %v1492_v46 = vmax.f32 %v1490_v30, %v1491_v23  ;;  %v1473_v50 = vmax.f32 %v1471_v32, %v1472_v39  ;;  %v985_v54 = vadd.f32 %v3947_v12, %v946_v42 }
 0x1ca   : > { %v1486_v51 = vrot.slane %v1485_v40, 1  ;;  %v1051_v53 = vsel %vm1037_vm5, %v1015_v41, -inf  ;;  %v1960_v55 = vsel %vm1959_vm9, %v3984_v52, %v1958_v10  ;;  %v1047_v61 = vsel %vm1037_vm5, %v1010_v47, -inf }
 0x1cb   : > { %v1480_v56 = vmax.f32 %v1478_v36, %v1479_v45  ;;  %v1493_v57 = vrot.slane %v1492_v46, 1  ;;  %v1052_v58 = vmax.f32 %v1050_v34, %v1051_v53  ;;  %v1962_v60 = vsel %vm1961_vm10, %v1473_v50, %v1960_v55 }
 0x1cc   : > { %v1012_v62 = vmax.f32 %v980_v48, 0.0  ;;  %v1017_v63 = vmax.f32 %v985_v54, 0.0  ;;  %v4010_v0 = vmax.f32 %v1485_v40, %v1486_v51  ;;  %v4014_v3 = vsel %vm1959_vm9, %v1522_v21, %v1970_v27 }
 0x1cd   : > { %v1170_v1 = vcombine.high %v1052_v58, %v1052_v58  ;;  %v1177_v2 = vrot.slane %v1052_v58, %v3956_v28  ;;  %v4016_v52 = vmax.f32 %v1492_v46, %v1493_v57  ;;  %v4019_v5 = vsel %vm1963_vm11, %v1480_v56, %v1962_v60 }
 0x1ce   : > { %v1048_v6 = vsel %vm1037_vm5, %v1012_v62, -inf  ;;  %v948_v7 = vmul.f32 %v3942_v11, %v834_v59  ;;  %v1056_v16 = vsel %vm1037_vm5, %v1017_v63, -inf  ;;  %v943_v18 = vmul.f32 %v3942_v11, %v805_v4 }
 0x1cf   : > { %v1184_v8 = vrot.slane %v1170_v1, %v3956_v28  ;;  %v1185_v9 = vcombine.high %v1177_v2, %v1177_v2  ;;  %v1551_v10 = vsel %vm1438_vm6, %v1177_v2, -inf  ;;  %v1049_v14 = vmax.f32 %v1047_v61, %v1048_v6  ;;  %v816_v6 = vpop.permute.xlu0 %815 }
 0x1d0   : > { %v1552_v15 = vrot.slane %v1551_v10, 4  ;;  %v987_v17 = vadd.f32 %v3947_v12, %v948_v7  ;;  %v982_v13 = vadd.f32 %v3947_v12, %v943_v18 }
 0x1d1   : > { %v1186_v19 = vcombine.high %v1184_v8, %v1184_v8  ;;  %v1558_v20 = vsel %vm1438_vm6, %v1185_v9, -inf  ;;  %v1565_v21 = vsel %vm1438_vm6, %v1184_v8, -inf  ;;  %v1153_v22 = vcombine.high %v1049_v14, %v1049_v14 }
 0x1d2   : > { %v1553_v24 = vmax.f32 %v1551_v10, %v1552_v15  ;;  %v1559_v25 = vrot.slane %v1558_v20, 4  ;;  %v1566_v26 = vrot.slane %v1565_v21, 4  ;;  %v1160_v27 = vrot.slane %v1049_v14, %v3956_v28 }
 0x1d3   : > { %v1572_v29 = vsel %vm1438_vm6, %v1186_v19, -inf  ;;  %v1167_v30 = vrot.slane %v1153_v22, %v3956_v28  ;;  %v1019_v31 = vmax.f32 %v987_v17, 0.0  ;;  %v945_v22 = vmul.f32 %v3942_v11, %v816_v6 }
 0x1d4   : > { %v1554_v32 = vrot.slane %v1553_v24, 2  ;;  %v1560_v33 = vmax.f32 %v1558_v20, %v1559_v25  ;;  %v1567_v34 = vmax.f32 %v1565_v21, %v1566_v26  ;;  %v1573_v35 = vrot.slane %v1572_v29, 4 }
 0x1d5   : > { %v1168_v36 = vcombine.high %v1160_v27, %v1160_v27  ;;  %v1169_v23 = vcombine.high %v1167_v30, %v1167_v30  ;;  %v1523_v38 = vsel %vm1438_vm6, %v1160_v27, -inf  ;;  %v1537_v37 = vsel %vm1438_vm6, %v1167_v30, -inf }
 0x1d6   : > { %v1555_v39 = vmax.f32 %v1553_v24, %v1554_v32  ;;  %v1561_v40 = vrot.slane %v1560_v33, 2  ;;  %v1568_v41 = vrot.slane %v1567_v34, 2  ;;  %v1574_v42 = vmax.f32 %v1572_v29, %v1573_v35  ;;  %v845_v29 = vpop.permute.xlu1 %844 }
 0x1d7   : > { %v1524_v45 = vrot.slane %v1523_v38, 4  ;;  %v1530_v46 = vsel %vm1438_vm6, %v1168_v36, -inf  ;;  %v1538_v47 = vrot.slane %v1537_v37, 4  ;;  %v1544_v48 = vsel %vm1438_vm6, %v1169_v23, -inf }
 0x1d8   : > { %v1556_v50 = vrot.slane %v1555_v39, 1  ;;  %v1562_v51 = vmax.f32 %v1560_v33, %v1561_v40  ;;  %v1569_v53 = vmax.f32 %v1567_v34, %v1568_v41  ;;  %v1575_v54 = vrot.slane %v1574_v42, 2 }
 0x1d9   : > { %v1525_v55 = vmax.f32 %v1523_v38, %v1524_v45  ;;  %v1531_v56 = vrot.slane %v1530_v46, 4  ;;  %v1539_v57 = vmax.f32 %v1537_v37, %v1538_v47  ;;  %v1545_v58 = vrot.slane %v1544_v48, 4 }
 0x1da   : > { %v1557_v59 = vmax.f32 %v1555_v39, %v1556_v50  ;;  %v1563_v60 = vrot.slane %v1562_v51, 1  ;;  %v1570_v61 = vrot.slane %v1569_v53, 1  ;;  %v1576_v62 = vmax.f32 %v1574_v42, %v1575_v54  ;;  %v827_v54 = vpop.permute.xlu1 %826 }
 0x1db   : > { %v1526_v63 = vrot.slane %v1525_v55, 2  ;;  %v1532_v1 = vmax.f32 %v1530_v46, %v1531_v56  ;;  %v1540_v2 = vrot.slane %v1539_v57, 2  ;;  %v1546_v4 = vmax.f32 %v1544_v48, %v1545_v58 }
 0x1dc   : > { %v1564_v7 = vmax.f32 %v1562_v51, %v1563_v60  ;;  %v1571_v8 = vmax.f32 %v1569_v53, %v1570_v61  ;;  %v1577_v9 = vrot.slane %v1576_v62, 1  ;;  %v1057_v10 = vsel %vm1037_vm5, %v1019_v31, -inf  ;;  %v856_v53 = vpop.permute.xlu0 %855 }
 0x1dd   : > { %v1527_v14 = vmax.f32 %v1525_v55, %v1526_v63  ;;  %v1533_v15 = vrot.slane %v1532_v1, 2  ;;  %v1541_v17 = vmax.f32 %v1539_v57, %v1540_v2  ;;  %v1547_v18 = vrot.slane %v1546_v4, 2 }
 0x1de   : > { %v1976_v19 = vsel %vm1955_vm7, %v1564_v7, %v1557_v59  ;;  %v1058_v20 = vmax.f32 %v1056_v16, %v1057_v10  ;;  %v1014_v21 = vmax.f32 %v982_v13, 0.0  ;;  %v1578_v24 = vmax.f32 %v1576_v62, %v1577_v9 }
 0x1df   : > { %v1528_v25 = vrot.slane %v1527_v14, 1  ;;  %v1534_v26 = vmax.f32 %v1532_v1, %v1533_v15  ;;  %v1542_v27 = vrot.slane %v1541_v17, 1  ;;  %v1977_v30 = vsel %vm1957_vm8, %v1571_v8, %v1976_v19 }
 0x1e0   : > { %v1548_v32 = vmax.f32 %v1546_v4, %v1547_v18  ;;  %v1204_v33 = vcombine.high %v1058_v20, %v1058_v20  ;;  %v1211_v31 = vrot.slane %v1058_v20, %v3956_v28  ;;  %v4046_v34 = vsel %vm1965_vm12, %v4010_v0, %v4019_v5 }
 0x1e1   : > { %v1529_v16 = vmax.f32 %v1527_v14, %v1528_v25  ;;  %v1535_v13 = vrot.slane %v1534_v26, 1  ;;  %v1053_v35 = vsel %vm1037_vm5, %v1014_v21, -inf  ;;  %v4051_v39 = vmax.f32 %v1541_v17, %v1542_v27 }
 0x1e2   : > { %v1549_v36 = vrot.slane %v1548_v32, 1  ;;  %v1218_v23 = vrot.slane %v1204_v33, %v3956_v28  ;;  %v1219_v38 = vcombine.high %v1211_v31, %v1211_v31  ;;  %v1607_v37 = vsel %vm1438_vm6, %v1211_v31, -inf }
 0x1e3   : > { %v1608_v40 = vrot.slane %v1607_v37, 4  ;;  %v4054_v41 = vsel %vm1959_vm9, %v1578_v24, %v1977_v30  ;;  %v984_v42 = vadd.f32 %v3947_v12, %v945_v22  ;;  %v1536_v0 = vmax.f32 %v1534_v26, %v1535_v13 }
 0x1e4   : > { %v1220_v5 = vcombine.high %v1218_v23, %v1218_v23  ;;  %v1614_v45 = vsel %vm1438_vm6, %v1219_v38, -inf  ;;  %v1621_v46 = vsel %vm1438_vm6, %v1218_v23, -inf  ;;  %v1972_v47 = vsel %vm1961_vm10, %v1529_v16, %v4014_v3 }
 0x1e5   : > { %v1609_v48 = vmax.f32 %v1607_v37, %v1608_v40  ;;  %v1615_v50 = vrot.slane %v1614_v45, 4  ;;  %v1622_v51 = vrot.slane %v1621_v46, 4  ;;  %v4061_v55 = vmax.f32 %v1548_v32, %v1549_v36 }
 0x1e6   : > { %v1628_v56 = vsel %vm1438_vm6, %v1220_v5, -inf  ;;  %v1016_v57 = vmax.f32 %v984_v42, 0.0  ;;  %v950_v58 = vmul.f32 %v3942_v11, %v845_v29  ;;  %v952_v1 = vmul.f32 %v3942_v11, %v856_v53 }
 0x1e7   : > { %v1610_v59 = vrot.slane %v1609_v48, 2  ;;  %v1616_v60 = vmax.f32 %v1614_v45, %v1615_v50  ;;  %v1623_v61 = vmax.f32 %v1621_v46, %v1622_v51  ;;  %v1629_v62 = vrot.slane %v1628_v56, 4 }
 0x1e8   : > { %v1054_v63 = vsel %vm1037_vm5, %v1016_v57, -inf  ;;  %v989_v3 = vadd.f32 %v3947_v12, %v950_v58  ;;  %v947_v2 = vmul.f32 %v3942_v11, %v827_v54  ;;  %v991_v14 = vadd.f32 %v3947_v12, %v952_v1 }
 0x1e9   : > { %v1611_v4 = vmax.f32 %v1609_v48, %v1610_v59  ;;  %v1617_v6 = vrot.slane %v1616_v60, 2  ;;  %v1624_v7 = vrot.slane %v1623_v61, 2  ;;  %v1630_v8 = vmax.f32 %v1628_v56, %v1629_v62  ;;  %v838_v56 = vpop.permute.xlu0 %837 }
 0x1ea   : > { %v1055_v9 = vmax.f32 %v1053_v35, %v1054_v63  ;;  %v1021_v10 = vmax.f32 %v989_v3, 0.0  ;;  %v4071_v15 = vadd.f32 %v3947_v12, %v947_v2  ;;  %v1023_v25 = vmax.f32 %v991_v14, 0.0 }
 0x1eb   : > { %v1612_v17 = vrot.slane %v1611_v4, 1  ;;  %v1618_v18 = vmax.f32 %v1616_v60, %v1617_v6  ;;  %v1625_v19 = vmax.f32 %v1623_v61, %v1624_v7  ;;  %v1631_v20 = vrot.slane %v1630_v8, 2 }
 0x1ec   : > { %v1187_v21 = vcombine.high %v1055_v9, %v1055_v9  ;;  %v1194_v22 = vrot.slane %v1055_v9, %v3956_v28  ;;  %v1062_v24 = vsel %vm1037_vm5, %v1021_v10, -inf  ;;  %v1063_v16 = vsel %vm1037_vm5, %v1023_v25, -inf }
 0x1ed   : > { %v1613_v26 = vmax.f32 %v1611_v4, %v1612_v17  ;;  %v1619_v27 = vrot.slane %v1618_v18, 1  ;;  %v1626_v29 = vrot.slane %v1625_v19, 1  ;;  %v1632_v30 = vmax.f32 %v1630_v8, %v1631_v20  ;;  %v849_v4 = vpop.permute.xlu1 %848 }
 0x1ee   : > { %v1201_v32 = vrot.slane %v1187_v21, %v3956_v28  ;;  %v1202_v33 = vcombine.high %v1194_v22, %v1194_v22  ;;  %v1579_v31 = vsel %vm1438_vm6, %v1194_v22, -inf  ;;  %v1064_v42 = vmax.f32 %v1062_v24, %v1063_v16  ;;  %v860_v22 = vpop.permute.xlu0 %859 }
 0x1ef   : > { %v1620_v13 = vmax.f32 %v1618_v18, %v1619_v27  ;;  %v1627_v35 = vmax.f32 %v1625_v19, %v1626_v29  ;;  %v1633_v36 = vrot.slane %v1632_v30, 1  ;;  %v1580_v23 = vrot.slane %v1579_v31, 4 }
 0x1f0   : > { %v1203_v38 = vcombine.high %v1201_v32, %v1201_v32  ;;  %v1586_v37 = vsel %vm1438_vm6, %v1202_v33, -inf  ;;  %v1593_v40 = vsel %vm1438_vm6, %v1201_v32, -inf  ;;  %v1973_v5 = vsel %vm1963_vm11, %v1536_v0, %v1972_v47 }
 0x1f1   : > { %v1983_v45 = vsel %vm1955_vm7, %v1620_v13, %v1613_v26  ;;  %v1581_v46 = vmax.f32 %v1579_v31, %v1580_v23  ;;  %v1587_v48 = vrot.slane %v1586_v37, 4  ;;  %v1634_v50 = vmax.f32 %v1632_v30, %v1633_v36  ;;  %v867_v36 = vpop.permute.xlu1 %866 }
 0x1f2   : > { %v1594_v51 = vrot.slane %v1593_v40, 4  ;;  %v1600_v53 = vsel %vm1438_vm6, %v1203_v38, -inf  ;;  %v1238_v54 = vcombine.high %v1064_v42, %v1064_v42  ;;  %v1245_v60 = vrot.slane %v1064_v42, %v3956_v28 }
 0x1f3   : > { %v1582_v57 = vrot.slane %v1581_v46, 2  ;;  %v1588_v58 = vmax.f32 %v1586_v37, %v1587_v48  ;;  %v1601_v59 = vrot.slane %v1600_v53, 4  ;;  %v1984_v61 = vsel %vm1957_vm8, %v1627_v35, %v1983_v45 }
 0x1f4   : > { %v1595_v62 = vmax.f32 %v1593_v40, %v1594_v51  ;;  %v1252_v0 = vrot.slane %v1238_v54, %v3956_v28  ;;  %v1018_v47 = vmax.f32 %v4071_v15, 0.0  ;;  %v1253_v2 = vcombine.high %v1245_v60, %v1245_v60 }
 0x1f5   : > { %v1583_v63 = vmax.f32 %v1581_v46, %v1582_v57  ;;  %v1589_v3 = vrot.slane %v1588_v58, 2  ;;  %v1602_v1 = vmax.f32 %v1600_v53, %v1601_v59  ;;  %v1663_v8 = vsel %vm1438_vm6, %v1245_v60, -inf }
 0x1f6   : > { %v1596_v6 = vrot.slane %v1595_v62, 2  ;;  %v1254_v7 = vcombine.high %v1252_v0, %v1252_v0  ;;  %v1677_v9 = vsel %vm1438_vm6, %v1252_v0, -inf  ;;  %v1664_v18 = vrot.slane %v1663_v8, 4 }
 0x1f7   : > { %v1584_v10 = vrot.slane %v1583_v63, 1  ;;  %v1590_v14 = vmax.f32 %v1588_v58, %v1589_v3  ;;  %v1603_v17 = vrot.slane %v1602_v1, 2  ;;  %v1670_v20 = vsel %vm1438_vm6, %v1253_v2, -inf }
 0x1f8   : > { %v1597_v19 = vmax.f32 %v1595_v62, %v1596_v6  ;;  %v1678_v15 = vrot.slane %v1677_v9, 4  ;;  %v1684_v21 = vsel %vm1438_vm6, %v1254_v7, -inf  ;;  %v1665_v27 = vmax.f32 %v1663_v8, %v1664_v18 }
 0x1f9   : > { %v1585_v24 = vmax.f32 %v1583_v63, %v1584_v10  ;;  %v1591_v25 = vrot.slane %v1590_v14, 1  ;;  %v1604_v26 = vmax.f32 %v1602_v1, %v1603_v17  ;;  %v1671_v30 = vrot.slane %v1670_v20, 4 }
 0x1fa   : > { %v1598_v29 = vrot.slane %v1597_v19, 1  ;;  %v1679_v32 = vmax.f32 %v1677_v9, %v1678_v15  ;;  %v1685_v33 = vrot.slane %v1684_v21, 4  ;;  %v1666_v35 = vrot.slane %v1665_v27, 2 }
 0x1fb   : > { %v1592_v31 = vmax.f32 %v1590_v14, %v1591_v25  ;;  %v1605_v16 = vrot.slane %v1604_v26, 1  ;;  %v1979_v13 = vsel %vm1961_vm10, %v1585_v24, %v4054_v41  ;;  %v1672_v38 = vmax.f32 %v1670_v20, %v1671_v30  ;;  %v878_v41 = vpop.permute.xlu0 %877 }
 0x1fc   : > { %v1599_v23 = vmax.f32 %v1597_v19, %v1598_v29  ;;  %v1680_v37 = vrot.slane %v1679_v32, 2  ;;  %v1686_v40 = vmax.f32 %v1684_v21, %v1685_v33  ;;  %v4095_v42 = vsel %vm1965_vm12, %v4051_v39, %v1973_v5 }
 0x1fd   : > { %v1606_v45 = vmax.f32 %v1604_v26, %v1605_v16  ;;  %v1980_v46 = vsel %vm1963_vm11, %v1592_v31, %v1979_v13  ;;  %v1667_v48 = vmax.f32 %v1665_v27, %v1666_v35  ;;  %v1673_v53 = vrot.slane %v1672_v38, 2 }
 0x1fe   : > { %v1981_v51 = vsel %vm1965_vm12, %v1599_v23, %v1980_v46  ;;  %v1681_v54 = vmax.f32 %v1679_v32, %v1680_v37  ;;  %v1687_v57 = vrot.slane %v1686_v40, 2  ;;  %v4100_v59 = vsel %vm1959_vm9, %v1634_v50, %v1984_v61  ;;  %v889_v50 = vpop.permute.xlu1 %888 }
 0x1ff   : > { %v1668_v58 = vrot.slane %v1667_v48, 1  ;;  %v949_v60 = vmul.f32 %v3942_v11, %v838_v56  ;;  %v951_v62 = vmul.f32 %v3942_v11, %v849_v4  ;;  %v1674_v39 = vmax.f32 %v1672_v38, %v1673_v53  ;;  %v900_v20 = vpop.permute.xlu0 %899 }
 0x200   : > { %v1682_v5 = vrot.slane %v1681_v54, 1  ;;  %v1688_v0 = vmax.f32 %v1686_v40, %v1687_v57  ;;  %v1059_v63 = vsel %vm1037_vm5, %v1018_v47, -inf  ;;  %v4106_v3 = vsel %vm1967_vm13, %v1606_v45, %v1981_v51 }
 0x201   : > { %v988_v1 = vadd.f32 %v3947_v12, %v949_v60  ;;  %v990_v2 = vadd.f32 %v3947_v12, %v951_v62  ;;  %v953_v6 = vmul.f32 %v3942_v11, %v860_v22  ;;  %v1669_v61 = vmax.f32 %v1667_v48, %v1668_v58 }
 0x202   : > { %v1675_v7 = vrot.slane %v1674_v39, 1  ;;  %v1683_v56 = vmax.f32 %v1681_v54, %v1682_v5  ;;  %v1689_v8 = vrot.slane %v1688_v0, 1  ;;  %v954_v47 = vmul.f32 %v3942_v11, %v867_v36 }
 0x203   : > { %v1020_v4 = vmax.f32 %v988_v1, 0.0  ;;  %v1022_v9 = vmax.f32 %v990_v2, 0.0  ;;  %v992_v10 = vadd.f32 %v3947_v12, %v953_v6  ;;  %v956_v18 = vmul.f32 %v3942_v11, %v878_v41 }
 0x204   : > { %v1676_v14 = vmax.f32 %v1674_v39, %v1675_v7  ;;  %v1690_v17 = vmax.f32 %v1688_v0, %v1689_v8  ;;  %v958_v19 = vmul.f32 %v3942_v11, %v889_v50  ;;  %v993_v24 = vadd.f32 %v3947_v12, %v954_v47 }
 0x205   : > { %v1060_v15 = vsel %vm1037_vm5, %v1020_v4, -inf  ;;  %v1065_v21 = vsel %vm1037_vm5, %v1022_v9, -inf  ;;  %v1024_v22 = vmax.f32 %v992_v10, 0.0  ;;  %v995_v27 = vadd.f32 %v3947_v12, %v956_v18 }
 0x206   : > { %v1990_v25 = vsel %vm1955_vm7, %v1676_v14, %v1669_v61  ;;  %v1061_v26 = vmax.f32 %v1059_v63, %v1060_v15  ;;  %v4121_v29 = vadd.f32 %v3947_v12, %v958_v19  ;;  %v1025_v33 = vmax.f32 %v993_v24, 0.0 }
 0x207   : > { %v1991_v30 = vsel %vm1957_vm8, %v1683_v56, %v1990_v25  ;;  %v1066_v32 = vsel %vm1037_vm5, %v1024_v22, -inf  ;;  %v960_v31 = vmul.f32 %v3942_v11, %v900_v20  ;;  %v2022_v16 = vrot.slane %v4106_v3, 7 }
 0x208   : > { %v1221_v13 = vcombine.high %v1061_v26, %v1061_v26  ;;  %v1228_v35 = vrot.slane %v1061_v26, %v3956_v28  ;;  %v1067_v36 = vmax.f32 %v1065_v21, %v1066_v32  ;;  %v4129_v23 = vsel %vm1959_vm9, %v1690_v17, %v1991_v30 }
 0x209   : > { %v4132_v38 = vsel %vm1037_vm5, %v1025_v33, -inf  ;;  %v1027_v37 = vmax.f32 %v995_v27, 0.0  ;;  %v1029_v40 = vmax.f32 %v4121_v29, 0.0  ;;  %v4140_v57 = vadd.f32 %v3947_v12, %v960_v31 }
 0x20a   : > { %v1235_v45 = vrot.slane %v1221_v13, %v3956_v28  ;;  %v1236_v46 = vcombine.high %v1228_v35, %v1228_v35  ;;  %v1635_v11 = vsel %vm1438_vm6, %v1228_v35, -inf  ;;  %v1255_v48 = vcombine.high %v1067_v36, %v1067_v36 }
 0x20b   : > { %v1636_v51 = vrot.slane %v1635_v11, 4  ;;  %v1262_v53 = vrot.slane %v1067_v36, %v3956_v28  ;;  %v1069_v54 = vsel %vm1037_vm5, %v1027_v37, -inf }
 0x20c   : > { %v1237_v41 = vcombine.high %v1235_v45, %v1235_v45  ;;  %v1642_v58 = vsel %vm1438_vm6, %v1236_v46, -inf  ;;  %v1649_v60 = vsel %vm1438_vm6, %v1235_v45, -inf  ;;  %v1269_v62 = vrot.slane %v1255_v48, %v3956_v28 }
 0x20d   : > { %v1637_v39 = vmax.f32 %v1635_v11, %v1636_v51  ;;  %v1643_v5 = vrot.slane %v1642_v58, 4  ;;  %v1650_v0 = vrot.slane %v1649_v60, 4  ;;  %v1270_v63 = vcombine.high %v1262_v53, %v1262_v53 }
 0x20e   : > { %v1656_v1 = vsel %vm1438_vm6, %v1237_v41, -inf  ;;  %v1271_v2 = vcombine.high %v1269_v62, %v1269_v62  ;;  %v1691_v6 = vsel %vm1438_vm6, %v1262_v53, -inf  ;;  %v1705_v50 = vsel %vm1438_vm6, %v1269_v62, -inf }
 0x20f   : > { %v1638_v12 = vrot.slane %v1637_v39, 2  ;;  %v1644_v61 = vmax.f32 %v1642_v58, %v1643_v5  ;;  %v1651_v7 = vmax.f32 %v1649_v60, %v1650_v0  ;;  %v1657_v56 = vrot.slane %v1656_v1, 4 }
 0x210   : > { %v1692_v8 = vrot.slane %v1691_v6, 4  ;;  %v1698_v4 = vsel %vm1438_vm6, %v1270_v63, -inf  ;;  %v1706_v9 = vrot.slane %v1705_v50, 4  ;;  %v1712_v10 = vsel %vm1438_vm6, %v1271_v2, -inf }
 0x211   : > { %v1639_v47 = vmax.f32 %v1637_v39, %v1638_v12  ;;  %v1645_v14 = vrot.slane %v1644_v61, 2  ;;  %v1652_v17 = vrot.slane %v1651_v7, 2  ;;  %v1658_v18 = vmax.f32 %v1656_v1, %v1657_v56 }
 0x212   : > { %v1693_v19 = vmax.f32 %v1691_v6, %v1692_v8  ;;  %v1699_v20 = vrot.slane %v1698_v4, 4  ;;  %v1707_v15 = vmax.f32 %v1705_v50, %v1706_v9  ;;  %v1713_v21 = vrot.slane %v1712_v10, 4 }
 0x213   : > { %v1640_v22 = vrot.slane %v1639_v47, 1  ;;  %v1646_v24 = vmax.f32 %v1644_v61, %v1645_v14  ;;  %v1653_v25 = vmax.f32 %v1651_v7, %v1652_v17  ;;  %v1659_v26 = vrot.slane %v1658_v18, 2 }
 0x214   : > { %v1694_v27 = vrot.slane %v1693_v19, 2  ;;  %v1700_v30 = vmax.f32 %v1698_v4, %v1699_v20  ;;  %v1708_v32 = vrot.slane %v1707_v15, 2  ;;  %v1714_v33 = vmax.f32 %v1712_v10, %v1713_v21 }
 0x215   : > { %v1641_v31 = vmax.f32 %v1639_v47, %v1640_v22  ;;  %v1647_v13 = vrot.slane %v1646_v24, 1  ;;  %v1654_v35 = vrot.slane %v1653_v25, 1  ;;  %v1660_v36 = vmax.f32 %v1658_v18, %v1659_v26 }
 0x216   : > { %v1695_v37 = vmax.f32 %v1693_v19, %v1694_v27  ;;  %v1701_v45 = vrot.slane %v1700_v30, 2  ;;  %v1709_v46 = vmax.f32 %v1707_v15, %v1708_v32  ;;  %v1715_v11 = vrot.slane %v1714_v33, 2 }
 0x217   : > { %v1648_v48 = vmax.f32 %v1646_v24, %v1647_v13  ;;  %v1655_v51 = vmax.f32 %v1653_v25, %v1654_v35  ;;  %v1661_v53 = vrot.slane %v1660_v36, 1  ;;  %v1986_v41 = vsel %vm1961_vm10, %v1641_v31, %v4100_v59  ;;  %v871_v35 = vpop.permute.xlu1 %870 }
 0x218   : > { %v1696_v58 = vrot.slane %v1695_v37, 1  ;;  %v1702_v60 = vmax.f32 %v1700_v30, %v1701_v45  ;;  %v1710_v62 = vrot.slane %v1709_v46, 1  ;;  %v1716_v39 = vmax.f32 %v1714_v33, %v1715_v11  ;;  %v882_v11 = vpop.permute.xlu0 %881 }
 0x219   : > { %v1987_v5 = vsel %vm1963_vm11, %v1648_v48, %v1986_v41  ;;  %v1070_v0 = vmax.f32 %v4132_v38, %v1069_v54  ;;  %v1074_v63 = vsel %vm1037_vm5, %v1029_v40, -inf  ;;  %v1031_v1 = vmax.f32 %v4140_v57, 0.0 }
 0x21a   : > { %v1662_v2 = vmax.f32 %v1660_v36, %v1661_v53  ;;  %v1988_v6 = vsel %vm1965_vm12, %v1655_v51, %v1987_v5  ;;  %v1697_v50 = vmax.f32 %v1695_v37, %v1696_v58  ;;  %v1703_v12 = vrot.slane %v1702_v60, 1 }
 0x21b   : > { %v1711_v59 = vmax.f32 %v1709_v46, %v1710_v62  ;;  %v1717_v61 = vrot.slane %v1716_v39, 1  ;;  %v1272_v7 = vcombine.high %v1070_v0, %v1070_v0  ;;  %v1279_v56 = vrot.slane %v1070_v0, %v3956_v28 }
 0x21c   : > { %v4163_v38 = vsel %vm566_vm0, 0.0, %v2022_v16  ;;  %v1704_v29 = vmax.f32 %v1702_v60, %v1703_v12  ;;  %v1993_v40 = vsel %vm1961_vm10, %v1697_v50, %v4129_v23  ;;  %v1075_v54 = vsel %vm1037_vm5, %v1031_v1, -inf }
 0x21d   : > { %v1718_v57 = vmax.f32 %v1716_v39, %v1717_v61  ;;  %v1286_v8 = vrot.slane %v1272_v7, %v3956_v28  ;;  %v1287_v4 = vcombine.high %v1279_v56, %v1279_v56  ;;  %v1719_v9 = vsel %vm1438_vm6, %v1279_v56, -inf }
 0x21e   : > { %v4171_v10 = vsel %vm1967_vm13, %v1662_v2, %v1988_v6  ;;  %v1994_v47 = vsel %vm1963_vm11, %v1704_v29, %v1993_v40  ;;  %v1720_v14 = vrot.slane %v1719_v9, 4  ;;  %v1076_v17 = vmax.f32 %v1074_v63, %v1075_v54  ;;  %v893_v29 = vpop.permute.xlu1 %892 }
 0x21f   : > { %v1995_v18 = vsel %vm1965_vm12, %v1711_v59, %v1994_v47  ;;  %v1288_v19 = vcombine.high %v1286_v8, %v1286_v8  ;;  %v1726_v23 = vsel %vm1438_vm6, %v1287_v4, -inf  ;;  %v1733_v20 = vsel %vm1438_vm6, %v1286_v8, -inf  ;;  %v904_v4 = vpop.permute.xlu0 %903 }
 0x220   : > { %v4178_v15 = vsel %vm1967_vm13, %v1718_v57, %v1995_v18  ;;  %v1721_v21 = vmax.f32 %v1719_v9, %v1720_v14  ;;  %v1727_v22 = vrot.slane %v1726_v23, 4  ;;  %v1734_v24 = vrot.slane %v1733_v20, 4 }
 0x221   : > { %v2023_v25 = vrot.slane %v4171_v10, 7  ;;  %v1740_v26 = vsel %vm1438_vm6, %v1288_v19, -inf  ;;  %v1306_v27 = vcombine.high %v1076_v17, %v1076_v17  ;;  %v1313_v30 = vrot.slane %v1076_v17, %v3956_v28  ;;  %v4192_v17 = vld [vmem:[%s4990_s3] ss:$0 sm:$0xff] }
 0x222   : > { %v1722_v32 = vrot.slane %v1721_v21, 2  ;;  %v1728_v33 = vmax.f32 %v1726_v23, %v1727_v22  ;;  %v1735_v31 = vmax.f32 %v1733_v20, %v1734_v24  ;;  %v1741_v13 = vrot.slane %v1740_v26, 4 }
 0x223   : > { %v2024_v36 = vrot.slane %v4178_v15, 7  ;;  %v1320_v37 = vrot.slane %v1306_v27, %v3956_v28  ;;  %v1321_v45 = vcombine.high %v1313_v30, %v1313_v30  ;;  %v1775_v46 = vsel %vm1438_vm6, %v1313_v30, -inf }
 0x224   : > { %v1723_v48 = vmax.f32 %v1721_v21, %v1722_v32  ;;  %v1729_v51 = vrot.slane %v1728_v33, 2  ;;  %v1736_v53 = vrot.slane %v1735_v31, 2  ;;  %v1742_v41 = vmax.f32 %v1740_v26, %v1741_v13  ;;  %v4204_v26 = vld [vmem:[%s4991_s4] ss:$0 sm:$0xff] }
 0x225   : > { %v1322_v58 = vcombine.high %v1320_v37, %v1320_v37  ;;  %v1776_v60 = vrot.slane %v1775_v46, 4  ;;  %v1782_v62 = vsel %vm1438_vm6, %v1321_v45, -inf  ;;  %v1789_v39 = vsel %vm1438_vm6, %v1320_v37, -inf }
 0x226   : > { %v1724_v5 = vrot.slane %v1723_v48, 1  ;;  %v1730_v0 = vmax.f32 %v1728_v33, %v1729_v51  ;;  %v1737_v63 = vmax.f32 %v1735_v31, %v1736_v53  ;;  %v1743_v1 = vrot.slane %v1742_v41, 2 }
 0x227   : > { %v1777_v2 = vmax.f32 %v1775_v46, %v1776_v60  ;;  %v1783_v6 = vrot.slane %v1782_v62, 4  ;;  %v1790_v50 = vrot.slane %v1789_v39, 4  ;;  %v1796_v12 = vsel %vm1438_vm6, %v1322_v58, -inf  ;;  %v922_v58 = vpop.permute.xlu0 %921 }
 0x228   : > { %v1725_v59 = vmax.f32 %v1723_v48, %v1724_v5  ;;  %v1731_v61 = vrot.slane %v1730_v0, 1  ;;  %v1738_v7 = vrot.slane %v1737_v63, 1  ;;  %v1744_v56 = vmax.f32 %v1742_v41, %v1743_v1  ;;  %v911_v48 = vpop.permute.xlu1 %910 }
 0x229   : > { %v1778_v40 = vrot.slane %v1777_v2, 2  ;;  %v1784_v54 = vmax.f32 %v1782_v62, %v1783_v6  ;;  %v1791_v57 = vmax.f32 %v1789_v39, %v1790_v50  ;;  %v1797_v8 = vrot.slane %v1796_v12, 4 }
 0x22a   : > { %v1732_v9 = vmax.f32 %v1730_v0, %v1731_v61  ;;  %v1739_v47 = vmax.f32 %v1737_v63, %v1738_v7  ;;  %v1745_v14 = vrot.slane %v1744_v56, 1  ;;  %v955_v18 = vmul.f32 %v4192_v17, %v871_v35 }
 0x22b   : > { %v1779_v19 = vmax.f32 %v1777_v2, %v1778_v40  ;;  %v1785_v23 = vrot.slane %v1784_v54, 2  ;;  %v1792_v20 = vrot.slane %v1791_v57, 2  ;;  %v1798_v21 = vmax.f32 %v1796_v12, %v1797_v8  ;;  %v2585_v40 = vld [vmem:[%s4994_s7] sm:$0xff] }
 0x22c   : > { %v4198_v22 = vsel %vm566_vm0, 0.0, %v2023_v25  ;;  %v1997_v24 = vsel %vm1955_vm7, %v1732_v9, %v1725_v59  ;;  %v994_v27 = vadd.f32 %v4204_v26, %v955_v18  ;;  %v957_v30 = vmul.f32 %v4192_v17, %v882_v11 }
 0x22d   : > { %v4211_v32 = vsel %vm566_vm0, 0.0, %v2024_v36  ;;  %v1780_v33 = vrot.slane %v1779_v19, 1  ;;  %v1786_v31 = vmax.f32 %v1784_v54, %v1785_v23  ;;  %v1793_v13 = vmax.f32 %v1791_v57, %v1792_v20  ;;  %v2586_v54 = vld [vmem:[%s4994_s7 + $0x8] sm:$0xff] }
 0x22e   : > { %v1746_v35 = vmax.f32 %v1744_v56, %v1745_v14  ;;  %v1799_v37 = vrot.slane %v1798_v21, 2  ;;  %v1026_v45 = vmax.f32 %v994_v27, 0.0  ;;  %v996_v46 = vadd.f32 %v4204_v26, %v957_v30 }
 0x22f   : > { %v1998_v51 = vsel %vm1957_vm8, %v1739_v47, %v1997_v24  ;;  %v1787_v53 = vrot.slane %v1786_v31, 1  ;;  %v1794_v41 = vrot.slane %v1793_v13, 1  ;;  %v959_v11 = vmul.f32 %v4192_v17, %v893_v29 }
 0x230   : > { %v1800_v60 = vmax.f32 %v1798_v21, %v1799_v37  ;;  %v1071_v62 = vsel %vm1037_vm5, %v1026_v45, -inf  ;;  %v1028_v39 = vmax.f32 %v996_v46, 0.0  ;;  %v961_v5 = vmul.f32 %v4192_v17, %v904_v4  ;;  %v915_v46 = vpop.permute.xlu1 %914 }
 0x231   : > { %v1781_v0 = vmax.f32 %v1779_v19, %v1780_v33  ;;  %v1788_v63 = vmax.f32 %v1786_v31, %v1787_v53  ;;  %v998_v1 = vadd.f32 %v4204_v26, %v959_v11  ;;  %v962_v2 = vmul.f32 %v4192_v17, %v911_v48 }
 0x232   : > { %v1801_v6 = vrot.slane %v1800_v60, 1  ;;  %v1072_v50 = vsel %vm1037_vm5, %v1028_v39, -inf  ;;  %v1000_v12 = vadd.f32 %v4204_v26, %v961_v5  ;;  %v964_v59 = vmul.f32 %v4192_v17, %v922_v58 }
 0x233   : > { %v4224_v61 = vsel %vm1959_vm9, %v1746_v35, %v1998_v51  ;;  %v1073_v7 = vmax.f32 %v1071_v62, %v1072_v50  ;;  %v1030_v56 = vmax.f32 %v998_v1, 0.0  ;;  %v1001_v29 = vadd.f32 %v4204_v26, %v962_v2 }
 0x234   : > { %v1795_v57 = vmax.f32 %v1793_v13, %v1794_v41  ;;  %v2004_v8 = vsel %vm1955_vm7, %v1788_v63, %v1781_v0  ;;  %v1032_v4 = vmax.f32 %v1000_v12, 0.0  ;;  %v1003_v9 = vadd.f32 %v4204_v26, %v964_v59 }
 0x235   : > { %v1289_v47 = vcombine.high %v1073_v7, %v1073_v7  ;;  %v1296_v14 = vrot.slane %v1073_v7, %v3956_v28  ;;  %v1077_v18 = vsel %vm1037_vm5, %v1030_v56, -inf  ;;  %v1033_v19 = vmax.f32 %v1001_v29, 0.0 }
 0x236   : > { %v4237_v23 = vmax.f32 %v1800_v60, %v1801_v6  ;;  %v1078_v20 = vsel %vm1037_vm5, %v1032_v4, -inf  ;;  %v1035_v21 = vmax.f32 %v1003_v9, 0.0  ;;  %v3614_v24 = vpack.c.bf16 %v2586_v54, %v2585_v40 }
 0x237   : > { %v1303_v27 = vrot.slane %v1289_v47, %v3956_v28  ;;  %v1304_v30 = vcombine.high %v1296_v14, %v1296_v14  ;;  %v1747_v33 = vsel %vm1438_vm6, %v1296_v14, -inf  ;;  %v1079_v31 = vmax.f32 %v1077_v18, %v1078_v20 }
 0x238   : > { %v2005_v13 = vsel %vm1957_vm8, %v1795_v57, %v2004_v8  ;;  %v1748_v35 = vrot.slane %v1747_v33, 4  ;;  %v1080_v37 = vsel %vm1037_vm5, %v1033_v19, -inf  ;;  %v1081_v45 = vsel %vm1037_vm5, %v1035_v21, -inf  ;;  %3615 = vmatprep.subr.bf16.mxu1 %v3614_v24 }
 0x239   : > { %v1305_v48 = vcombine.high %v1303_v27, %v1303_v27  ;;  %v1754_v51 = vsel %vm1438_vm6, %v1304_v30, -inf  ;;  %v1761_v53 = vsel %vm1438_vm6, %v1303_v27, -inf  ;;  %v1323_v41 = vcombine.high %v1079_v31, %v1079_v31  ;;  %3617 = vmatpush3.bf16.msra.mxu1 %v3614_v24 }
 0x23a   : > { %v1749_v11 = vmax.f32 %v1747_v33, %v1748_v35  ;;  %v1755_v58 = vrot.slane %v1754_v51, 4  ;;  %v1762_v60 = vrot.slane %v1761_v53, 4  ;;  %v1330_v62 = vrot.slane %v1079_v31, %v3956_v28 }
 0x23b   : > { %v1768_v39 = vsel %vm1438_vm6, %v1305_v48, -inf  ;;  %v1337_v5 = vrot.slane %v1323_v41, %v3956_v28  ;;  %v1082_v0 = vmax.f32 %v1080_v37, %v1081_v45  ;;  %v963_v63 = vmul.f32 %v4192_v17, %v915_v46 }
 0x23c   : > { %v1750_v1 = vrot.slane %v1749_v11, 2  ;;  %v1756_v2 = vmax.f32 %v1754_v51, %v1755_v58  ;;  %v1763_v6 = vmax.f32 %v1761_v53, %v1762_v60  ;;  %v1769_v50 = vrot.slane %v1768_v39, 4 }
 0x23d   : > { %v1338_v12 = vcombine.high %v1330_v62, %v1330_v62  ;;  %v1339_v59 = vcombine.high %v1337_v5, %v1337_v5  ;;  %v1803_v7 = vsel %vm1438_vm6, %v1330_v62, -inf  ;;  %v1817_v56 = vsel %vm1438_vm6, %v1337_v5, -inf }
 0x23e   : > { %v1751_v29 = vmax.f32 %v1749_v11, %v1750_v1  ;;  %v1757_v40 = vrot.slane %v1756_v2, 2  ;;  %v1764_v54 = vrot.slane %v1763_v6, 2  ;;  %v1770_v57 = vmax.f32 %v1768_v39, %v1769_v50 }
 0x23f   : > { %v1804_v8 = vrot.slane %v1803_v7, 4  ;;  %v1810_v4 = vsel %vm1438_vm6, %v1338_v12, -inf  ;;  %v1818_v9 = vrot.slane %v1817_v56, 4  ;;  %v1824_v47 = vsel %vm1438_vm6, %v1339_v59, -inf }
 0x240   : > { %v1752_v14 = vrot.slane %v1751_v29, 1  ;;  %v1758_v18 = vmax.f32 %v1756_v2, %v1757_v40  ;;  %v1765_v19 = vmax.f32 %v1763_v6, %v1764_v54  ;;  %v1771_v20 = vrot.slane %v1770_v57, 2 }
 0x241   : > { %v1805_v21 = vmax.f32 %v1803_v7, %v1804_v8  ;;  %v1811_v24 = vrot.slane %v1810_v4, 4  ;;  %v1819_v27 = vmax.f32 %v1817_v56, %v1818_v9  ;;  %v1825_v30 = vrot.slane %v1824_v47, 4 }
 0x242   : > { %v1753_v33 = vmax.f32 %v1751_v29, %v1752_v14  ;;  %v1759_v31 = vrot.slane %v1758_v18, 1  ;;  %v1766_v35 = vrot.slane %v1765_v19, 1  ;;  %v1772_v37 = vmax.f32 %v1770_v57, %v1771_v20 }
 0x243   : > { %v1806_v45 = vrot.slane %v1805_v21, 2  ;;  %v1812_v46 = vmax.f32 %v1810_v4, %v1811_v24  ;;  %v1820_v48 = vrot.slane %v1819_v27, 2  ;;  %v1826_v51 = vmax.f32 %v1824_v47, %v1825_v30 }
 0x244   : > { %v1760_v53 = vmax.f32 %v1758_v18, %v1759_v31  ;;  %v1767_v41 = vmax.f32 %v1765_v19, %v1766_v35  ;;  %v1773_v11 = vrot.slane %v1772_v37, 1  ;;  %v2000_v58 = vsel %vm1961_vm10, %v1753_v33, %v4224_v61 }
 0x245   : > { %v1807_v60 = vmax.f32 %v1805_v21, %v1806_v45  ;;  %v1813_v62 = vrot.slane %v1812_v46, 2  ;;  %v1821_v39 = vmax.f32 %v1819_v27, %v1820_v48  ;;  %v1827_v5 = vrot.slane %v1826_v51, 2 }
 0x246   : > { %v2001_v1 = vsel %vm1963_vm11, %v1760_v53, %v2000_v58  ;;  %v2006_v2 = vsel %vm1959_vm9, %v4237_v23, %v2005_v13  ;;  %v1340_v6 = vcombine.high %v1082_v0, %v1082_v0  ;;  %v1347_v50 = vrot.slane %v1082_v0, %v3956_v28 }
 0x247   : > { %v1774_v12 = vmax.f32 %v1772_v37, %v1773_v11  ;;  %v1808_v59 = vrot.slane %v1807_v60, 1  ;;  %v1814_v7 = vmax.f32 %v1812_v46, %v1813_v62  ;;  %v1822_v56 = vrot.slane %v1821_v39, 1 }
 0x248   : > { %v2002_v29 = vsel %vm1965_vm12, %v1767_v41, %v2001_v1  ;;  %v1828_v40 = vmax.f32 %v1826_v51, %v1827_v5  ;;  %v1354_v61 = vrot.slane %v1340_v6, %v3956_v28  ;;  %v1355_v54 = vcombine.high %v1347_v50, %v1347_v50 }
 0x249   : > { %v1809_v57 = vmax.f32 %v1807_v60, %v1808_v59  ;;  %v1815_v8 = vrot.slane %v1814_v7, 1  ;;  %v1823_v4 = vmax.f32 %v1821_v39, %v1822_v56  ;;  %v1002_v9 = vadd.f32 %v4204_v26, %v963_v63 }
 0x24a   : > { %v1829_v47 = vrot.slane %v1828_v40, 1  ;;  %v1356_v23 = vcombine.high %v1354_v61, %v1354_v61  ;;  %v1831_v13 = vsel %vm1438_vm6, %v1347_v50, -inf  ;;  %v1838_v0 = vsel %vm1438_vm6, %v1355_v54, -inf }
 0x24b   : > { %v4267_v14 = vsel %vm1967_vm13, %v1774_v12, %v2002_v29  ;;  %v1816_v18 = vmax.f32 %v1814_v7, %v1815_v8  ;;  %v2007_v19 = vsel %vm1961_vm10, %v1809_v57, %v2006_v2  ;;  %v1832_v20 = vrot.slane %v1831_v13, 4 }
 0x24c   : > { %v1830_v21 = vmax.f32 %v1828_v40, %v1829_v47  ;;  %v1839_v24 = vrot.slane %v1838_v0, 4  ;;  %v1845_v27 = vsel %vm1438_vm6, %v1354_v61, -inf  ;;  %v1852_v30 = vsel %vm1438_vm6, %v1356_v23, -inf  ;;  %v1887_v61 = vld [vmem:[%s4992_s5] sm:$0x7] }
 0x24d   : > { %v2008_v63 = vsel %vm1963_vm11, %v1816_v18, %v2007_v19  ;;  %v1833_v33 = vmax.f32 %v1831_v13, %v1832_v20  ;;  %v1846_v31 = vrot.slane %v1845_v27, 4  ;;  %v1853_v35 = vrot.slane %v1852_v30, 4 }
 0x24e   : > { %v2025_v37 = vrot.slane %v4267_v14, 7  ;;  %v2009_v45 = vsel %vm1965_vm12, %v1823_v4, %v2008_v63  ;;  %v1840_v46 = vmax.f32 %v1838_v0, %v1839_v24  ;;  %v1968_v48 = vsel %vm1967_vm13, %v4016_v52, %v4046_v34  ;;  %v1888_v4 = vld [vmem:[%s4992_s5 + $0x4] sm:$0x7] }
 0x24f   : > { %v4279_v51 = vsel %vm1967_vm13, %v1830_v21, %v2009_v45  ;;  %v1834_v53 = vrot.slane %v1833_v33, 2  ;;  %v1847_v41 = vmax.f32 %v1845_v27, %v1846_v31  ;;  %v1854_v11 = vmax.f32 %v1852_v30, %v1853_v35 }
 0x250   : > { %v5006_v58 = vrot.slane %v4279_v51, 7  ;;  %v1841_v60 = vrot.slane %v1840_v46, 2  ;;  %v1034_v62 = vmax.f32 %v1002_v9, 0.0  ;;  %v1975_v39 = vsel %vm1967_vm13, %v4061_v55, %v4095_v42 }
 0x251   : > { %v1835_v5 = vmax.f32 %v1833_v33, %v1834_v53  ;;  %v1848_v1 = vrot.slane %v1847_v41, 2  ;;  %v1855_v2 = vrot.slane %v1854_v11, 2  ;;  %v4288_v52 = vsel %vm566_vm0, 0.0, %v2025_v37 }
 0x252   : > { %v1842_v34 = vmax.f32 %v1840_v46, %v1841_v60  ;;  %v5005_v6 = vmov 0.0   ;;  %v2020_v12 = vrot.slane %v1968_v48, 7  ;;  %v2021_v29 = vrot.slane %v1975_v39, 7  ;;  %v1889_v60 = vld [vmem:[%s4992_s5 + $0x8] sm:$0x7] }
 0x253   : > { %v2019_v50 = vrot.slane %v5005_v6, 7  ;;  %v1836_v59 = vrot.slane %v1835_v5, 1  ;;  %v1849_v7 = vmax.f32 %v1847_v41, %v1848_v1  ;;  %v1856_v56 = vmax.f32 %v1854_v11, %v1855_v2 }
 0x254   : > { %v4294_v55 = vsel %vm566_vm0, 0.0, %v5006_v58  ;;  %v1843_v42 = vrot.slane %v1842_v34, 1  ;;  %v4297_v40 = vsel %vm1037_vm5, %v1034_v62, -inf  ;;  %v4309_v9 = vsel %vm566_vm0, 0.0, %v2020_v12 }
 0x255   : > { %v4303_v54 = vsel %vm566_vm0, 0.0, %v2019_v50  ;;  %v1850_v57 = vrot.slane %v1849_v7, 1  ;;  %v1857_v8 = vrot.slane %v1856_v56, 1  ;;  %v4312_v47 = vsel %vm566_vm0, %v2019_v50, 0.0 }
 0x256   : > { %v1837_v23 = vmax.f32 %v1835_v5, %v1836_v59  ;;  %v1844_v13 = vmax.f32 %v1842_v34, %v1843_v42  ;;  %v2047_v0 = vsel %vm566_vm0, %v2020_v12, 0.0  ;;  %v4316_v18 = vrot.slane %v1887_v61, %v3923_v44 }
 0x257   : > { %v1851_v19 = vmax.f32 %v1849_v7, %v1850_v57  ;;  %v4319_v20 = vsel %vm566_vm0, 0.0, %v2021_v29  ;;  %v4322_v21 = vrot.slane %v1887_v61, %v3920_v43  ;;  %v4325_v24 = vrot.slane %v1887_v61, %v3929_v49 }
 0x258   : > { %v4327_v27 = vmax.f32 %v1856_v56, %v1857_v8  ;;  %v2011_v30 = vsel %vm1955_vm7, %v1844_v13, %v1837_v23  ;;  %v4331_v63 = vsel %vm566_vm0, %v2021_v29, 0.0  ;;  %v4334_v33 = vrot.slane %v1888_v4, %v3923_v44 }
 0x259   : > { %v2079_v31 = vmul.f32 %v4322_v21, %v4303_v54  ;;  %v2080_v35 = vmul.f32 %v4322_v21, %v4312_v47  ;;  %v4341_v45 = vmul.f32 %v4322_v21, %v2047_v0  ;;  %v4344_v46 = vrot.slane %v1888_v4, %v3920_v43 }
 0x25a   : > { %v4347_v48 = vsel %vm1957_vm8, %v1851_v19, %v2011_v30  ;;  %v2059_v53 = vmul.f32 %v4316_v18, %v4303_v54  ;;  %v2155_v41 = vmul.f32 %v4325_v24, %v4303_v54  ;;  %v2156_v11 = vmul.f32 %v4325_v24, %v4312_v47 }
 0x25b   : > { %v4360_v62 = vmul.f32 %v4322_v21, %v4331_v63  ;;  %v2111_v39 = vrot.slane %v2079_v31, 1  ;;  %v2112_v5 = vrot.slane %v2080_v35, 1  ;;  %v4363_v1 = vmul.f32 %v4325_v24, %v2047_v0 }
 0x25c   : > { %v2115_v2 = vrot.slane %v4341_v45, 1  ;;  %v2187_v34 = vrot.slane %v2155_v41, 2  ;;  %v2188_v50 = vrot.slane %v2156_v11, 2  ;;  %v2231_v12 = vmul.f32 %v4334_v33, %v4309_v9  ;;  %v926_v41 = vpop.permute.xlu0 %925 }
 0x25d   : > { %v2113_v59 = vsel %vm635_vm3, %v2111_v39, %v2112_v5  ;;  %v2251_v7 = vmul.f32 %v4344_v46, %v4309_v9  ;;  %v2252_v56 = vmul.f32 %v4344_v46, %v2047_v0  ;;  %v4373_v29 = vrot.slane %v1888_v4, %v3929_v49 }
 0x25e   : > { %v2143_v42 = vadd.f32 %v2113_v59, %v2059_v53  ;;  %v2189_v61 = vsel %vm695_vm4, %v2187_v34, %v2188_v50  ;;  %v4377_v57 = vrot.slane %v1889_v60, %v3923_v44  ;;  %v4380_v8 = vrot.slane %v1889_v60, %v3920_v43  ;;  %v2588_v50 = vld [vmem:[%s4994_s7 + $0x18] sm:$0xff] }
 0x25f   : > { %v2283_v23 = vrot.slane %v2251_v7, 1  ;;  %v2284_v13 = vrot.slane %v2252_v56, 1  ;;  %v2327_v19 = vmul.f32 %v4373_v29, %v4309_v9  ;;  %v2328_v30 = vmul.f32 %v4373_v29, %v2047_v0  ;;  %v2587_v0 = vld [vmem:[%s4994_s7 + $0x10] sm:$0xff] }
 0x260   : > { %v2118_v31 = vrot.slane %v4360_v62, 1  ;;  %v2219_v4 = vadd.f32 %v2189_v61, %v2143_v42  ;;  %v2423_v35 = vmul.f32 %v4380_v8, %v4319_v20  ;;  %v2424_v53 = vmul.f32 %v4380_v8, %v4331_v63 }
 0x261   : > { %v2285_v11 = vsel %vm635_vm3, %v2283_v23, %v2284_v13  ;;  %v2359_v39 = vrot.slane %v2327_v19, 2  ;;  %v2360_v5 = vrot.slane %v2328_v30, 2  ;;  %v4392_v34 = vrot.slane %v1889_v60, %v3929_v49 }
 0x262   : > { %v2191_v59 = vrot.slane %v4363_v1, 2  ;;  %v2239_v7 = vadd.f32 %v2231_v12, %v2219_v4  ;;  %v2455_v56 = vrot.slane %v2423_v35, 1  ;;  %v2456_v42 = vrot.slane %v2424_v53, 1 }
 0x263   : > { %v2403_v61 = vmul.f32 %v4377_v57, %v4319_v20  ;;  %v2499_v60 = vmul.f32 %v4392_v34, %v4319_v20  ;;  %v2500_v23 = vmul.f32 %v4392_v34, %v4331_v63  ;;  %v965_v13 = vmul.f32 %v4192_v17, %v926_v41 }
 0x264   : > { %v2315_v19 = vadd.f32 %v2285_v11, %v2239_v7  ;;  %v2361_v30 = vsel %vm695_vm4, %v2359_v39, %v2360_v5  ;;  %v2457_v6 = vsel %vm635_vm3, %v2455_v56, %v2456_v42  ;;  %v3618_v1 = vpack.c.bf16 %v2588_v50, %v2587_v0 }
 0x265   : > { %v2531_v12 = vrot.slane %v2499_v60, 2  ;;  %v2532_v4 = vrot.slane %v2500_v23, 2  ;;  %v1004_v35 = vadd.f32 %v4204_v26, %v965_v13  ;;  %v4414_v53 = vsel %vm566_vm0, %v2022_v16, 0.0 }
 0x266   : > { %v2391_v58 = vadd.f32 %v2361_v30, %v2315_v19  ;;  %3619 = vmatprep.subr.bf16.mxu1 %v3618_v1  ;;  %v2060_v17 = vmul.f32 %v4316_v18, %v4309_v9  ;;  %v2081_v41 = vmul.f32 %v4322_v21, %v4309_v9  ;;  %v2157_v11 = vmul.f32 %v4325_v24, %v4309_v9 }
 0x267   : > { %v1036_v39 = vmax.f32 %v1004_v35, 0.0  ;;  %3621 = vmatpush3.bf16.msra.mxu1 %v3618_v1  ;;  %v2232_v26 = vmul.f32 %v4334_v33, %v4319_v20  ;;  %v2253_v3 = vmul.f32 %v4344_v46, %v4319_v20  ;;  %v2254_v16 = vmul.f32 %v4344_v46, %v4331_v63 }
 0x268   : > { %v2411_v5 = vadd.f32 %v2403_v61, %v2391_v58  ;;  %v2114_v0 = vrot.slane %v2081_v41, 1  ;;  %v2190_v50 = vrot.slane %v2157_v11, 2  ;;  %v2329_v7 = vmul.f32 %v4373_v29, %v4319_v20  ;;  %v4441_v61 = vld [vmem:[%s4993_s6] ss:$0 sm:$0xff] }
 0x269   : > { %v1084_v56 = vsel %vm1037_vm5, %v1036_v39, -inf  ;;  %v2286_v9 = vrot.slane %v2253_v3, 1  ;;  %v2287_v42 = vrot.slane %v2254_v16, 1  ;;  %v2330_v60 = vmul.f32 %v4373_v29, %v4331_v63 }
 0x26a   : > { %v2487_v23 = vadd.f32 %v2457_v6, %v2411_v5  ;;  %v2533_v13 = vsel %vm695_vm4, %v2531_v12, %v2532_v4  ;;  %v1085_v19 = vmax.f32 %v4297_v40, %v1084_v56  ;;  %v2116_v58 = vsel %vm635_vm3, %v2114_v0, %v2115_v2 }
 0x26b   : > { %v2144_v30 = vadd.f32 %v2116_v58, %v2060_v17  ;;  %v2192_v1 = vsel %vm695_vm4, %v2190_v50, %v2191_v59  ;;  %v2288_v35 = vsel %vm635_vm3, %v2286_v9, %v2287_v42  ;;  %v2362_v41 = vrot.slane %v2329_v7, 2 }
 0x26c   : > { %v2563_v6 = vadd.f32 %v2533_v13, %v2487_v23  ;;  %v1357_v11 = vcombine.high %v1085_v19, %v1085_v19  ;;  %v1364_v12 = vrot.slane %v1085_v19, %v3956_v28  ;;  %v2363_v40 = vrot.slane %v2330_v60, 2 }
 0x26d   : > { %v2220_v4 = vadd.f32 %v2192_v1, %v2144_v30  ;;  %v2404_v45 = vmul.f32 %v4377_v57, %v4163_v38  ;;  %v2425_v2 = vmul.f32 %v4380_v8, %v4163_v38  ;;  %v2426_v17 = vmul.f32 %v4380_v8, %v4414_v53 }
 0x26e   : > { %v2577_v59 = vadd.f32 %v4441_v61, %v2563_v6  ;;  %v1371_v39 = vrot.slane %v1357_v11, %v3956_v28  ;;  %v1372_v3 = vcombine.high %v1364_v12, %v1364_v12  ;;  %v1859_v16 = vsel %vm1438_vm6, %v1364_v12, -inf }
 0x26f   : > { %v1860_v5 = vrot.slane %v1859_v16, 4  ;;  %v2240_v0 = vadd.f32 %v2232_v26, %v2220_v4  ;;  %v2458_v50 = vrot.slane %v2425_v2, 1  ;;  %v2459_v7 = vrot.slane %v2426_v17, 1 }
 0x270   : > { %3548 = vmatprep.mubr.msk.f32.mxu1 %vm1037_vm5, %v2577_v59  ;;  %v1373_v56 = vcombine.high %v1371_v39, %v1371_v39  ;;  %v1866_v9 = vsel %vm1438_vm6, %v1372_v3, -inf  ;;  %v1873_v42 = vsel %vm1438_vm6, %v1371_v39, -inf  ;;  %v2501_v60 = vmul.f32 %v4392_v34, %v4163_v38 }
 0x271   : > { %v1861_v23 = vmax.f32 %v1859_v16, %v1860_v5  ;;  %v1867_v13 = vrot.slane %v1866_v9, 4  ;;  %v1874_v19 = vrot.slane %v1873_v42, 4  ;;  %v2316_v58 = vadd.f32 %v2288_v35, %v2240_v0 }
 0x272   : > { %v1880_v30 = vsel %vm1438_vm6, %v1373_v56, -inf  ;;  %v2364_v26 = vsel %vm695_vm4, %v2362_v41, %v2363_v40  ;;  %v2502_v1 = vmul.f32 %v4392_v34, %v4414_v53  ;;  %v2534_v6 = vrot.slane %v2501_v60, 2 }
 0x273   : > { %v1862_v11 = vrot.slane %v1861_v23, 2  ;;  %v1868_v12 = vmax.f32 %v1866_v9, %v1867_v13  ;;  %v1875_v4 = vmax.f32 %v1873_v42, %v1874_v19  ;;  %v1881_v2 = vrot.slane %v1880_v30, 4 }
 0x274   : > { %v2013_v17 = vsel %vm1959_vm9, %v4327_v27, %v4347_v48  ;;  %v2392_v59 = vadd.f32 %v2364_v26, %v2316_v58  ;;  %v2460_v39 = vsel %vm635_vm3, %v2458_v50, %v2459_v7  ;;  %v2535_v35 = vrot.slane %v2502_v1, 2 }
 0x275   : > { %v1863_v3 = vmax.f32 %v1861_v23, %v1862_v11  ;;  %v1869_v16 = vrot.slane %v1868_v12, 2  ;;  %v1876_v5 = vrot.slane %v1875_v4, 2  ;;  %v1882_v41 = vmax.f32 %v1880_v30, %v1881_v2 }
 0x276   : > { %v2412_v40 = vadd.f32 %v2404_v45, %v2392_v59  ;;  %v2536_v0 = vsel %vm695_vm4, %v2534_v6, %v2535_v35  ;;  %v2083_v56 = vmul.f32 %v4322_v21, %v4319_v20  ;;  %v2159_v9 = vmul.f32 %v4325_v24, %v4319_v20 }
 0x277   : > { %v1864_v42 = vrot.slane %v1863_v3, 1  ;;  %v1870_v60 = vmax.f32 %v1868_v12, %v1869_v16  ;;  %v1877_v27 = vmax.f32 %v1875_v4, %v1876_v5  ;;  %v1883_v48 = vrot.slane %v1882_v41, 2 }
 0x278   : > { %v2488_v13 = vadd.f32 %v2460_v39, %v2412_v40  ;;  %v2117_v50 = vrot.slane %v2083_v56, 1  ;;  %v2160_v7 = vmul.f32 %v4325_v24, %v4331_v63  ;;  %v2193_v23 = vrot.slane %v2159_v9, 2 }
 0x279   : > { %v1865_v19 = vmax.f32 %v1863_v3, %v1864_v42  ;;  %v1871_v45 = vrot.slane %v1870_v60, 1  ;;  %v1878_v58 = vrot.slane %v1877_v27, 1  ;;  %v1884_v30 = vmax.f32 %v1882_v41, %v1883_v48 }
 0x27a   : > { %v2564_v26 = vadd.f32 %v2536_v0, %v2488_v13  ;;  %v2061_v1 = vmul.f32 %v4316_v18, %v4319_v20  ;;  %v2119_v6 = vsel %vm635_vm3, %v2117_v50, %v2118_v31  ;;  %v2194_v11 = vrot.slane %v2160_v7, 2 }
 0x27b   : > { %v1872_v12 = vmax.f32 %v1870_v60, %v1871_v45  ;;  %v1885_v4 = vrot.slane %v1884_v30, 1  ;;  %v4483_v63 = vsel %vm566_vm0, %v2023_v25, 0.0  ;;  %v2233_v2 = vmul.f32 %v4334_v33, %v4163_v38 }
 0x27c   : > { %v2014_v59 = vsel %vm1961_vm10, %v1865_v19, %v2013_v17  ;;  %v2578_v39 = vadd.f32 %v4441_v61, %v2564_v26  ;;  %v2145_v20 = vadd.f32 %v2119_v6, %v2061_v1  ;;  %v2255_v62 = vmul.f32 %v4344_v46, %v4163_v38 }
 0x27d   : > { %v1879_v31 = vmax.f32 %v1877_v27, %v1878_v58  ;;  %v2195_v35 = vsel %vm695_vm4, %v2193_v23, %v2194_v11  ;;  %v2256_v10 = vmul.f32 %v4344_v46, %v4414_v53  ;;  %v2331_v25 = vmul.f32 %v4373_v29, %v4163_v38 }
 0x27e   : > { %v4496_v3 = vmax.f32 %v1884_v30, %v1885_v4  ;;  %3549 = vmatmul.mubr.msk.f32.vlgmr.msra.gmra.mrb[0].mxu1 %vm1037_vm5, %v2578_v39  ;;  %v2221_v17 = vadd.f32 %v2195_v35, %v2145_v20  ;;  %v2289_v16 = vrot.slane %v2255_v62, 1  ;;  %v2332_v5 = vmul.f32 %v4373_v29, %v4414_v53 }
 0x27f   : > { %v2015_v41 = vsel %vm1963_vm11, %v1872_v12, %v2014_v59  ;;  %v2290_v40 = vrot.slane %v2256_v10, 1  ;;  %v2365_v0 = vrot.slane %v2331_v25, 2  ;;  %v2427_v56 = vmul.f32 %v4380_v8, %v4198_v22 }
 0x280   : > { %v2241_v9 = vadd.f32 %v2233_v2, %v2221_v17  ;;  %v2366_v42 = vrot.slane %v2332_v5, 2  ;;  %v2428_v60 = vmul.f32 %v4380_v8, %v4483_v63  ;;  %v2503_v27 = vmul.f32 %v4392_v34, %v4198_v22 }
 0x281   : > { %v2291_v48 = vsel %vm635_vm3, %v2289_v16, %v2290_v40  ;;  %v2405_v13 = vmul.f32 %v4377_v57, %v4198_v22  ;;  %v2461_v50 = vrot.slane %v2427_v56, 1  ;;  %v2504_v7 = vmul.f32 %v4392_v34, %v4483_v63 }
 0x282   : > { %v2317_v23 = vadd.f32 %v2291_v48, %v2241_v9  ;;  %v2462_v19 = vrot.slane %v2428_v60, 1  ;;  %v2537_v45 = vrot.slane %v2503_v27, 2  ;;  %v4516_v58 = vsel %vm566_vm0, %v2024_v36, 0.0 }
 0x283   : > { %v2367_v30 = vsel %vm695_vm4, %v2365_v0, %v2366_v42  ;;  %v2538_v26 = vrot.slane %v2504_v7, 2  ;;  %v2085_v1 = vmul.f32 %v4322_v21, %v4163_v38  ;;  %v2086_v6 = vmul.f32 %v4322_v21, %v4414_v53 }
 0x284   : > { %v2393_v11 = vadd.f32 %v2367_v30, %v2317_v23  ;;  %v2062_v12 = vmul.f32 %v4316_v18, %v4163_v38  ;;  %v2161_v4 = vmul.f32 %v4325_v24, %v4163_v38  ;;  %v2162_v15 = vmul.f32 %v4325_v24, %v4414_v53 }
 0x285   : > { %v2463_v36 = vsel %vm635_vm3, %v2461_v50, %v2462_v19  ;;  %v2539_v2 = vsel %vm695_vm4, %v2537_v45, %v2538_v26  ;;  %v2120_v59 = vrot.slane %v2085_v1, 1  ;;  %v2121_v39 = vrot.slane %v2086_v6, 1 }
 0x286   : > { %v2413_v20 = vadd.f32 %v2405_v13, %v2393_v11  ;;  %v2196_v62 = vrot.slane %v2161_v4, 2  ;;  %v2197_v35 = vrot.slane %v2162_v15, 2  ;;  %v2257_v10 = vmul.f32 %v4344_v46, %v4198_v22 }
 0x287   : > { %v2122_v25 = vsel %vm635_vm3, %v2120_v59, %v2121_v39  ;;  %v2258_v38 = vmul.f32 %v4344_v46, %v4483_v63  ;;  %v2333_v53 = vmul.f32 %v4373_v29, %v4198_v22  ;;  %v2334_v17 = vmul.f32 %v4373_v29, %v4483_v63 }
 0x288   : > { %v2489_v16 = vadd.f32 %v2463_v36, %v2413_v20  ;;  %v2146_v5 = vadd.f32 %v2122_v25, %v2062_v12  ;;  %v2234_v40 = vmul.f32 %v4334_v33, %v4198_v22  ;;  %v2292_v0 = vrot.slane %v2257_v10, 1 }
 0x289   : > { %v2198_v56 = vsel %vm695_vm4, %v2196_v62, %v2197_v35  ;;  %v2293_v9 = vrot.slane %v2258_v38, 1  ;;  %v2368_v42 = vrot.slane %v2333_v53, 2  ;;  %v2369_v60 = vrot.slane %v2334_v17, 2 }
 0x28a   : > { %v2565_v27 = vadd.f32 %v2539_v2, %v2489_v16  ;;  %v2222_v48 = vadd.f32 %v2198_v56, %v2146_v5  ;;  %v2429_v13 = vmul.f32 %v4380_v8, %v4211_v32  ;;  %v2430_v50 = vmul.f32 %v4380_v8, %v4516_v58 }
 0x28b   : > { %v4548_v7 = vsel %vm1965_vm12, %v1879_v31, %v2015_v41  ;;  %v2294_v23 = vsel %vm635_vm3, %v2292_v0, %v2293_v9  ;;  %v2505_v19 = vmul.f32 %v4392_v34, %v4211_v32  ;;  %v2506_v45 = vmul.f32 %v4392_v34, %v4516_v58 }
 0x28c   : > { %v2579_v30 = vadd.f32 %v4441_v61, %v2565_v27  ;;  %v2242_v26 = vadd.f32 %v2234_v40, %v2222_v48  ;;  %v2464_v1 = vrot.slane %v2429_v13, 1  ;;  %v2465_v6 = vrot.slane %v2430_v50, 1 }
 0x28d   : > { %v2370_v11 = vsel %vm695_vm4, %v2368_v42, %v2369_v60  ;;  %v2406_v12 = vmul.f32 %v4377_v57, %v4211_v32  ;;  %v2540_v31 = vrot.slane %v2505_v19, 2  ;;  %v2541_v41 = vrot.slane %v2506_v45, 2 }
 0x28e   : > { %3551 = vmatprep.mubr.msk.f32.mxu1 %vm1037_vm5, %v2579_v30  ;;  %v2318_v4 = vadd.f32 %v2294_v23, %v2242_v26  ;;  %v4563_v15 = vsel %vm566_vm0, %v2025_v37, 0.0  ;;  %v2087_v36 = vmul.f32 %v4322_v21, %v4198_v22  ;;  %v2088_v2 = vmul.f32 %v4322_v21, %v4483_v63 }
 0x28f   : > { %v2466_v59 = vsel %vm635_vm3, %v2464_v1, %v2465_v6  ;;  %v2063_v39 = vmul.f32 %v4316_v18, %v4198_v22  ;;  %v2163_v20 = vmul.f32 %v4325_v24, %v4198_v22  ;;  %v2164_v14 = vmul.f32 %v4325_v24, %v4483_v63 }
 0x290   : > { %v2394_v62 = vadd.f32 %v2370_v11, %v2318_v4  ;;  %v2123_v37 = vrot.slane %v2087_v36, 1  ;;  %v2124_v35 = vrot.slane %v2088_v2, 1  ;;  %v2259_v10 = vmul.f32 %v4344_v46, %v4211_v32 }
 0x291   : > { %v2199_v25 = vrot.slane %v2163_v20, 2  ;;  %v2200_v38 = vrot.slane %v2164_v14, 2  ;;  %v2260_v53 = vmul.f32 %v4344_v46, %v4516_v58  ;;  %v2335_v17 = vmul.f32 %v4373_v29, %v4211_v32 }
 0x292   : > { %v2414_v16 = vadd.f32 %v2406_v12, %v2394_v62  ;;  %v2542_v22 = vsel %vm695_vm4, %v2540_v31, %v2541_v41  ;;  %v2125_v5 = vsel %vm635_vm3, %v2123_v37, %v2124_v35  ;;  %v2336_v63 = vmul.f32 %v4373_v29, %v4516_v58 }
 0x293   : > { %v2147_v40 = vadd.f32 %v2125_v5, %v2063_v39  ;;  %v2295_v0 = vrot.slane %v2259_v10, 1  ;;  %v2296_v56 = vrot.slane %v2260_v53, 1  ;;  %v2371_v9 = vrot.slane %v2335_v17, 2 }
 0x294   : > { %v2490_v42 = vadd.f32 %v2466_v59, %v2414_v16  ;;  %v2201_v60 = vsel %vm695_vm4, %v2199_v25, %v2200_v38  ;;  %v2372_v27 = vrot.slane %v2336_v63, 2  ;;  %v2431_v48 = vmul.f32 %v4380_v8, %v4288_v52 }
 0x295   : > { %v2223_v13 = vadd.f32 %v2201_v60, %v2147_v40  ;;  %v2235_v50 = vmul.f32 %v4334_v33, %v4211_v32  ;;  %v2432_v23 = vmul.f32 %v4380_v8, %v4563_v15  ;;  %v2507_v19 = vmul.f32 %v4392_v34, %v4288_v52 }
 0x296   : > { %v2566_v45 = vadd.f32 %v2542_v22, %v2490_v42  ;;  %v2407_v30 = vmul.f32 %v4377_v57, %v4288_v52  ;;  %v2467_v26 = vrot.slane %v2431_v48, 1  ;;  %v2508_v1 = vmul.f32 %v4392_v34, %v4563_v15 }
 0x297   : > { %v2243_v6 = vadd.f32 %v2235_v50, %v2223_v13  ;;  %v2297_v11 = vsel %vm635_vm3, %v2295_v0, %v2296_v56  ;;  %v2373_v12 = vsel %vm695_vm4, %v2371_v9, %v2372_v27  ;;  %v2468_v31 = vrot.slane %v2432_v23, 1 }
 0x298   : > { %v2580_v41 = vadd.f32 %v4441_v61, %v2566_v45  ;;  %v2543_v4 = vrot.slane %v2507_v19, 2  ;;  %v5012_v36 = vrot.slane %v4279_v51, 7  ;;  %v2089_v59 = vmul.f32 %v4322_v21, %v4211_v32 }
 0x299   : > { %v2319_v39 = vadd.f32 %v2297_v11, %v2243_v6  ;;  %v2544_v20 = vrot.slane %v2508_v1, 2  ;;  %v2090_v14 = vmul.f32 %v4322_v21, %v4516_v58  ;;  %v2165_v62 = vmul.f32 %v4325_v24, %v4211_v32 }
 0x29a   : > { %v4605_v2 = vsel %vm566_vm0, %v5012_v36, 0.0  ;;  %3552 = vmatmul.mubr.msk.f32.gmra.mrb[2].mxu1 %vm1037_vm5, %v2580_v41  ;;  %v2469_v37 = vsel %vm635_vm3, %v2467_v26, %v2468_v31  ;;  %v2064_v51 = vmul.f32 %v4316_v18, %v4211_v32  ;;  %v2126_v35 = vrot.slane %v2089_v59, 1 }
 0x29b   : > { %v2166_v10 = vmul.f32 %v4325_v24, %v4516_v58  ;;  %v2395_v25 = vadd.f32 %v2373_v12, %v2319_v39  ;;  %v2127_v38 = vrot.slane %v2090_v14, 1  ;;  %v2202_v53 = vrot.slane %v2165_v62, 2 }
 0x29c   : > { %v2261_v17 = vmul.f32 %v4344_v46, %v4288_v52  ;;  %v2262_v22 = vmul.f32 %v4344_v46, %v4563_v15  ;;  %v2337_v5 = vmul.f32 %v4373_v29, %v4288_v52  ;;  %v2338_v32 = vmul.f32 %v4373_v29, %v4563_v15 }
 0x29d   : > { %v2203_v16 = vrot.slane %v2166_v10, 2  ;;  %v2415_v63 = vadd.f32 %v2407_v30, %v2395_v25  ;;  %v2128_v40 = vsel %vm635_vm3, %v2126_v35, %v2127_v38  ;;  %v2236_v58 = vmul.f32 %v4334_v33, %v4288_v52 }
 0x29e   : > { %v2298_v0 = vrot.slane %v2261_v17, 1  ;;  %v2148_v56 = vadd.f32 %v2128_v40, %v2064_v51  ;;  %v2299_v42 = vrot.slane %v2262_v22, 1  ;;  %v2374_v60 = vrot.slane %v2337_v5, 2 }
 0x29f   : > { %v2204_v9 = vsel %vm695_vm4, %v2202_v53, %v2203_v16  ;;  %v2491_v27 = vadd.f32 %v2469_v37, %v2415_v63  ;;  %v2375_v48 = vrot.slane %v2338_v32, 2  ;;  %v2433_v13 = vmul.f32 %v4380_v8, %v4294_v55 }
 0x2a0   : > { %v2434_v50 = vmul.f32 %v4380_v8, %v4605_v2  ;;  %v2545_v23 = vsel %vm695_vm4, %v2543_v4, %v2544_v20  ;;  %v2224_v19 = vadd.f32 %v2204_v9, %v2148_v56  ;;  %v2509_v45 = vmul.f32 %v4392_v34, %v4294_v55 }
 0x2a1   : > { %v2510_v30 = vmul.f32 %v4392_v34, %v4605_v2  ;;  %v2567_v26 = vadd.f32 %v2545_v23, %v2491_v27  ;;  %v2300_v1 = vsel %vm635_vm3, %v2298_v0, %v2299_v42  ;;  %v2470_v6 = vrot.slane %v2433_v13, 1 }
 0x2a2   : > { %v2471_v11 = vrot.slane %v2434_v50, 1  ;;  %v2244_v12 = vadd.f32 %v2236_v58, %v2224_v19  ;;  %v2376_v31 = vsel %vm695_vm4, %v2374_v60, %v2375_v48  ;;  %v2408_v41 = vmul.f32 %v4377_v57, %v4294_v55 }
 0x2a3   : > { %v2017_v4 = vsel %vm1967_vm13, %v4496_v3, %v4548_v7  ;;  %v2581_v36 = vadd.f32 %v4441_v61, %v2567_v26  ;;  %v2546_v59 = vrot.slane %v2509_v45, 2  ;;  %v2547_v39 = vrot.slane %v2510_v30, 2 }
 0x2a4   : > { %v2027_v20 = vrot.slane %v2017_v4, 7  ;;  %v2320_v14 = vadd.f32 %v2300_v1, %v2244_v12  ;;  %v2472_v62 = vsel %vm635_vm3, %v2470_v6, %v2471_v11  ;;  %v2091_v37 = vmul.f32 %v4322_v21, %v4288_v52 }
 0x2a5   : > { %v2092_v51 = vmul.f32 %v4322_v21, %v4563_v15  ;;  %3554 = vmatprep.mubr.msk.f32.mxu1 %vm1037_vm5, %v2581_v36  ;;  %v2065_v3 = vmul.f32 %v4316_v18, %v4288_v52  ;;  %v2167_v7 = vmul.f32 %v4325_v24, %v4288_v52  ;;  %v2168_v10 = vmul.f32 %v4325_v24, %v4563_v15 }
 0x2a6   : > { %v2045_v35 = vsel %vm566_vm0, 0.0, %v2027_v20  ;;  %v2396_v25 = vadd.f32 %v2376_v31, %v2320_v14  ;;  %v2054_v38 = vsel %vm566_vm0, %v2027_v20, 0.0  ;;  %v2129_v53 = vrot.slane %v2091_v37, 1 }
 0x2a7   : > { %v2130_v17 = vrot.slane %v2092_v51, 1  ;;  %v2205_v16 = vrot.slane %v2167_v7, 2  ;;  %v2206_v22 = vrot.slane %v2168_v10, 2  ;;  %v2263_v5 = vmul.f32 %v4344_v46, %v4294_v55 }
 0x2a8   : > { %v2264_v32 = vmul.f32 %v4344_v46, %v4605_v2  ;;  %v2416_v63 = vadd.f32 %v2408_v41, %v2396_v25  ;;  %v2339_v52 = vmul.f32 %v4373_v29, %v4294_v55  ;;  %v2340_v15 = vmul.f32 %v4373_v29, %v4605_v2 }
 0x2a9   : > { %v2131_v40 = vsel %vm635_vm3, %v2129_v53, %v2130_v17  ;;  %v2548_v58 = vsel %vm695_vm4, %v2546_v59, %v2547_v39  ;;  %v2301_v56 = vrot.slane %v2263_v5, 1  ;;  %v2207_v60 = vsel %vm695_vm4, %v2205_v16, %v2206_v22 }
 0x2aa   : > { %v2149_v0 = vadd.f32 %v2131_v40, %v2065_v3  ;;  %v2302_v9 = vrot.slane %v2264_v32, 1  ;;  %v2492_v42 = vadd.f32 %v2472_v62, %v2416_v63  ;;  %v2377_v27 = vrot.slane %v2339_v52, 2 }
 0x2ab   : > { %v2378_v48 = vrot.slane %v2340_v15, 2  ;;  %v2237_v50 = vmul.f32 %v4334_v33, %v4294_v55  ;;  %v2435_v23 = vmul.f32 %v4380_v8, %v2045_v35  ;;  %v2436_v19 = vmul.f32 %v4380_v8, %v2054_v38 }
 0x2ac   : > { %v2225_v13 = vadd.f32 %v2207_v60, %v2149_v0  ;;  %v2568_v45 = vadd.f32 %v2548_v58, %v2492_v42  ;;  %v2409_v30 = vmul.f32 %v4377_v57, %v2045_v35  ;;  %v2511_v26 = vmul.f32 %v4392_v34, %v2045_v35 }
 0x2ad   : > { %v2512_v1 = vmul.f32 %v4392_v34, %v2054_v38  ;;  %v2303_v11 = vsel %vm635_vm3, %v2301_v56, %v2302_v9  ;;  %v2473_v12 = vrot.slane %v2435_v23, 1  ;;  %v2474_v31 = vrot.slane %v2436_v19, 1 }
 0x2ae   : > { %v2245_v6 = vadd.f32 %v2237_v50, %v2225_v13  ;;  %v2582_v41 = vadd.f32 %v4441_v61, %v2568_v45  ;;  %v2379_v4 = vsel %vm695_vm4, %v2377_v27, %v2378_v48  ;;  %v2066_v36 = vmul.f32 %v4316_v18, %v4294_v55 }
 0x2af   : > { %v2093_v59 = vmul.f32 %v4322_v21, %v4294_v55  ;;  %v2549_v20 = vrot.slane %v2511_v26, 2  ;;  %v2094_v14 = vmul.f32 %v4322_v21, %v4605_v2  ;;  %v2169_v62 = vmul.f32 %v4325_v24, %v4294_v55 }
 0x2b0   : > { %v2321_v39 = vadd.f32 %v2303_v11, %v2245_v6  ;;  %3555 = vmatmul.mubr.msk.f32.gmra.mrb[4].mxu1 %vm1037_vm5, %v2582_v41  ;;  %v2475_v37 = vsel %vm635_vm3, %v2473_v12, %v2474_v31  ;;  %v2550_v51 = vrot.slane %v2512_v1, 2  ;;  %v2170_v18 = vmul.f32 %v4325_v24, %v4605_v2  ;;  %v3188_v11 = vld [vmem:[%s4998_s11 + $0x8] sm:$0xff]  ;;  %v3189_v31 = vld [vmem:[%s4998_s11 + $0x10] sm:$0xff] }
 0x2b1   : > { %v2132_v3 = vrot.slane %v2093_v59, 1  ;;  %v2133_v10 = vrot.slane %v2094_v14, 1  ;;  %v2208_v25 = vrot.slane %v2169_v62, 2  ;;  %v2265_v53 = vmul.f32 %v4344_v46, %v2045_v35  ;;  %v3298_v62 = vld [vmem:[%s5000_s13] sm:$0xff] }
 0x2b2   : > { %v2397_v7 = vadd.f32 %v2379_v4, %v2321_v39  ;;  %v2209_v17 = vrot.slane %v2170_v18, 2  ;;  %v2266_v21 = vmul.f32 %v4344_v46, %v2054_v38  ;;  %v2341_v16 = vmul.f32 %v4373_v29, %v2045_v35  ;;  %v3191_v4 = vld [vmem:[%s4998_s11 + $0x20] sm:$0xff]  ;;  %v3193_v39 = vld [vmem:[%s4998_s11 + $0x30] sm:$0xff] }
 0x2b3   : > { %v2342_v55 = vmul.f32 %v4373_v29, %v2054_v38  ;;  %v2134_v5 = vsel %vm635_vm3, %v2132_v3, %v2133_v10  ;;  %v2304_v32 = vrot.slane %v2265_v53, 1  ;;  %v2238_v40 = vmul.f32 %v4334_v33, %v2045_v35  ;;  %v4761_v10 = vld [vmem:[%s4995_s8] ss:$0 sm:$0xff] }
 0x2b4   : > { %v2417_v22 = vadd.f32 %v2409_v30, %v2397_v7  ;;  %v2150_v63 = vadd.f32 %v2134_v5, %v2066_v36  ;;  %v2305_v24 = vrot.slane %v2266_v21, 1  ;;  %v2210_v52 = vsel %vm695_vm4, %v2208_v25, %v2209_v17  ;;  %v3192_v36 = vld [vmem:[%s4998_s11 + $0x28] sm:$0xff]  ;;  %v3301_v7 = vld [vmem:[%s5000_s13 + $0x18] sm:$0xff]  ;;  %v3302_v53 = vld [vmem:[%s5000_s13 + $0x20] sm:$0xff] }
 0x2b5   : > { %v2437_v15 = vmul.f32 %v4380_v8, %v4303_v54  ;;  %v2438_v46 = vmul.f32 %v4380_v8, %v4312_v47  ;;  %v2551_v58 = vsel %vm695_vm4, %v2549_v20, %v2550_v51  ;;  %v2380_v38 = vrot.slane %v2341_v16, 2  ;;  %v3194_v20 = vld [vmem:[%s4998_s11 + $0x38] sm:$0xff]  ;;  %v3300_v51 = vld [vmem:[%s5000_s13 + $0x10] sm:$0xff]  ;;  %v3303_v17 = vld [vmem:[%s5000_s13 + $0x28] sm:$0xff] }
 0x2b6   : > { %v2493_v2 = vadd.f32 %v2475_v37, %v2417_v22  ;;  %v2226_v29 = vadd.f32 %v2210_v52, %v2150_v63  ;;  %v2381_v0 = vrot.slane %v2342_v55, 2  ;;  %v2306_v9 = vsel %vm635_vm3, %v2304_v32, %v2305_v24  ;;  %v3299_v37 = vld [vmem:[%s5000_s13 + $0x8] sm:$0xff] }
 0x2b7   : > { %v2513_v33 = vmul.f32 %v4392_v34, %v4303_v54  ;;  %v2514_v35 = vmul.f32 %v4392_v34, %v4312_v47  ;;  %v2476_v27 = vrot.slane %v2437_v15, 1  ;;  %v2477_v48 = vrot.slane %v2438_v46, 1 }
 0x2b8   : > { %v2569_v56 = vadd.f32 %v2551_v58, %v2493_v2  ;;  %v2246_v42 = vadd.f32 %v2238_v40, %v2226_v29  ;;  %v2410_v13 = vmul.f32 %v4377_v57, %v4303_v54  ;;  %v2382_v50 = vsel %vm695_vm4, %v2380_v38, %v2381_v0  ;;  %v3187_v57 = vld [vmem:[%s4998_s11] sm:$0xff] }
 0x2b9   : > { %v2552_v23 = vrot.slane %v2513_v33, 2  ;;  %v2553_v19 = vrot.slane %v2514_v35, 2  ;;  %v2478_v30 = vsel %vm635_vm3, %v2476_v27, %v2477_v48  ;;  %v3622_v12 = vpack.c.bf16 %v3188_v11, %v3187_v57 }
 0x2ba   : > { %v2583_v60 = vadd.f32 %v4441_v61, %v2569_v56  ;;  %v2322_v8 = vadd.f32 %v2306_v9, %v2246_v42  ;;  %v3630_v59 = vpack.c.bf16 %v3192_v36, %v3191_v4  ;;  %v3634_v14 = vpack.c.bf16 %v3194_v20, %v3193_v39 }
 0x2bb   : > { %v2554_v47 = vsel %vm695_vm4, %v2552_v23, %v2553_v19  ;;  %3623 = vmatprep.subr.bf16.mxu1 %v3622_v12  ;;  %v3729_v3 = vmov 0.0|0.0   ;;  %v3639_v18 = vpack.c.bf16 %v3299_v37, %v3298_v62  ;;  %v3642_v25 = vpack.c.bf16 %v3301_v7, %v3300_v51 }
 0x2bc   : > { %3557 = vmatprep.mubr.msk.f32.mxu1 %vm1037_vm5, %v2583_v60  ;;  %v2398_v45 = vadd.f32 %v2382_v50, %v2322_v8  ;;  %3625 = vmatpush3.bf16.msra.mxu1 %v3622_v12  ;;  %v3645_v5 = vpack.c.bf16 %v3303_v17, %v3302_v53 }
 0x2bd   : > { %3638 = vmatprep.subr.bf16.mxu0 %v3729_v3 }
 0x2be   : > { %v2418_v26 = vadd.f32 %v2410_v13, %v2398_v45  ;;  %3640 = vmatpush3.bf16.msra.mxu0 %v3639_v18  ;;  %v2947_v18 = vld [vmem:[%s4996_s9] sm:$0x7] }
 0x2bf   : > { %3641 = vmatprep.subr.bf16.mxu0 %v3729_v3  ;;  %v4793_v17 = vrot.slane %v2947_v18, %v3920_v43 }
 0x2c0   : > { %v2494_v34 = vadd.f32 %v2478_v30, %v2418_v26 }
 0x2c2   : > { %v2570_v1 = vadd.f32 %v2554_v47, %v2494_v34  ;;  %3643 = vmatpush3.bf16.msra.mxu0 %v3642_v25 }
 0x2c3   : > { %3644 = vmatprep.subr.bf16.mxu0 %v3729_v3 }
 0x2c4   : > { %v2584_v6 = vadd.f32 %v4441_v61, %v2570_v1  ;;  %v3190_v61 = vld [vmem:[%s4998_s11 + $0x18] sm:$0xff] }
 0x2c5   : > { %v3626_v41 = vpack.c.bf16 %v3190_v61, %v3189_v31 }
 0x2c6   : > { %3558 = vmatmul.mubr.msk.f32.gmra.mrb[6].mxu1 %vm1037_vm5, %v2584_v6  ;;  %3646 = vmatpush3.bf16.msra.mxu0 %v3645_v5 }
 0x2c7   : > { %3627 = vmatprep.subr.bf16.mxu1 %v3626_v41  ;;  %3647 = vmatprep.subr.bf16.mxu0 %v3729_v3 }
 0x2c8   : > { %3629 = vmatpush3.bf16.msra.mxu1 %v3626_v41 }
 0x2c9   : > { %3631 = vmatprep.subr.bf16.mxu1 %v3630_v59 }
 0x2cc   : > { %3633 = vmatpush3.bf16.msra.mxu1 %v3630_v59 }
 0x2cd   : > { %3635 = vmatprep.subr.bf16.mxu1 %v3634_v14 }
 0x2d0   : > { %3637 = vmatpush3.bf16.msra.mxu1 %v3634_v14 }
 0x351   : > { %v3550_v21 = vpop.f32.mrb[0].mxu1 }
 0x352   : > { %v2692_v16 = vadd.f32 %v3550_v21, %v4761_v10  ;;  %v2686_v55 = vpop.f32.mrb[1].mxu1 }
 0x353   : > { %v2687_v22 = vadd.f32 %v4761_v10, %v2686_v55  ;;  %v4798_v55 = vsel %vm2991_vm1, %v4303_v54, 0.0  ;;  %v4810_v54 = vrot.slane %v2947_v18, %v3929_v49 }
 0x354   : > { %v2726_v32 = vmax.f32 %v2692_v16, 0.0 }
 0x355   : > { %v2725_v63 = vmax.f32 %v2687_v22, 0.0 }
 0x356   : > { %v2735_v40 = vsel %vm2733_vm14, %v2726_v32, -inf }
 0x357   : > { %v2734_v24 = vsel %vm2733_vm14, %v2725_v63, -inf }
 0x358   : > { %v2736_v2 = vmax.f32 %v2734_v24, %v2735_v40  ;;  %v4803_v24 = vrot.slane %v2947_v18, %v3923_v44 }
 0x35a   : > { %v2750_v52 = vcombine.high %v2736_v2, %v2736_v2  ;;  %v2757_v15 = vrot.slane %v2736_v2, %v3956_v28  ;;  %v3013_v2 = vmul.f32 %v4793_v17, %v4798_v55 }
 0x35c   : > { %v2764_v46 = vrot.slane %v2750_v52, %v3956_v28  ;;  %v2765_v58 = vcombine.high %v2757_v15, %v2757_v15  ;;  %v2835_v29 = vsel %vm2834_vm15, %v2757_v15, -inf }
 0x35d   : > { %v2836_v38 = vrot.slane %v2835_v29, 4 }
 0x35e   : > { %v2766_v0 = vcombine.high %v2764_v46, %v2764_v46  ;;  %v2842_v56 = vsel %vm2834_vm15, %v2765_v58, -inf  ;;  %v2849_v9 = vsel %vm2834_vm15, %v2764_v46, -inf }
 0x35f   : > { %v2837_v33 = vmax.f32 %v2835_v29, %v2836_v38  ;;  %v2843_v35 = vrot.slane %v2842_v56, 4  ;;  %v2850_v42 = vrot.slane %v2849_v9, 4 }
 0x360   : > { %v2856_v60 = vsel %vm2834_vm15, %v2766_v0, -inf }
 0x361   : > { %v2838_v27 = vrot.slane %v2837_v33, 2  ;;  %v2844_v48 = vmax.f32 %v2842_v56, %v2843_v35  ;;  %v2851_v8 = vmax.f32 %v2849_v9, %v2850_v42  ;;  %v2857_v13 = vrot.slane %v2856_v60, 4 }
 0x363   : > { %v2845_v50 = vrot.slane %v2844_v48, 2  ;;  %v2852_v23 = vrot.slane %v2851_v8, 2  ;;  %v2858_v19 = vmax.f32 %v2856_v60, %v2857_v13  ;;  %v2839_v45 = vmax.f32 %v2837_v33, %v2838_v27 }
 0x364   : > { %v3001_v60 = vmul.f32 %v4803_v24, %v4798_v55  ;;  %v3021_v27 = vrot.slane %v3013_v2, 1 }
 0x365   : > { %v2846_v30 = vmax.f32 %v2844_v48, %v2845_v50  ;;  %v2859_v26 = vrot.slane %v2858_v19, 2  ;;  %v2853_v47 = vmax.f32 %v2851_v8, %v2852_v23  ;;  %v2840_v1 = vrot.slane %v2839_v45, 1 }
 0x366   : > { %v3037_v48 = vmul.f32 %v4810_v54, %v4798_v55 }
 0x367   : > { %v2847_v34 = vrot.slane %v2846_v30, 1  ;;  %v2860_v6 = vmax.f32 %v2858_v19, %v2859_v26  ;;  %v2854_v57 = vrot.slane %v2853_v47, 1  ;;  %v2841_v12 = vmax.f32 %v2839_v45, %v2840_v1  ;;  %v2948_v19 = vld [vmem:[%s4996_s9 + $0x4] sm:$0x7] }
 0x368   : > { %v3029_v1 = vadd.f32 %v3021_v27, %v3001_v60 }
 0x369   : > { %v2848_v11 = vmax.f32 %v2846_v30, %v2847_v34  ;;  %v2861_v31 = vrot.slane %v2860_v6, 1  ;;  %v2855_v41 = vmax.f32 %v2853_v47, %v2854_v57  ;;  %v4823_v57 = vrot.slane %v2948_v19, %v3923_v44 }
 0x36b   : > { %v2967_v59 = vsel %vm1955_vm7, %v2848_v11, %v2841_v12  ;;  %v2862_v14 = vmax.f32 %v2860_v6, %v2861_v31  ;;  %v3045_v6 = vrot.slane %v3037_v48, 2  ;;  %v4826_v11 = vrot.slane %v2948_v19, %v3920_v43 }
 0x36c   : > { %v2968_v37 = vsel %vm1957_vm8, %v2855_v41, %v2967_v59 }
 0x36d   : > { %v3553_v61 = vpop.f32.mrb[2].mxu1  ;;  %v2969_v53 = vsel %vm1959_vm9, %v2862_v14, %v2968_v37  ;;  %v3053_v18 = vadd.f32 %v3045_v6, %v3029_v1 }
 0x36e   : > { %v2702_v4 = vadd.f32 %v3553_v61, %v4761_v10  ;;  %v2696_v36 = vpop.f32.mrb[3].mxu1  ;;  %v2979_v22 = vrot.slane %v2969_v53, 7 }
 0x36f   : > { %v2697_v39 = vadd.f32 %v4761_v10, %v2696_v36 }
 0x370   : > { %v2728_v20 = vmax.f32 %v2702_v4, 0.0  ;;  %v2987_v0 = vsel %vm566_vm0, 0.0, %v2979_v22 }
 0x371   : > { %v2727_v62 = vmax.f32 %v2697_v39, 0.0  ;;  %v2993_v45 = vsel %vm2991_vm1, %v2987_v0, 0.0 }
 0x372   : > { %v2738_v51 = vsel %vm2733_vm14, %v2728_v20, -inf  ;;  %v3014_v4 = vmul.f32 %v4793_v17, %v2993_v45  ;;  %v3002_v2 = vmul.f32 %v4803_v24, %v2993_v45 }
 0x373   : > { %v2737_v7 = vsel %vm2733_vm14, %v2727_v62, -inf }
 0x374   : > { %v2739_v25 = vmax.f32 %v2737_v7, %v2738_v51  ;;  %v3061_v7 = vmul.f32 %v4823_v57, %v2993_v45  ;;  %v3022_v22 = vrot.slane %v3014_v4, 1 }
 0x376   : > { %v2767_v21 = vcombine.high %v2739_v25, %v2739_v25  ;;  %v2774_v16 = vrot.slane %v2739_v25, %v3956_v28  ;;  %v3073_v25 = vmul.f32 %v4826_v11, %v2993_v45  ;;  %v3065_v0 = vadd.f32 %v3061_v7, %v3053_v18 }
 0x378   : > { %v2781_v5 = vrot.slane %v2767_v21, %v3956_v28  ;;  %v2782_v32 = vcombine.high %v2774_v16, %v2774_v16  ;;  %v2863_v63 = vsel %vm2834_vm15, %v2774_v16, -inf }
 0x379   : > { %v2864_v40 = vrot.slane %v2863_v63, 4 }
 0x37a   : > { %v2783_v52 = vcombine.high %v2781_v5, %v2781_v5  ;;  %v2870_v15 = vsel %vm2834_vm15, %v2782_v32, -inf  ;;  %v2877_v46 = vsel %vm2834_vm15, %v2781_v5, -inf }
 0x37b   : > { %v2865_v58 = vmax.f32 %v2863_v63, %v2864_v40  ;;  %v2871_v29 = vrot.slane %v2870_v15, 4  ;;  %v2878_v38 = vrot.slane %v2877_v46, 4 }
 0x37c   : > { %v2884_v56 = vsel %vm2834_vm15, %v2783_v52, -inf  ;;  %v3038_v52 = vmul.f32 %v4810_v54, %v2993_v45 }
 0x37d   : > { %v2866_v9 = vrot.slane %v2865_v58, 2  ;;  %v2872_v33 = vmax.f32 %v2870_v15, %v2871_v29  ;;  %v2879_v35 = vmax.f32 %v2877_v46, %v2878_v38  ;;  %v2885_v42 = vrot.slane %v2884_v56, 4 }
 0x37e   : > { %v4844_v29 = vrot.slane %v2948_v19, %v3929_v49  ;;  %v3030_v38 = vadd.f32 %v3022_v22, %v3002_v2  ;;  %v3046_v60 = vrot.slane %v3038_v52, 2 }
 0x37f   : > { %v2867_v8 = vmax.f32 %v2865_v58, %v2866_v9  ;;  %v2873_v13 = vrot.slane %v2872_v33, 2  ;;  %v2880_v50 = vrot.slane %v2879_v35, 2  ;;  %v2886_v23 = vmax.f32 %v2884_v56, %v2885_v42  ;;  %v2949_v58 = vld [vmem:[%s4996_s9 + $0x8] sm:$0x7] }
 0x380   : > { %v3081_v56 = vrot.slane %v3073_v25, 1  ;;  %v4852_v27 = vrot.slane %v2949_v58, %v3923_v44  ;;  %v4855_v48 = vrot.slane %v2949_v58, %v3920_v43 }
 0x381   : > { %v2868_v30 = vrot.slane %v2867_v8, 1  ;;  %v2874_v26 = vmax.f32 %v2872_v33, %v2873_v13  ;;  %v2881_v47 = vmax.f32 %v2879_v35, %v2880_v50  ;;  %v2887_v34 = vrot.slane %v2886_v23, 2 }
 0x383   : > { %v2875_v12 = vrot.slane %v2874_v26, 1  ;;  %v2882_v31 = vrot.slane %v2881_v47, 1  ;;  %v2888_v61 = vmax.f32 %v2886_v23, %v2887_v34  ;;  %v3556_v41 = vpop.f32.mrb[4].mxu1  ;;  %v2869_v36 = vmax.f32 %v2867_v8, %v2868_v30 }
 0x384   : > { %v2712_v59 = vadd.f32 %v3556_v41, %v4761_v10  ;;  %v2706_v39 = vpop.f32.mrb[5].mxu1  ;;  %v3097_v23 = vmul.f32 %v4844_v29, %v2993_v45  ;;  %v3054_v30 = vadd.f32 %v3046_v60, %v3030_v38 }
 0x385   : > { %v2876_v20 = vmax.f32 %v2874_v26, %v2875_v12  ;;  %v2883_v14 = vmax.f32 %v2881_v47, %v2882_v31  ;;  %v2889_v62 = vrot.slane %v2888_v61, 1  ;;  %v2707_v37 = vadd.f32 %v4761_v10, %v2706_v39 }
 0x386   : > { %v2730_v51 = vmax.f32 %v2712_v59, 0.0  ;;  %v3089_v47 = vadd.f32 %v3081_v56, %v3065_v0 }
 0x387   : > { %v2890_v53 = vmax.f32 %v2888_v61, %v2889_v62  ;;  %v2970_v21 = vsel %vm1955_vm7, %v2876_v20, %v2869_v36  ;;  %v2729_v16 = vmax.f32 %v2707_v37, 0.0  ;;  %v4867_v61 = vrot.slane %v2949_v58, %v3929_v49 }
 0x388   : > { %v2971_v5 = vsel %vm1957_vm8, %v2883_v14, %v2970_v21  ;;  %v2741_v32 = vsel %vm2733_vm14, %v2730_v51, -inf  ;;  %v3105_v36 = vrot.slane %v3097_v23, 2 }
 0x389   : > { %v2972_v63 = vsel %vm1959_vm9, %v2890_v53, %v2971_v5  ;;  %v2740_v40 = vsel %vm2733_vm14, %v2729_v16, -inf }
 0x38a   : > { %v2980_v15 = vrot.slane %v2972_v63, 7  ;;  %v2742_v46 = vmax.f32 %v2740_v40, %v2741_v32  ;;  %v3113_v51 = vadd.f32 %v3105_v36, %v3089_v47 }
 0x38c   : > { %v2988_v9 = vsel %vm566_vm0, 0.0, %v2980_v15  ;;  %v2784_v33 = vcombine.high %v2742_v46, %v2742_v46  ;;  %v2791_v35 = vrot.slane %v2742_v46, %v3956_v28 }
 0x38d   : > { %v4849_v42 = vsel %vm2991_vm1, %v2988_v9, 0.0 }
 0x38e   : > { %v2798_v8 = vrot.slane %v2784_v33, %v3956_v28  ;;  %v2799_v13 = vcombine.high %v2791_v35, %v2791_v35  ;;  %v2891_v50 = vsel %vm2834_vm15, %v2791_v35, -inf  ;;  %v3062_v26 = vmul.f32 %v4823_v57, %v4849_v42 }
 0x38f   : > { %v2892_v19 = vrot.slane %v2891_v50, 4  ;;  %v3074_v43 = vmul.f32 %v4826_v11, %v4849_v42  ;;  %v3098_v37 = vmul.f32 %v4844_v29, %v4849_v42  ;;  %v3121_v18 = vmul.f32 %v4852_v27, %v4849_v42 }
 0x390   : > { %v2800_v34 = vcombine.high %v2798_v8, %v2798_v8  ;;  %v2898_v44 = vsel %vm2834_vm15, %v2799_v13, -inf  ;;  %v2905_v1 = vsel %vm2834_vm15, %v2798_v8, -inf  ;;  %v3066_v41 = vadd.f32 %v3062_v26, %v3054_v30 }
 0x391   : > { %v2893_v6 = vmax.f32 %v2891_v50, %v2892_v19  ;;  %v2899_v12 = vrot.slane %v2898_v44, 4  ;;  %v2906_v31 = vrot.slane %v2905_v1, 4  ;;  %v3082_v4 = vrot.slane %v3074_v43, 1 }
 0x392   : > { %v2912_v45 = vsel %vm2834_vm15, %v2800_v34, -inf  ;;  %v3106_v21 = vrot.slane %v3098_v37, 2  ;;  %v3125_v16 = vadd.f32 %v3121_v18, %v3113_v51  ;;  %v3133_v22 = vmul.f32 %v4855_v48, %v4849_v42 }
 0x393   : > { %v2894_v59 = vrot.slane %v2893_v6, 2  ;;  %v2900_v39 = vmax.f32 %v2898_v44, %v2899_v12  ;;  %v2907_v20 = vmax.f32 %v2905_v1, %v2906_v31  ;;  %v2913_v14 = vrot.slane %v2912_v45, 4 }
 0x394   : > { %v3090_v62 = vadd.f32 %v3082_v4, %v3066_v41  ;;  %v3141_v52 = vrot.slane %v3133_v22, 1  ;;  %v3157_v15 = vmul.f32 %v4867_v61, %v4849_v42  ;;  %v3015_v56 = vmul.f32 %v4793_v17, %v4849_v42 }
 0x395   : > { %v2895_v7 = vmax.f32 %v2893_v6, %v2894_v59  ;;  %v2901_v49 = vrot.slane %v2900_v39, 2  ;;  %v2908_v25 = vrot.slane %v2907_v20, 2  ;;  %v2914_v53 = vmax.f32 %v2912_v45, %v2913_v14 }
 0x396   : > { %v4876_v2 = vadd.f32 %v3106_v21, %v3090_v62  ;;  %v3149_v60 = vadd.f32 %v3141_v52, %v3125_v16  ;;  %v3165_v8 = vrot.slane %v3157_v15, 2  ;;  %v3023_v1 = vrot.slane %v3015_v56, 1 }
 0x397   : > { %v2896_v5 = vrot.slane %v2895_v7, 1  ;;  %v2902_v32 = vmax.f32 %v2900_v39, %v2901_v49  ;;  %v2909_v63 = vmax.f32 %v2907_v20, %v2908_v25  ;;  %v2915_v40 = vrot.slane %v2914_v53, 2 }
 0x398   : > { %v4884_v26 = vadd.f32 %v3165_v8, %v3149_v60  ;;  %v3003_v45 = vmul.f32 %v4803_v24, %v4849_v42 }
 0x399   : > { %v2903_v46 = vrot.slane %v2902_v32, 1  ;;  %v2910_v58 = vrot.slane %v2909_v63, 1  ;;  %v2916_v38 = vmax.f32 %v2914_v53, %v2915_v40  ;;  %v3559_v0 = vpop.f32.mrb[6].mxu1  ;;  %v2897_v9 = vmax.f32 %v2895_v7, %v2896_v5 }
 0x39a   : > { %v2722_v33 = vadd.f32 %v3559_v0, %v4761_v10  ;;  %v2716_v35 = vpop.f32.mrb[7].mxu1  ;;  %v3031_v36 = vadd.f32 %v3023_v1, %v3003_v45 }
 0x39b   : > { %v2904_v13 = vmax.f32 %v2902_v32, %v2903_v46  ;;  %v2911_v50 = vmax.f32 %v2909_v63, %v2910_v58  ;;  %v2917_v23 = vrot.slane %v2916_v38, 1  ;;  %v2717_v19 = vadd.f32 %v4761_v10, %v2716_v35 }
 0x39c   : > { %v2732_v30 = vmax.f32 %v2722_v33, 0.0  ;;  %v3039_v10 = vmul.f32 %v4810_v54, %v4849_v42 }
 0x39d   : > { %v2918_v47 = vmax.f32 %v2916_v38, %v2917_v23  ;;  %v2973_v34 = vsel %vm1955_vm7, %v2904_v13, %v2897_v9  ;;  %v2731_v44 = vmax.f32 %v2717_v19, 0.0 }
 0x39e   : > { %v2974_v43 = vsel %vm1957_vm8, %v2911_v50, %v2973_v34  ;;  %v2744_v6 = vsel %vm2733_vm14, %v2732_v30, -inf  ;;  %v3047_v62 = vrot.slane %v3039_v10, 2 }
 0x39f   : > { %v2975_v12 = vsel %vm1959_vm9, %v2918_v47, %v2974_v43  ;;  %v2743_v31 = vsel %vm2733_vm14, %v2731_v44, -inf }
 0x3a0   : > { %v2981_v41 = vrot.slane %v2975_v12, 7  ;;  %v2745_v4 = vmax.f32 %v2743_v31, %v2744_v6  ;;  %v3055_v49 = vadd.f32 %v3047_v62, %v3031_v36 }
 0x3a2   : > { %v2989_v59 = vsel %vm566_vm0, 0.0, %v2981_v41  ;;  %v2801_v39 = vcombine.high %v2745_v4, %v2745_v4  ;;  %v2808_v20 = vrot.slane %v2745_v4, %v3956_v28 }
 0x3a3   : > { %v2995_v14 = vsel %vm2991_vm1, %v2989_v59, 0.0  ;;  %v3494_v59 = vld [vmem:[%s4997_s10] ss:$0 sm:$0xff] }
 0x3a4   : > { %v2815_v37 = vrot.slane %v2801_v39, %v3956_v28  ;;  %v2816_v51 = vcombine.high %v2808_v20, %v2808_v20  ;;  %v2919_v18 = vsel %vm2834_vm15, %v2808_v20, -inf  ;;  %v3063_v42 = vmul.f32 %v4823_v57, %v2995_v14 }
 0x3a5   : > { %v2920_v7 = vrot.slane %v2919_v18, 4  ;;  %v3075_v16 = vmul.f32 %v4826_v11, %v2995_v14  ;;  %v3099_v0 = vmul.f32 %v4844_v29, %v2995_v14  ;;  %v3122_v56 = vmul.f32 %v4852_v27, %v2995_v14 }
 0x3a6   : > { %v2817_v25 = vcombine.high %v2815_v37, %v2815_v37  ;;  %v2926_v53 = vsel %vm2834_vm15, %v2816_v51, -inf  ;;  %v2933_v21 = vsel %vm2834_vm15, %v2815_v37, -inf  ;;  %v3067_v28 = vadd.f32 %v3063_v42, %v3055_v49 }
 0x3a7   : > { %v2921_v22 = vmax.f32 %v2919_v18, %v2920_v7  ;;  %v2927_v5 = vrot.slane %v2926_v53, 4  ;;  %v2934_v32 = vrot.slane %v2933_v21, 4  ;;  %v3083_v40 = vrot.slane %v3075_v16, 1 }
 0x3a8   : > { %v2940_v63 = vsel %vm2834_vm15, %v2817_v25, -inf  ;;  %v3016_v8 = vmul.f32 %v4793_v17, %v2995_v14  ;;  %v3107_v13 = vrot.slane %v3099_v0, 2  ;;  %v3126_v50 = vadd.f32 %v3122_v56, %v4876_v2 }
 0x3a9   : > { %v2922_v52 = vrot.slane %v2921_v22, 2  ;;  %v2928_v15 = vmax.f32 %v2926_v53, %v2927_v5  ;;  %v2935_v46 = vmax.f32 %v2933_v21, %v2934_v32  ;;  %v2941_v58 = vrot.slane %v2940_v63, 4 }
 0x3aa   : > { %v3091_v38 = vadd.f32 %v3083_v40, %v3067_v28  ;;  %v3134_v23 = vmul.f32 %v4855_v48, %v2995_v14  ;;  %v3158_v43 = vmul.f32 %v4867_v61, %v2995_v14  ;;  %v3024_v45 = vrot.slane %v3016_v8, 1 }
 0x3ab   : > { %v2923_v9 = vmax.f32 %v2921_v22, %v2922_v52  ;;  %v2929_v33 = vrot.slane %v2928_v15, 2  ;;  %v2936_v35 = vrot.slane %v2935_v46, 2  ;;  %v2942_v60 = vmax.f32 %v2940_v63, %v2941_v58 }
 0x3ac   : > { %v3115_v44 = vadd.f32 %v3107_v13, %v3091_v38  ;;  %v3142_v1 = vrot.slane %v3134_v23, 1  ;;  %v3166_v41 = vrot.slane %v3158_v43, 2  ;;  %v3004_v37 = vmul.f32 %v4803_v24, %v2995_v14 }
 0x3ad   : > { %v2924_v19 = vrot.slane %v2923_v9, 1  ;;  %v2930_v30 = vmax.f32 %v2928_v15, %v2929_v33  ;;  %v2937_v47 = vmax.f32 %v2935_v46, %v2936_v35  ;;  %v2943_v34 = vrot.slane %v2942_v60, 2 }
 0x3ae   : > { %v3150_v10 = vadd.f32 %v3142_v1, %v3126_v50  ;;  %v3040_v51 = vmul.f32 %v4810_v54, %v2995_v14  ;;  %v3183_v7 = vadd.f32 %v3494_v59, %v4884_v26  ;;  %v3032_v25 = vadd.f32 %v3024_v45, %v3004_v37  ;;  %v3309_v1 = vld [vmem:[%s5000_s13 + $0x58] sm:$0xff] }
 0x3af   : > { %v2931_v6 = vrot.slane %v2930_v30, 1  ;;  %v2938_v12 = vrot.slane %v2937_v47, 1  ;;  %v2944_v31 = vmax.f32 %v2942_v60, %v2943_v34  ;;  %v2925_v17 = vmax.f32 %v2923_v9, %v2924_v19 }
 0x3b0   : > { %v3174_v39 = vadd.f32 %v3166_v41, %v3150_v10  ;;  %v3048_v16 = vrot.slane %v3040_v51, 2  ;;  %v3136_v46 = vmul.f32 %v4855_v48, %v4798_v55  ;;  %v3312_v10 = vld [vmem:[%s5000_s13 + $0x70] sm:$0xff]  ;;  %v3313_v41 = vld [vmem:[%s5000_s13 + $0x78] sm:$0xff] }
 0x3b1   : > { %v2932_v4 = vmax.f32 %v2930_v30, %v2931_v6  ;;  %v2939_v36 = vmax.f32 %v2937_v47, %v2938_v12  ;;  %v2945_v2 = vrot.slane %v2944_v31, 1  ;;  %v3306_v30 = vld [vmem:[%s5000_s13 + $0x40] sm:$0xff]  ;;  %v3307_v47 = vld [vmem:[%s5000_s13 + $0x48] sm:$0xff] }
 0x3b2   : > { %v3184_v49 = vadd.f32 %v3494_v59, %v3174_v39  ;;  %v3056_v24 = vadd.f32 %v3048_v16, %v3032_v25  ;;  %v3144_v33 = vrot.slane %v3136_v46, 1  ;;  %v3651_v34 = vpack.c.bf16 %v3307_v47, %v3306_v30  ;;  %v3310_v6 = vld [vmem:[%s5000_s13 + $0x60] sm:$0xff]  ;;  %v3311_v12 = vld [vmem:[%s5000_s13 + $0x68] sm:$0xff] }
 0x3b3   : > { %v2946_v20 = vmax.f32 %v2944_v31, %v2945_v2  ;;  %v2976_v62 = vsel %vm1955_vm7, %v2932_v4, %v2925_v17  ;;  %v5013_v31 = vmov 0.0   ;;  %v3657_v45 = vpack.c.bf16 %v3311_v12, %v3310_v6  ;;  %v3495_v4 = vld [vmem:[%s4999_s12] ss:$0 sm:$0xff] }
 0x3b4   : > { %v2977_v18 = vsel %vm1957_vm8, %v2939_v36, %v2976_v62  ;;  %v3206_v21 = vcombine.low %v3183_v7, %v3184_v49  ;;  %v3660_v17 = vpack.c.bf16 %v3313_v41, %v3312_v10 }
 0x3b5   : > { %v2978_v42 = vsel %vm1959_vm9, %v2946_v20, %v2977_v18 }
 0x3b6   : > { %v2982_v53 = vrot.slane %v2978_v42, 7  ;;  %3576 = vmatprep.mubr.msk.f32.mxu1 %vm2733_vm14, %v3206_v21 }
 0x3b8   : > { %v2990_v22 = vsel %vm566_vm0, 0.0, %v2982_v53  ;;  %vm3730_vm0 = vmmov 0  }
 0x3b9   : > { %v2996_v5 = vsel %vm2991_vm1, %v2990_v22, 0.0  ;;  %3611 = vmatprep.mubr.msk.f32.mxu0 %vm3730_vm0, %v5013_v31 }
 0x3ba   : > { %v3064_v54 = vmul.f32 %v4823_v57, %v2996_v5  ;;  %v3076_v14 = vmul.f32 %v4826_v11, %v2996_v5  ;;  %v3100_v26 = vmul.f32 %v4844_v29, %v2996_v5  ;;  %v3123_v32 = vmul.f32 %v4852_v27, %v2996_v5 }
 0x3bb   : > { %v3135_v63 = vmul.f32 %v4855_v48, %v2996_v5  ;;  %v3159_v28 = vmul.f32 %v4867_v61, %v2996_v5  ;;  %v3124_v57 = vmul.f32 %v4852_v27, %v4798_v55  ;;  %v3160_v11 = vmul.f32 %v4867_v61, %v4798_v55  ;;  %v3304_v27 = vld [vmem:[%s5000_s13 + $0x30] sm:$0xff]  ;;  %v3305_v55 = vld [vmem:[%s5000_s13 + $0x38] sm:$0xff]  ;;  %v3386_v5 = vld [vmem:[%s5002_s15] sm:$0x1] }
 0x3bc   : > { %v3068_v40 = vadd.f32 %v3064_v54, %v3056_v24  ;;  %v3084_v52 = vrot.slane %v3076_v14, 1  ;;  %v3127_v15 = vadd.f32 %v3123_v32, %v3115_v44  ;;  %v3108_v0 = vrot.slane %v3100_v26, 2  ;;  %v3308_v44 = vld [vmem:[%s5000_s13 + $0x50] sm:$0xff]  ;;  %v3392_v32 = vld [vmem:[#allocation3] sm:$0x1] }
 0x3bd   : > { %v3143_v58 = vrot.slane %v3135_v63, 1  ;;  %v3167_v56 = vrot.slane %v3159_v28, 2  ;;  %v3168_v8 = vrot.slane %v3160_v11, 2  ;;  %v3648_v61 = vpack.c.bf16 %v3305_v55, %v3304_v27 }
 0x3be   : > { %v3092_v38 = vadd.f32 %v3084_v52, %v3068_v40  ;;  %v3654_v43 = vpack.c.bf16 %v3309_v1, %v3308_v44  ;;  %v3731_v26 = vmov 0  }
 0x3bf   : > { %v3151_v29 = vadd.f32 %v3143_v58, %v3127_v15  ;;  %3649 = vmatpush3.bf16.msra.mxu0 %v3648_v61  ;;  %3689 = vset.pattern.permute.xlu0 %v3731_v26 }
 0x3c0   : > { %v3116_v9 = vadd.f32 %v3108_v0, %v3092_v38  ;;  %3650 = vmatprep.subr.bf16.mxu0 %v3729_v3 }
 0x3c1   : > { %v3175_v35 = vadd.f32 %v3167_v56, %v3151_v29 }
 0x3c2   : > { %v3128_v60 = vadd.f32 %v3124_v57, %v3116_v9 }
 0x3c3   : > { %v3185_v23 = vadd.f32 %v3494_v59, %v3175_v35  ;;  %3652 = vmatpush3.bf16.msra.mxu0 %v3651_v34 }
 0x3c4   : > { %v3152_v13 = vadd.f32 %v3144_v33, %v3128_v60  ;;  %3653 = vmatprep.subr.bf16.mxu0 %v3729_v3 }
 0x3c6   : > { %v3176_v50 = vadd.f32 %v3168_v8, %v3152_v13 }
 0x3c7   : > { %3655 = vmatpush3.bf16.msra.mxu0 %v3654_v43 }
 0x3c8   : > { %v3186_v48 = vadd.f32 %v3494_v59, %v3176_v50  ;;  %3656 = vmatprep.subr.bf16.mxu0 %v3729_v3 }
 0x3ca   : > { %v3207_v19 = vcombine.low %v3185_v23, %v3186_v48 }
 0x3cb   : > { %3658 = vmatpush3.bf16.msra.mxu0 %v3657_v45 }
 0x3cc   : > { %3577 = vmatmul.mubr.msk.f32.vlgmr.msra.gmra.mrb[8].mxu1 %vm2733_vm14, %v3207_v19  ;;  %3659 = vmatprep.subr.bf16.mxu0 %v3729_v3  ;;  %v3314_v3 = vld [vmem:[%s5001_s14] sm:$0x1] }
 0x3cf   : > { %3661 = vmatpush3.bf16.msra.mxu0 %v3660_v17 }
 0x49f   : > { %v3578_v36 = vpop.f32.mrb[8].mxu1 }
 0x4a0   : > { %v3284_v2 = vadd.f32 %v3578_v36, %v3495_v4  ;;  %v3278_v59 = vpop.f32.mrb[9].mxu1 }
 0x4a1   : > { %v3279_v39 = vadd.f32 %v3495_v4, %v3278_v59 }
 0x4a2   : > { %v3288_v20 = vmax.f32 %v3284_v2, 0.0 }
 0x4a3   : > { %v3287_v62 = vmax.f32 %v3279_v39, 0.0 }
 0x4a5   : > { %v3289_v37 = vadd.f32 %v3288_v20, %v3287_v62 }
 0x4a7   : > { %v3290_v51 = vrot.slane %v3289_v37, 4 }
 0x4a9   : > { %v3291_v18 = vadd.f32 %v3290_v51, %v3289_v37 }
 0x4ab   : > { %v3292_v7 = vrot.slane %v3291_v18, 2 }
 0x4ad   : > { %v3293_v49 = vadd.f32 %v3292_v7, %v3291_v18 }
 0x4af   : > { %v3294_v42 = vrot.slane %v3293_v49, 1 }
 0x4b1   : > { %v3295_v25 = vadd.f32 %v3294_v42, %v3293_v49 }
 0x4b3   : > { %v3297_v53 = vmul.f32 0.0625, %v3295_v25 }
 0x4b5   : > { %3612 = vmatmul.mubr.f32.vlgmr.msra.gmra.mrb[0].mxu0 %v3297_v53 }
 0x588   : > { %v3381_v21 = vpop.f32.mrb[0].mxu0 }
 0x589   : > { %v3382_v16 = vadd.f32 %v3381_v21, %v3314_v3  ;;  %v3613_v22 = vpop.f32.mrb[1].mxu0 }
 0x58b   : > { %v3385_v24 = vmax.f32 %v3382_v16, 0.0 }
 0x58d   : > { %v3387_v54 = vmul.f32 %v3386_v5, %v3385_v24 }
 0x58f   : > { %v3389_v14 = vsel %vm3388_vm2, %v3387_v54, 0.0 }
 0x590   : > { %3390 = vadd.xlane.f32.xlu1 %v3389_v14 }
 0x61d   : > { %v3391_v63 = vpop.xlane.xlu1 %3390 }
 0x61e   : > { %v3393_v28 = vadd.f32 %v3392_v32, %v3391_v63 }
 0x620   : > { %v3394_v40 = vsub.f32 0.0, %v3393_v28 }
 0x622   : > { %v3395_v52 = vmul.f32 1.442695, %v3394_v40 }
 0x624   : > { %3690 = vpow2.f32 %v3395_v52 }
 0x62e   : > { %v3691_v15 = vpop.eup %3690 }
 0x62f   : > { %v3397_v46 = vadd.f32 1.0, %v3691_v15 }
 0x631   : > { %3692 = vrcp.f32 %v3397_v46 }
 0x63b   : > { %v3693_v58 = vpop.eup %3692 }
 0x63c   : > { %3402 = vperm.xlu0 %3689, %v3693_v58  }
 0x6bb   : > { %v3403_v38 = vpop.permute.xlu0 %3402 }
 0x6bc   : > { %3405 = vst [vmem:[%s561_s23] sm:$0x1] %v3403_v38 }
 0x6bd PF: > { %s31_s28 = sadd.s32 1, %s3721_s28  }
 0x6be   : > { %p28_p1 = scmp.ge.s32.totalorder %s31_s28, 4  }
 0x6c0   :  { %30 = sbr.rel (!%p28_p1) target bundleno = 5 (0x5), region = 123 }
 0x6c7   :  { %3423 = vsyncpa [#allocation5], 1 }
 0x6c8   :  { %3425 = vsyncpa [#allocation5 + $0x1], 1 }

</bundles_post_ra>
